<compile_context>
chip_gen: v7x
topology: tpu7x:2x2x1
jax: 0.10.0
libtpu: 0.0.40
codegen_flags: <defaults>
</compile_context>

<pallas_src>
import jax
import jax.numpy as jnp
from jax.experimental import pallas as pl
from jax.experimental.pallas import tpu as pltpu

INPUT_SIZE = (21, 3)
D_IN = INPUT_SIZE[0] * INPUT_SIZE[1]   # 63 (flattened pose)
D_PAD = 128                            # lane-dense padded feature dim
FEAT = 512                             # input_fc width (folded away at runtime)
HIDDEN = 128                           # hidden_size (kept small for the demo)
N_LAYERS = 2                           # kernel implements exactly n_layers=2
BATCH = 4
SEQ = 8                                # timesteps processed per kernel launch


def pose_gru_kernel(x_ref, w_comb_ref, b_comb_ref,
                    w_hh0_ref, b_hh0_ref,
                    w_l1_ref, b_l1_ref,
                    w_out_ref, b_out_ref,
                    h0_init_ref, h1_init_ref,
                    h0_out_ref, h1_out_ref, out_ref):
    T, bp, dpad = x_ref.shape
    H = HIDDEN
    bf16 = jnp.bfloat16

    X = x_ref[...].reshape(T * bp, dpad)                     # (T*Bp, 128) f32

    # Hoisted non-recurrent layer-0 input projection for ALL timesteps
    # (input_fc folded into GRU-0's W_ih; W_comb kept in f32).
    gi0_all = jnp.dot(X, w_comb_ref[...],
                      preferred_element_type=jnp.float32) + b_comb_ref[...]

    # Hoist weight/bias loads out of the unrolled loop (no per-iter broadcasts).
    w_hh0 = w_hh0_ref[...]
    b_hh0 = b_hh0_ref[...]
    w_l1 = w_l1_ref[...]
    b_l1 = b_l1_ref[...]

    h0 = h0_init_ref[...]
    h1 = h1_init_ref[...]
    h1_steps = []

    # T is a small static constant: this Python loop fully unrolls (the
    # equivalent of lax.fori_loop(..., unroll=True)) so the scheduler sees
    # every timestep; only 2 small matmuls remain on the recurrent path.
    for t in range(T):
        gi0 = gi0_all[t * bp:(t + 1) * bp]                   # (Bp, 3H)
        gh0 = jnp.dot(h0.astype(bf16), w_hh0,
                      preferred_element_type=jnp.float32) + b_hh0
        r0 = jax.nn.sigmoid(gi0[:, :H] + gh0[:, :H])
        z0 = jax.nn.sigmoid(gi0[:, H:2 * H] + gh0[:, H:2 * H])
        n0 = jnp.tanh(gi0[:, 2 * H:] + r0 * gh0[:, 2 * H:])
        h0 = (1.0 - z0) * n0 + z0 * h0

        # Layer 1: one fused K=2H matmul producing [rz_summed | gi_n | gh_n].
        hin = jnp.concatenate([h0, h1], axis=1).astype(bf16)  # (Bp, 2H)
        g1 = jnp.dot(hin, w_l1, preferred_element_type=jnp.float32) + b_l1
        r1 = jax.nn.sigmoid(g1[:, :H])
        z1 = jax.nn.sigmoid(g1[:, H:2 * H])
        n1 = jnp.tanh(g1[:, 2 * H:3 * H] + r1 * g1[:, 3 * H:4 * H])
        h1 = (1.0 - z1) * n1 + z1 * h1
        h1_steps.append(h1)

    # State outputs written exactly once.
    h0_out_ref[...] = h0
    h1_out_ref[...] = h1

    # Deferred output projection + residual, batched over all timesteps.
    H1 = jnp.concatenate(h1_steps, axis=0)                   # (T*Bp, H)
    out = jnp.dot(H1.astype(bf16), w_out_ref[...],
                  preferred_element_type=jnp.float32) + b_out_ref[...] + X
    out_ref[...] = out.reshape(T, bp, dpad)


def prepare_params(params):
    """Fold input_fc into GRUCell-0, build the fused layer-1 weight, pad to
    lane-dense shapes.  Folded W_comb stays f32; recurrent weights go bf16."""
    f32, bf16 = jnp.float32, jnp.bfloat16
    H = HIDDEN
    hi = jax.lax.Precision.HIGHEST

    # Exact fold (no nonlinearity between input_fc and GRUCell-0).
    w_comb = jnp.dot(params["w_fc"], params["w_ih0"], precision=hi)       # (63, 3H)
    b_comb = jnp.dot(params["b_fc"], params["w_ih0"], precision=hi) + params["b_ih0"]
    w_comb_p = jnp.zeros((D_PAD, 3 * H), f32).at[:D_IN].set(w_comb)

    # Fused layer-1 weight: [h0 | h1_prev] (2H) -> [rz_summed (2H) | gi_n | gh_n].
    w_ih1, w_hh1 = params["w_ih1"], params["w_hh1"]
    b_ih1, b_hh1 = params["b_ih1"], params["b_hh1"]
    w_l1 = jnp.zeros((2 * H, 4 * H), f32)
    w_l1 = w_l1.at[:H, :2 * H].set(w_ih1[:, :2 * H])
    w_l1 = w_l1.at[H:, :2 * H].set(w_hh1[:, :2 * H])
    w_l1 = w_l1.at[:H, 2 * H:3 * H].set(w_ih1[:, 2 * H:])
    w_l1 = w_l1.at[H:, 3 * H:].set(w_hh1[:, 2 * H:])
    b_l1 = jnp.concatenate([b_ih1[:, :2 * H] + b_hh1[:, :2 * H],
                            b_ih1[:, 2 * H:], b_hh1[:, 2 * H:]], axis=1)

    w_out_p = jnp.zeros((H, D_PAD), f32).at[:, :D_IN].set(params["w_out"])
    b_out_p = jnp.zeros((1, D_PAD), f32).at[:, :D_IN].set(params["b_out"])
    return {
        "w_comb": w_comb_p,                  # f32 (precision-sensitive folded matrix)
        "b_comb": b_comb.astype(f32),
        "w_hh0": params["w_hh0"].astype(bf16), "b_hh0": params["b_hh0"].astype(f32),
        "w_l1": w_l1.astype(bf16), "b_l1": b_l1.astype(f32),
        "w_out": w_out_p.astype(bf16), "b_out": b_out_p,
    }


def pose_gru_sequence(x_seq, prepped, hidden=None):
    """x_seq: (bs, T, 21, 3) -> ((h0, h1) final states (bs, H), outputs (bs, T, 21, 3)).

    Equivalent to calling the module's forward() T times with the hidden state
    carried (as forward_prediction does over its input sequence); T=1 is exactly
    PoseGRU_inputFC2.forward.
    """
    bs, T = x_seq.shape[0], x_seq.shape[1]
    bp = ((bs + 15) // 16) * 16
    xf = x_seq.reshape(bs, T, D_IN).astype(jnp.float32)
    x_pad = jnp.zeros((T, bp, D_PAD), jnp.float32).at[:, :bs, :D_IN].set(
        jnp.transpose(xf, (1, 0, 2)))

    if hidden is None:
        h0 = jnp.zeros((bp, HIDDEN), jnp.float32)
        h1 = jnp.zeros((bp, HIDDEN), jnp.float32)
    else:
        h0 = jnp.zeros((bp, HIDDEN), jnp.float32).at[:bs].set(hidden[0].astype(jnp.float32))
        h1 = jnp.zeros((bp, HIDDEN), jnp.float32).at[:bs].set(hidden[1].astype(jnp.float32))

    args = (x_pad,
            prepped["w_comb"], prepped["b_comb"],
            prepped["w_hh0"], prepped["b_hh0"],
            prepped["w_l1"], prepped["b_l1"],
            prepped["w_out"], prepped["b_out"],
            h0, h1)

    vmem_spec = pl.BlockSpec(memory_space=pltpu.MemorySpace.VMEM)  # whole array in VMEM

    in_bytes = sum(int(a.size) * a.dtype.itemsize for a in args)
    out_bytes = (T * bp * D_PAD + 2 * bp * HIDDEN) * 4
    cost = pl.CostEstimate(
        flops=2 * (T * bp) * (D_PAD * 3 * HIDDEN + HIDDEN * D_PAD)
              + 2 * T * bp * (HIDDEN * 3 * HIDDEN + 2 * HIDDEN * 4 * HIDDEN),
        transcendentals=T * bp * 6 * HIDDEN,
        bytes_accessed=in_bytes + out_bytes)

    h0f, h1f, out_seq = pl.pallas_call(
        pose_gru_kernel,
        in_specs=[vmem_spec] * len(args),
        out_specs=(vmem_spec, vmem_spec, vmem_spec),
        out_shape=(jax.ShapeDtypeStruct((bp, HIDDEN), jnp.float32),
                   jax.ShapeDtypeStruct((bp, HIDDEN), jnp.float32),
                   jax.ShapeDtypeStruct((T, bp, D_PAD), jnp.float32)),
        cost_estimate=cost,
    )(*args)

    out = jnp.transpose(out_seq[:, :bs, :D_IN], (1, 0, 2)).reshape((bs, T) + INPUT_SIZE)
    return (h0f[:bs], h1f[:bs]), out


def pose_gru_forward(x, prepped, hidden=None):
    """Exact equivalent of PoseGRU_inputFC2.forward: x (bs, 21, 3) -> (cur_state, out)."""
    (h0, h1), out = pose_gru_sequence(x[:, None], prepped, hidden)
    return h1, out[:, 0]


def init_params(key):
    """Deterministic synthetic init (uniform +-1/sqrt(fan_in), like PyTorch)."""
    ks = jax.random.split(key, 13)

    def uni(k, shape, fan_in):
        bound = 1.0 / jnp.sqrt(jnp.float32(fan_in))
        return jax.random.uniform(k, shape, jnp.float32, -bound, bound)

    return {
        "w_fc": uni(ks[0], (D_IN, FEAT), D_IN),            # Linear(63, 512), stored [in, out]
        "b_fc": uni(ks[1], (1, FEAT), D_IN),
        "w_ih0": uni(ks[2], (FEAT, 3 * HIDDEN), HIDDEN),   # GRUCell(512 -> H), gate order r,z,n
        "w_hh0": uni(ks[3], (HIDDEN, 3 * HIDDEN), HIDDEN),
        "b_ih0": uni(ks[4], (1, 3 * HIDDEN), HIDDEN),
        "b_hh0": uni(ks[5], (1, 3 * HIDDEN), HIDDEN),
        "w_ih1": uni(ks[6], (HIDDEN, 3 * HIDDEN), HIDDEN),  # GRUCell(H -> H)
        "w_hh1": uni(ks[7], (HIDDEN, 3 * HIDDEN), HIDDEN),
        "b_ih1": uni(ks[8], (1, 3 * HIDDEN), HIDDEN),
        "b_hh1": uni(ks[9], (1, 3 * HIDDEN), HIDDEN),
        "w_out": uni(ks[10], (HIDDEN, D_IN), HIDDEN),      # Linear(H, 63)
        "b_out": uni(ks[11], (1, D_IN), HIDDEN),
    }


def _gru_cell_f32(x, h, w_ih, w_hh, b_ih, b_hh):
    H = HIDDEN
    gi = x @ w_ih + b_ih
    gh = h @ w_hh + b_hh
    r = jax.nn.sigmoid(gi[:, :H] + gh[:, :H])
    z = jax.nn.sigmoid(gi[:, H:2 * H] + gh[:, H:2 * H])
    n = jnp.tanh(gi[:, 2 * H:] + r * gh[:, 2 * H:])
    return (1.0 - z) * n + z * h


def reference_original(x_seq, params, hidden=None):
    """Pure-JAX f32 mirror of the PyTorch module math (un-folded, un-padded)."""
    bs, T = x_seq.shape[0], x_seq.shape[1]
    xf = x_seq.reshape(bs, T, D_IN).astype(jnp.float32)
    if hidden is None:
        h = [jnp.zeros((bs, HIDDEN), jnp.float32) for _ in range(N_LAYERS)]
    else:
        h = [hidden[0], hidden[1]]
    outs = []
    for t in range(T):
        x = xf[:, t]
        feat = x @ params["w_fc"] + params["b_fc"]     # no activation after input_fc
        h[0] = _gru_cell_f32(feat, h[0], params["w_ih0"], params["w_hh0"],
                             params["b_ih0"], params["b_hh0"])
        h[1] = _gru_cell_f32(h[0], h[1], params["w_ih1"], params["w_hh1"],
                             params["b_ih1"], params["b_hh1"])
        outs.append(h[1] @ params["w_out"] + params["b_out"] + x)
    return (h[0], h[1]), jnp.stack(outs, axis=1).reshape((bs, T) + INPUT_SIZE)


def reference_prepped(x_seq, prepped, hidden=None):
    """Pure-JAX mirror of the exact kernel math (folded, padded, fused, bf16 weights)."""
    bs, T = x_seq.shape[0], x_seq.shape[1]
    H = HIDDEN
    bf16, f32 = jnp.bfloat16, jnp.float32
    xf = x_seq.reshape(bs, T, D_IN).astype(f32)
    x_pad = jnp.zeros((bs, T, D_PAD), f32).at[:, :, :D_IN].set(xf)
    h0 = jnp.zeros((bs, H), f32)
    h1 = jnp.zeros((bs, H), f32)
    if hidden is not None:
        h0, h1 = hidden[0].astype(f32), hidden[1].astype(f32)
    outs = []
    for t in range(T):
        x = x_pad[:, t]
        gi0 = jnp.dot(x, prepped["w_comb"], preferred_element_type=f32) + prepped["b_comb"]
        gh0 = jnp.dot(h0.astype(bf16), prepped["w_hh0"], preferred_element_type=f32) + prepped["b_hh0"]
        r0 = jax.nn.sigmoid(gi0[:, :H] + gh0[:, :H])
        z0 = jax.nn.sigmoid(gi0[:, H:2 * H] + gh0[:, H:2 * H])
        n0 = jnp.tanh(gi0[:, 2 * H:] + r0 * gh0[:, 2 * H:])
        h0 = (1.0 - z0) * n0 + z0 * h0
        hin = jnp.concatenate([h0, h1], axis=1).astype(bf16)
        g1 = jnp.dot(hin, prepped["w_l1"], preferred_element_type=f32) + prepped["b_l1"]
        r1 = jax.nn.sigmoid(g1[:, :H])
        z1 = jax.nn.sigmoid(g1[:, H:2 * H])
        n1 = jnp.tanh(g1[:, 2 * H:3 * H] + r1 * g1[:, 3 * H:4 * H])
        h1 = (1.0 - z1) * n1 + z1 * h1
        out = jnp.dot(h1.astype(bf16), prepped["w_out"], preferred_element_type=f32) + prepped["b_out"] + x
        outs.append(out[:, :D_IN])
    return (h0, h1), jnp.stack(outs, axis=1).reshape((bs, T) + INPUT_SIZE)


if __name__ == "__main__":
    key = jax.random.PRNGKey(0)
    k_param, k_x = jax.random.split(key)
    params = init_params(k_param)
    prepped = prepare_params(params)

    x_seq = jax.random.normal(k_x, (BATCH, SEQ) + INPUT_SIZE, jnp.float32)

    # 1) In-kernel rollout over SEQ timesteps (single pallas_call, no grid).
    (h0f, h1f), out_seq = pose_gru_sequence(x_seq, prepped)
    jax.block_until_ready((h0f, h1f, out_seq))
    assert h1f.shape == (BATCH, HIDDEN)
    assert out_seq.shape == (BATCH, SEQ) + INPUT_SIZE

    # Tight check: kernel vs pure-JAX mirror of the same folded/fused/bf16 math.
    (r_h0, r_h1), r_out = reference_prepped(x_seq, prepped)
    assert jnp.allclose(h1f, r_h1, atol=5e-3, rtol=5e-3), \
        float(jnp.max(jnp.abs(h1f - r_h1)))
    assert jnp.allclose(out_seq, r_out, atol=5e-3, rtol=5e-3), \
        float(jnp.max(jnp.abs(out_seq - r_out)))

    # Sanity check: folding/fusion + bf16 recurrent weights stay close to the
    # original f32 module math.
    (o_h0, o_h1), o_out = reference_original(x_seq, params)
    assert float(jnp.max(jnp.abs(h1f - o_h1))) < 0.1
    assert float(jnp.max(jnp.abs(out_seq - o_out))) < 0.1

    # 2) Single-step forward (exactly the module's forward(); T == 1).
    state1, out1 = pose_gru_forward(x_seq[:, 0], prepped)
    jax.block_until_ready((state1, out1))
    (_, o_h1s), o_out1 = reference_original(x_seq[:, :1], params)
    assert float(jnp.max(jnp.abs(state1 - o_h1s))) < 0.05
    assert float(jnp.max(jnp.abs(out1 - o_out1[:, 0]))) < 0.05

    print("KERNEL_OK")
</pallas_src>

<mosaic_0001>
module attributes {stable_mosaic.version = 11 : i64} {
  func.func @pose_gru_kernel(%arg0: memref<8x16x128xf32, #tpu.memory_space<vmem>>, %arg1: memref<128x384xf32, #tpu.memory_space<vmem>>, %arg2: memref<1x384xf32, #tpu.memory_space<vmem>>, %arg3: memref<128x384xbf16, #tpu.memory_space<vmem>>, %arg4: memref<1x384xf32, #tpu.memory_space<vmem>>, %arg5: memref<256x512xbf16, #tpu.memory_space<vmem>>, %arg6: memref<1x512xf32, #tpu.memory_space<vmem>>, %arg7: memref<128x128xbf16, #tpu.memory_space<vmem>>, %arg8: memref<1x128xf32, #tpu.memory_space<vmem>>, %arg9: memref<16x128xf32, #tpu.memory_space<vmem>>, %arg10: memref<16x128xf32, #tpu.memory_space<vmem>>, %arg11: memref<16x128xf32, #tpu.memory_space<vmem>>, %arg12: memref<16x128xf32, #tpu.memory_space<vmem>>, %arg13: memref<8x16x128xf32, #tpu.memory_space<vmem>>) attributes {dimension_semantics = [], scalar_prefetch = 0 : i64, scratch_operands = 0 : i64, tpu.core_type = #tpu.core_type<tc>} {
    %c0 = arith.constant 0 : index
    %c0_0 = arith.constant 0 : index
    %c0_1 = arith.constant 0 : index
    %0 = vector.load %arg0[%c0, %c0_0, %c0_1] : memref<8x16x128xf32, #tpu.memory_space<vmem>>, vector<8x16x128xf32>
    %1 = vector.shape_cast %0 : vector<8x16x128xf32> to vector<128x128xf32>
    %c0_2 = arith.constant 0 : index
    %c0_3 = arith.constant 0 : index
    %2 = vector.load %arg1[%c0_2, %c0_3] : memref<128x384xf32, #tpu.memory_space<vmem>>, vector<128x384xf32>
    %cst = arith.constant dense<0.000000e+00> : vector<128x384xf32>
    %3 = tpu.matmul %1, %2, %cst {dimension_numbers = #tpu.dot_dimension_numbers<[1], [0], [0], [1], [0, 0, 1, 1], [], []>} : vector<128x128xf32>, vector<128x384xf32>, vector<128x384xf32> -> vector<128x384xf32>
    %c0_4 = arith.constant 0 : index
    %c0_5 = arith.constant 0 : index
    %4 = vector.load %arg2[%c0_4, %c0_5] : memref<1x384xf32, #tpu.memory_space<vmem>>, vector<1x384xf32>
    %5 = vector.broadcast %4 : vector<1x384xf32> to vector<128x384xf32>
    %6 = arith.addf %3, %5 : vector<128x384xf32>
    %c0_6 = arith.constant 0 : index
    %c0_7 = arith.constant 0 : index
    %7 = vector.load %arg3[%c0_6, %c0_7] : memref<128x384xbf16, #tpu.memory_space<vmem>>, vector<128x384xbf16>
    %c0_8 = arith.constant 0 : index
    %c0_9 = arith.constant 0 : index
    %8 = vector.load %arg4[%c0_8, %c0_9] : memref<1x384xf32, #tpu.memory_space<vmem>>, vector<1x384xf32>
    %c0_10 = arith.constant 0 : index
    %c0_11 = arith.constant 0 : index
    %9 = vector.load %arg5[%c0_10, %c0_11] : memref<256x512xbf16, #tpu.memory_space<vmem>>, vector<256x512xbf16>
    %c0_12 = arith.constant 0 : index
    %c0_13 = arith.constant 0 : index
    %10 = vector.load %arg6[%c0_12, %c0_13] : memref<1x512xf32, #tpu.memory_space<vmem>>, vector<1x512xf32>
    %c0_14 = arith.constant 0 : index
    %c0_15 = arith.constant 0 : index
    %11 = vector.load %arg9[%c0_14, %c0_15] : memref<16x128xf32, #tpu.memory_space<vmem>>, vector<16x128xf32>
    %c0_16 = arith.constant 0 : index
    %c0_17 = arith.constant 0 : index
    %12 = vector.load %arg10[%c0_16, %c0_17] : memref<16x128xf32, #tpu.memory_space<vmem>>, vector<16x128xf32>
    %13 = vector.extract_strided_slice %6 {offsets = [0, 0], sizes = [16, 384], strides = [1, 1]} : vector<128x384xf32> to vector<16x384xf32>
    %14 = arith.truncf %11 : vector<16x128xf32> to vector<16x128xbf16>
    %cst_18 = arith.constant dense<0.000000e+00> : vector<16x384xf32>
    %15 = tpu.matmul %14, %7, %cst_18 {dimension_numbers = #tpu.dot_dimension_numbers<[1], [0], [0], [1], [0, 0, 1, 1], [], []>} : vector<16x128xbf16>, vector<128x384xbf16>, vector<16x384xf32> -> vector<16x384xf32>
    %16 = vector.broadcast %8 : vector<1x384xf32> to vector<16x384xf32>
    %17 = arith.addf %15, %16 : vector<16x384xf32>
    %18 = vector.extract_strided_slice %13 {offsets = [0, 0], sizes = [16, 128], strides = [1, 1]} : vector<16x384xf32> to vector<16x128xf32>
    %19 = vector.extract_strided_slice %17 {offsets = [0, 0], sizes = [16, 128], strides = [1, 1]} : vector<16x384xf32> to vector<16x128xf32>
    %20 = arith.addf %18, %19 : vector<16x128xf32>
    %21 = arith.negf %20 : vector<16x128xf32>
    %22 = math.exp %21 : vector<16x128xf32>
    %cst_19 = arith.constant 1.000000e+00 : f32
    %23 = vector.broadcast %cst_19 : f32 to vector<16x128xf32>
    %24 = arith.addf %23, %22 : vector<16x128xf32>
    %25 = arith.divf %23, %24 : vector<16x128xf32>
    %26 = vector.extract_strided_slice %13 {offsets = [0, 128], sizes = [16, 128], strides = [1, 1]} : vector<16x384xf32> to vector<16x128xf32>
    %27 = vector.extract_strided_slice %17 {offsets = [0, 128], sizes = [16, 128], strides = [1, 1]} : vector<16x384xf32> to vector<16x128xf32>
    %28 = arith.addf %26, %27 : vector<16x128xf32>
    %29 = arith.negf %28 : vector<16x128xf32>
    %30 = math.exp %29 : vector<16x128xf32>
    %cst_20 = arith.constant 1.000000e+00 : f32
    %31 = vector.broadcast %cst_20 : f32 to vector<16x128xf32>
    %32 = arith.addf %31, %30 : vector<16x128xf32>
    %33 = arith.divf %31, %32 : vector<16x128xf32>
    %34 = vector.extract_strided_slice %13 {offsets = [0, 256], sizes = [16, 128], strides = [1, 1]} : vector<16x384xf32> to vector<16x128xf32>
    %35 = vector.extract_strided_slice %17 {offsets = [0, 256], sizes = [16, 128], strides = [1, 1]} : vector<16x384xf32> to vector<16x128xf32>
    %36 = arith.mulf %25, %35 : vector<16x128xf32>
    %37 = arith.addf %34, %36 : vector<16x128xf32>
    %38 = math.tanh %37 : vector<16x128xf32>
    %cst_21 = arith.constant 1.000000e+00 : f32
    %39 = vector.broadcast %cst_21 : f32 to vector<16x128xf32>
    %40 = arith.subf %39, %33 : vector<16x128xf32>
    %41 = arith.mulf %40, %38 : vector<16x128xf32>
    %42 = arith.mulf %33, %11 : vector<16x128xf32>
    %43 = arith.addf %41, %42 : vector<16x128xf32>
    %44 = tpu.concatenate %43, %12 in 1 : vector<16x128xf32>, vector<16x128xf32> -> vector<16x256xf32>
    %45 = arith.truncf %44 : vector<16x256xf32> to vector<16x256xbf16>
    %cst_22 = arith.constant dense<0.000000e+00> : vector<16x512xf32>
    %46 = tpu.matmul %45, %9, %cst_22 {dimension_numbers = #tpu.dot_dimension_numbers<[1], [0], [0], [1], [0, 0, 1, 1], [], []>} : vector<16x256xbf16>, vector<256x512xbf16>, vector<16x512xf32> -> vector<16x512xf32>
    %47 = vector.broadcast %10 : vector<1x512xf32> to vector<16x512xf32>
    %48 = arith.addf %46, %47 : vector<16x512xf32>
    %49 = vector.extract_strided_slice %48 {offsets = [0, 0], sizes = [16, 128], strides = [1, 1]} : vector<16x512xf32> to vector<16x128xf32>
    %50 = arith.negf %49 : vector<16x128xf32>
    %51 = math.exp %50 : vector<16x128xf32>
    %cst_23 = arith.constant 1.000000e+00 : f32
    %52 = vector.broadcast %cst_23 : f32 to vector<16x128xf32>
    %53 = arith.addf %52, %51 : vector<16x128xf32>
    %54 = arith.divf %52, %53 : vector<16x128xf32>
    %55 = vector.extract_strided_slice %48 {offsets = [0, 128], sizes = [16, 128], strides = [1, 1]} : vector<16x512xf32> to vector<16x128xf32>
    %56 = arith.negf %55 : vector<16x128xf32>
    %57 = math.exp %56 : vector<16x128xf32>
    %cst_24 = arith.constant 1.000000e+00 : f32
    %58 = vector.broadcast %cst_24 : f32 to vector<16x128xf32>
    %59 = arith.addf %58, %57 : vector<16x128xf32>
    %60 = arith.divf %58, %59 : vector<16x128xf32>
    %61 = vector.extract_strided_slice %48 {offsets = [0, 256], sizes = [16, 128], strides = [1, 1]} : vector<16x512xf32> to vector<16x128xf32>
    %62 = vector.extract_strided_slice %48 {offsets = [0, 384], sizes = [16, 128], strides = [1, 1]} : vector<16x512xf32> to vector<16x128xf32>
    %63 = arith.mulf %54, %62 : vector<16x128xf32>
    %64 = arith.addf %61, %63 : vector<16x128xf32>
    %65 = math.tanh %64 : vector<16x128xf32>
    %cst_25 = arith.constant 1.000000e+00 : f32
    %66 = vector.broadcast %cst_25 : f32 to vector<16x128xf32>
    %67 = arith.subf %66, %60 : vector<16x128xf32>
    %68 = arith.mulf %67, %65 : vector<16x128xf32>
    %69 = arith.mulf %60, %12 : vector<16x128xf32>
    %70 = arith.addf %68, %69 : vector<16x128xf32>
    %71 = vector.extract_strided_slice %6 {offsets = [16, 0], sizes = [16, 384], strides = [1, 1]} : vector<128x384xf32> to vector<16x384xf32>
    %72 = arith.truncf %43 : vector<16x128xf32> to vector<16x128xbf16>
    %cst_26 = arith.constant dense<0.000000e+00> : vector<16x384xf32>
    %73 = tpu.matmul %72, %7, %cst_26 {dimension_numbers = #tpu.dot_dimension_numbers<[1], [0], [0], [1], [0, 0, 1, 1], [], []>} : vector<16x128xbf16>, vector<128x384xbf16>, vector<16x384xf32> -> vector<16x384xf32>
    %74 = vector.broadcast %8 : vector<1x384xf32> to vector<16x384xf32>
    %75 = arith.addf %73, %74 : vector<16x384xf32>
    %76 = vector.extract_strided_slice %71 {offsets = [0, 0], sizes = [16, 128], strides = [1, 1]} : vector<16x384xf32> to vector<16x128xf32>
    %77 = vector.extract_strided_slice %75 {offsets = [0, 0], sizes = [16, 128], strides = [1, 1]} : vector<16x384xf32> to vector<16x128xf32>
    %78 = arith.addf %76, %77 : vector<16x128xf32>
    %79 = arith.negf %78 : vector<16x128xf32>
    %80 = math.exp %79 : vector<16x128xf32>
    %cst_27 = arith.constant 1.000000e+00 : f32
    %81 = vector.broadcast %cst_27 : f32 to vector<16x128xf32>
    %82 = arith.addf %81, %80 : vector<16x128xf32>
    %83 = arith.divf %81, %82 : vector<16x128xf32>
    %84 = vector.extract_strided_slice %71 {offsets = [0, 128], sizes = [16, 128], strides = [1, 1]} : vector<16x384xf32> to vector<16x128xf32>
    %85 = vector.extract_strided_slice %75 {offsets = [0, 128], sizes = [16, 128], strides = [1, 1]} : vector<16x384xf32> to vector<16x128xf32>
    %86 = arith.addf %84, %85 : vector<16x128xf32>
    %87 = arith.negf %86 : vector<16x128xf32>
    %88 = math.exp %87 : vector<16x128xf32>
    %cst_28 = arith.constant 1.000000e+00 : f32
    %89 = vector.broadcast %cst_28 : f32 to vector<16x128xf32>
    %90 = arith.addf %89, %88 : vector<16x128xf32>
    %91 = arith.divf %89, %90 : vector<16x128xf32>
    %92 = vector.extract_strided_slice %71 {offsets = [0, 256], sizes = [16, 128], strides = [1, 1]} : vector<16x384xf32> to vector<16x128xf32>
    %93 = vector.extract_strided_slice %75 {offsets = [0, 256], sizes = [16, 128], strides = [1, 1]} : vector<16x384xf32> to vector<16x128xf32>
    %94 = arith.mulf %83, %93 : vector<16x128xf32>
    %95 = arith.addf %92, %94 : vector<16x128xf32>
    %96 = math.tanh %95 : vector<16x128xf32>
    %cst_29 = arith.constant 1.000000e+00 : f32
    %97 = vector.broadcast %cst_29 : f32 to vector<16x128xf32>
    %98 = arith.subf %97, %91 : vector<16x128xf32>
    %99 = arith.mulf %98, %96 : vector<16x128xf32>
    %100 = arith.mulf %91, %43 : vector<16x128xf32>
    %101 = arith.addf %99, %100 : vector<16x128xf32>
    %102 = tpu.concatenate %101, %70 in 1 : vector<16x128xf32>, vector<16x128xf32> -> vector<16x256xf32>
    %103 = arith.truncf %102 : vector<16x256xf32> to vector<16x256xbf16>
    %cst_30 = arith.constant dense<0.000000e+00> : vector<16x512xf32>
    %104 = tpu.matmul %103, %9, %cst_30 {dimension_numbers = #tpu.dot_dimension_numbers<[1], [0], [0], [1], [0, 0, 1, 1], [], []>} : vector<16x256xbf16>, vector<256x512xbf16>, vector<16x512xf32> -> vector<16x512xf32>
    %105 = vector.broadcast %10 : vector<1x512xf32> to vector<16x512xf32>
    %106 = arith.addf %104, %105 : vector<16x512xf32>
    %107 = vector.extract_strided_slice %106 {offsets = [0, 0], sizes = [16, 128], strides = [1, 1]} : vector<16x512xf32> to vector<16x128xf32>
    %108 = arith.negf %107 : vector<16x128xf32>
    %109 = math.exp %108 : vector<16x128xf32>
    %cst_31 = arith.constant 1.000000e+00 : f32
    %110 = vector.broadcast %cst_31 : f32 to vector<16x128xf32>
    %111 = arith.addf %110, %109 : vector<16x128xf32>
    %112 = arith.divf %110, %111 : vector<16x128xf32>
    %113 = vector.extract_strided_slice %106 {offsets = [0, 128], sizes = [16, 128], strides = [1, 1]} : vector<16x512xf32> to vector<16x128xf32>
    %114 = arith.negf %113 : vector<16x128xf32>
    %115 = math.exp %114 : vector<16x128xf32>
    %cst_32 = arith.constant 1.000000e+00 : f32
    %116 = vector.broadcast %cst_32 : f32 to vector<16x128xf32>
    %117 = arith.addf %116, %115 : vector<16x128xf32>
    %118 = arith.divf %116, %117 : vector<16x128xf32>
    %119 = vector.extract_strided_slice %106 {offsets = [0, 256], sizes = [16, 128], strides = [1, 1]} : vector<16x512xf32> to vector<16x128xf32>
    %120 = vector.extract_strided_slice %106 {offsets = [0, 384], sizes = [16, 128], strides = [1, 1]} : vector<16x512xf32> to vector<16x128xf32>
    %121 = arith.mulf %112, %120 : vector<16x128xf32>
    %122 = arith.addf %119, %121 : vector<16x128xf32>
    %123 = math.tanh %122 : vector<16x128xf32>
    %cst_33 = arith.constant 1.000000e+00 : f32
    %124 = vector.broadcast %cst_33 : f32 to vector<16x128xf32>
    %125 = arith.subf %124, %118 : vector<16x128xf32>
    %126 = arith.mulf %125, %123 : vector<16x128xf32>
    %127 = arith.mulf %118, %70 : vector<16x128xf32>
    %128 = arith.addf %126, %127 : vector<16x128xf32>
    %129 = vector.extract_strided_slice %6 {offsets = [32, 0], sizes = [16, 384], strides = [1, 1]} : vector<128x384xf32> to vector<16x384xf32>
    %130 = arith.truncf %101 : vector<16x128xf32> to vector<16x128xbf16>
    %cst_34 = arith.constant dense<0.000000e+00> : vector<16x384xf32>
    %131 = tpu.matmul %130, %7, %cst_34 {dimension_numbers = #tpu.dot_dimension_numbers<[1], [0], [0], [1], [0, 0, 1, 1], [], []>} : vector<16x128xbf16>, vector<128x384xbf16>, vector<16x384xf32> -> vector<16x384xf32>
    %132 = vector.broadcast %8 : vector<1x384xf32> to vector<16x384xf32>
    %133 = arith.addf %131, %132 : vector<16x384xf32>
    %134 = vector.extract_strided_slice %129 {offsets = [0, 0], sizes = [16, 128], strides = [1, 1]} : vector<16x384xf32> to vector<16x128xf32>
    %135 = vector.extract_strided_slice %133 {offsets = [0, 0], sizes = [16, 128], strides = [1, 1]} : vector<16x384xf32> to vector<16x128xf32>
    %136 = arith.addf %134, %135 : vector<16x128xf32>
    %137 = arith.negf %136 : vector<16x128xf32>
    %138 = math.exp %137 : vector<16x128xf32>
    %cst_35 = arith.constant 1.000000e+00 : f32
    %139 = vector.broadcast %cst_35 : f32 to vector<16x128xf32>
    %140 = arith.addf %139, %138 : vector<16x128xf32>
    %141 = arith.divf %139, %140 : vector<16x128xf32>
    %142 = vector.extract_strided_slice %129 {offsets = [0, 128], sizes = [16, 128], strides = [1, 1]} : vector<16x384xf32> to vector<16x128xf32>
    %143 = vector.extract_strided_slice %133 {offsets = [0, 128], sizes = [16, 128], strides = [1, 1]} : vector<16x384xf32> to vector<16x128xf32>
    %144 = arith.addf %142, %143 : vector<16x128xf32>
    %145 = arith.negf %144 : vector<16x128xf32>
    %146 = math.exp %145 : vector<16x128xf32>
    %cst_36 = arith.constant 1.000000e+00 : f32
    %147 = vector.broadcast %cst_36 : f32 to vector<16x128xf32>
    %148 = arith.addf %147, %146 : vector<16x128xf32>
    %149 = arith.divf %147, %148 : vector<16x128xf32>
    %150 = vector.extract_strided_slice %129 {offsets = [0, 256], sizes = [16, 128], strides = [1, 1]} : vector<16x384xf32> to vector<16x128xf32>
    %151 = vector.extract_strided_slice %133 {offsets = [0, 256], sizes = [16, 128], strides = [1, 1]} : vector<16x384xf32> to vector<16x128xf32>
    %152 = arith.mulf %141, %151 : vector<16x128xf32>
    %153 = arith.addf %150, %152 : vector<16x128xf32>
    %154 = math.tanh %153 : vector<16x128xf32>
    %cst_37 = arith.constant 1.000000e+00 : f32
    %155 = vector.broadcast %cst_37 : f32 to vector<16x128xf32>
    %156 = arith.subf %155, %149 : vector<16x128xf32>
    %157 = arith.mulf %156, %154 : vector<16x128xf32>
    %158 = arith.mulf %149, %101 : vector<16x128xf32>
    %159 = arith.addf %157, %158 : vector<16x128xf32>
    %160 = tpu.concatenate %159, %128 in 1 : vector<16x128xf32>, vector<16x128xf32> -> vector<16x256xf32>
    %161 = arith.truncf %160 : vector<16x256xf32> to vector<16x256xbf16>
    %cst_38 = arith.constant dense<0.000000e+00> : vector<16x512xf32>
    %162 = tpu.matmul %161, %9, %cst_38 {dimension_numbers = #tpu.dot_dimension_numbers<[1], [0], [0], [1], [0, 0, 1, 1], [], []>} : vector<16x256xbf16>, vector<256x512xbf16>, vector<16x512xf32> -> vector<16x512xf32>
    %163 = vector.broadcast %10 : vector<1x512xf32> to vector<16x512xf32>
    %164 = arith.addf %162, %163 : vector<16x512xf32>
    %165 = vector.extract_strided_slice %164 {offsets = [0, 0], sizes = [16, 128], strides = [1, 1]} : vector<16x512xf32> to vector<16x128xf32>
    %166 = arith.negf %165 : vector<16x128xf32>
    %167 = math.exp %166 : vector<16x128xf32>
    %cst_39 = arith.constant 1.000000e+00 : f32
    %168 = vector.broadcast %cst_39 : f32 to vector<16x128xf32>
    %169 = arith.addf %168, %167 : vector<16x128xf32>
    %170 = arith.divf %168, %169 : vector<16x128xf32>
    %171 = vector.extract_strided_slice %164 {offsets = [0, 128], sizes = [16, 128], strides = [1, 1]} : vector<16x512xf32> to vector<16x128xf32>
    %172 = arith.negf %171 : vector<16x128xf32>
    %173 = math.exp %172 : vector<16x128xf32>
    %cst_40 = arith.constant 1.000000e+00 : f32
    %174 = vector.broadcast %cst_40 : f32 to vector<16x128xf32>
    %175 = arith.addf %174, %173 : vector<16x128xf32>
    %176 = arith.divf %174, %175 : vector<16x128xf32>
    %177 = vector.extract_strided_slice %164 {offsets = [0, 256], sizes = [16, 128], strides = [1, 1]} : vector<16x512xf32> to vector<16x128xf32>
    %178 = vector.extract_strided_slice %164 {offsets = [0, 384], sizes = [16, 128], strides = [1, 1]} : vector<16x512xf32> to vector<16x128xf32>
    %179 = arith.mulf %170, %178 : vector<16x128xf32>
    %180 = arith.addf %177, %179 : vector<16x128xf32>
    %181 = math.tanh %180 : vector<16x128xf32>
    %cst_41 = arith.constant 1.000000e+00 : f32
    %182 = vector.broadcast %cst_41 : f32 to vector<16x128xf32>
    %183 = arith.subf %182, %176 : vector<16x128xf32>
    %184 = arith.mulf %183, %181 : vector<16x128xf32>
    %185 = arith.mulf %176, %128 : vector<16x128xf32>
    %186 = arith.addf %184, %185 : vector<16x128xf32>
    %187 = vector.extract_strided_slice %6 {offsets = [48, 0], sizes = [16, 384], strides = [1, 1]} : vector<128x384xf32> to vector<16x384xf32>
    %188 = arith.truncf %159 : vector<16x128xf32> to vector<16x128xbf16>
    %cst_42 = arith.constant dense<0.000000e+00> : vector<16x384xf32>
    %189 = tpu.matmul %188, %7, %cst_42 {dimension_numbers = #tpu.dot_dimension_numbers<[1], [0], [0], [1], [0, 0, 1, 1], [], []>} : vector<16x128xbf16>, vector<128x384xbf16>, vector<16x384xf32> -> vector<16x384xf32>
    %190 = vector.broadcast %8 : vector<1x384xf32> to vector<16x384xf32>
    %191 = arith.addf %189, %190 : vector<16x384xf32>
    %192 = vector.extract_strided_slice %187 {offsets = [0, 0], sizes = [16, 128], strides = [1, 1]} : vector<16x384xf32> to vector<16x128xf32>
    %193 = vector.extract_strided_slice %191 {offsets = [0, 0], sizes = [16, 128], strides = [1, 1]} : vector<16x384xf32> to vector<16x128xf32>
    %194 = arith.addf %192, %193 : vector<16x128xf32>
    %195 = arith.negf %194 : vector<16x128xf32>
    %196 = math.exp %195 : vector<16x128xf32>
    %cst_43 = arith.constant 1.000000e+00 : f32
    %197 = vector.broadcast %cst_43 : f32 to vector<16x128xf32>
    %198 = arith.addf %197, %196 : vector<16x128xf32>
    %199 = arith.divf %197, %198 : vector<16x128xf32>
    %200 = vector.extract_strided_slice %187 {offsets = [0, 128], sizes = [16, 128], strides = [1, 1]} : vector<16x384xf32> to vector<16x128xf32>
    %201 = vector.extract_strided_slice %191 {offsets = [0, 128], sizes = [16, 128], strides = [1, 1]} : vector<16x384xf32> to vector<16x128xf32>
    %202 = arith.addf %200, %201 : vector<16x128xf32>
    %203 = arith.negf %202 : vector<16x128xf32>
    %204 = math.exp %203 : vector<16x128xf32>
    %cst_44 = arith.constant 1.000000e+00 : f32
    %205 = vector.broadcast %cst_44 : f32 to vector<16x128xf32>
    %206 = arith.addf %205, %204 : vector<16x128xf32>
    %207 = arith.divf %205, %206 : vector<16x128xf32>
    %208 = vector.extract_strided_slice %187 {offsets = [0, 256], sizes = [16, 128], strides = [1, 1]} : vector<16x384xf32> to vector<16x128xf32>
    %209 = vector.extract_strided_slice %191 {offsets = [0, 256], sizes = [16, 128], strides = [1, 1]} : vector<16x384xf32> to vector<16x128xf32>
    %210 = arith.mulf %199, %209 : vector<16x128xf32>
    %211 = arith.addf %208, %210 : vector<16x128xf32>
    %212 = math.tanh %211 : vector<16x128xf32>
    %cst_45 = arith.constant 1.000000e+00 : f32
    %213 = vector.broadcast %cst_45 : f32 to vector<16x128xf32>
    %214 = arith.subf %213, %207 : vector<16x128xf32>
    %215 = arith.mulf %214, %212 : vector<16x128xf32>
    %216 = arith.mulf %207, %159 : vector<16x128xf32>
    %217 = arith.addf %215, %216 : vector<16x128xf32>
    %218 = tpu.concatenate %217, %186 in 1 : vector<16x128xf32>, vector<16x128xf32> -> vector<16x256xf32>
    %219 = arith.truncf %218 : vector<16x256xf32> to vector<16x256xbf16>
    %cst_46 = arith.constant dense<0.000000e+00> : vector<16x512xf32>
    %220 = tpu.matmul %219, %9, %cst_46 {dimension_numbers = #tpu.dot_dimension_numbers<[1], [0], [0], [1], [0, 0, 1, 1], [], []>} : vector<16x256xbf16>, vector<256x512xbf16>, vector<16x512xf32> -> vector<16x512xf32>
    %221 = vector.broadcast %10 : vector<1x512xf32> to vector<16x512xf32>
    %222 = arith.addf %220, %221 : vector<16x512xf32>
    %223 = vector.extract_strided_slice %222 {offsets = [0, 0], sizes = [16, 128], strides = [1, 1]} : vector<16x512xf32> to vector<16x128xf32>
    %224 = arith.negf %223 : vector<16x128xf32>
    %225 = math.exp %224 : vector<16x128xf32>
    %cst_47 = arith.constant 1.000000e+00 : f32
    %226 = vector.broadcast %cst_47 : f32 to vector<16x128xf32>
    %227 = arith.addf %226, %225 : vector<16x128xf32>
    %228 = arith.divf %226, %227 : vector<16x128xf32>
    %229 = vector.extract_strided_slice %222 {offsets = [0, 128], sizes = [16, 128], strides = [1, 1]} : vector<16x512xf32> to vector<16x128xf32>
    %230 = arith.negf %229 : vector<16x128xf32>
    %231 = math.exp %230 : vector<16x128xf32>
    %cst_48 = arith.constant 1.000000e+00 : f32
    %232 = vector.broadcast %cst_48 : f32 to vector<16x128xf32>
    %233 = arith.addf %232, %231 : vector<16x128xf32>
    %234 = arith.divf %232, %233 : vector<16x128xf32>
    %235 = vector.extract_strided_slice %222 {offsets = [0, 256], sizes = [16, 128], strides = [1, 1]} : vector<16x512xf32> to vector<16x128xf32>
    %236 = vector.extract_strided_slice %222 {offsets = [0, 384], sizes = [16, 128], strides = [1, 1]} : vector<16x512xf32> to vector<16x128xf32>
    %237 = arith.mulf %228, %236 : vector<16x128xf32>
    %238 = arith.addf %235, %237 : vector<16x128xf32>
    %239 = math.tanh %238 : vector<16x128xf32>
    %cst_49 = arith.constant 1.000000e+00 : f32
    %240 = vector.broadcast %cst_49 : f32 to vector<16x128xf32>
    %241 = arith.subf %240, %234 : vector<16x128xf32>
    %242 = arith.mulf %241, %239 : vector<16x128xf32>
    %243 = arith.mulf %234, %186 : vector<16x128xf32>
    %244 = arith.addf %242, %243 : vector<16x128xf32>
    %245 = vector.extract_strided_slice %6 {offsets = [64, 0], sizes = [16, 384], strides = [1, 1]} : vector<128x384xf32> to vector<16x384xf32>
    %246 = arith.truncf %217 : vector<16x128xf32> to vector<16x128xbf16>
    %cst_50 = arith.constant dense<0.000000e+00> : vector<16x384xf32>
    %247 = tpu.matmul %246, %7, %cst_50 {dimension_numbers = #tpu.dot_dimension_numbers<[1], [0], [0], [1], [0, 0, 1, 1], [], []>} : vector<16x128xbf16>, vector<128x384xbf16>, vector<16x384xf32> -> vector<16x384xf32>
    %248 = vector.broadcast %8 : vector<1x384xf32> to vector<16x384xf32>
    %249 = arith.addf %247, %248 : vector<16x384xf32>
    %250 = vector.extract_strided_slice %245 {offsets = [0, 0], sizes = [16, 128], strides = [1, 1]} : vector<16x384xf32> to vector<16x128xf32>
    %251 = vector.extract_strided_slice %249 {offsets = [0, 0], sizes = [16, 128], strides = [1, 1]} : vector<16x384xf32> to vector<16x128xf32>
    %252 = arith.addf %250, %251 : vector<16x128xf32>
    %253 = arith.negf %252 : vector<16x128xf32>
    %254 = math.exp %253 : vector<16x128xf32>
    %cst_51 = arith.constant 1.000000e+00 : f32
    %255 = vector.broadcast %cst_51 : f32 to vector<16x128xf32>
    %256 = arith.addf %255, %254 : vector<16x128xf32>
    %257 = arith.divf %255, %256 : vector<16x128xf32>
    %258 = vector.extract_strided_slice %245 {offsets = [0, 128], sizes = [16, 128], strides = [1, 1]} : vector<16x384xf32> to vector<16x128xf32>
    %259 = vector.extract_strided_slice %249 {offsets = [0, 128], sizes = [16, 128], strides = [1, 1]} : vector<16x384xf32> to vector<16x128xf32>
    %260 = arith.addf %258, %259 : vector<16x128xf32>
    %261 = arith.negf %260 : vector<16x128xf32>
    %262 = math.exp %261 : vector<16x128xf32>
    %cst_52 = arith.constant 1.000000e+00 : f32
    %263 = vector.broadcast %cst_52 : f32 to vector<16x128xf32>
    %264 = arith.addf %263, %262 : vector<16x128xf32>
    %265 = arith.divf %263, %264 : vector<16x128xf32>
    %266 = vector.extract_strided_slice %245 {offsets = [0, 256], sizes = [16, 128], strides = [1, 1]} : vector<16x384xf32> to vector<16x128xf32>
    %267 = vector.extract_strided_slice %249 {offsets = [0, 256], sizes = [16, 128], strides = [1, 1]} : vector<16x384xf32> to vector<16x128xf32>
    %268 = arith.mulf %257, %267 : vector<16x128xf32>
    %269 = arith.addf %266, %268 : vector<16x128xf32>
    %270 = math.tanh %269 : vector<16x128xf32>
    %cst_53 = arith.constant 1.000000e+00 : f32
    %271 = vector.broadcast %cst_53 : f32 to vector<16x128xf32>
    %272 = arith.subf %271, %265 : vector<16x128xf32>
    %273 = arith.mulf %272, %270 : vector<16x128xf32>
    %274 = arith.mulf %265, %217 : vector<16x128xf32>
    %275 = arith.addf %273, %274 : vector<16x128xf32>
    %276 = tpu.concatenate %275, %244 in 1 : vector<16x128xf32>, vector<16x128xf32> -> vector<16x256xf32>
    %277 = arith.truncf %276 : vector<16x256xf32> to vector<16x256xbf16>
    %cst_54 = arith.constant dense<0.000000e+00> : vector<16x512xf32>
    %278 = tpu.matmul %277, %9, %cst_54 {dimension_numbers = #tpu.dot_dimension_numbers<[1], [0], [0], [1], [0, 0, 1, 1], [], []>} : vector<16x256xbf16>, vector<256x512xbf16>, vector<16x512xf32> -> vector<16x512xf32>
    %279 = vector.broadcast %10 : vector<1x512xf32> to vector<16x512xf32>
    %280 = arith.addf %278, %279 : vector<16x512xf32>
    %281 = vector.extract_strided_slice %280 {offsets = [0, 0], sizes = [16, 128], strides = [1, 1]} : vector<16x512xf32> to vector<16x128xf32>
    %282 = arith.negf %281 : vector<16x128xf32>
    %283 = math.exp %282 : vector<16x128xf32>
    %cst_55 = arith.constant 1.000000e+00 : f32
    %284 = vector.broadcast %cst_55 : f32 to vector<16x128xf32>
    %285 = arith.addf %284, %283 : vector<16x128xf32>
    %286 = arith.divf %284, %285 : vector<16x128xf32>
    %287 = vector.extract_strided_slice %280 {offsets = [0, 128], sizes = [16, 128], strides = [1, 1]} : vector<16x512xf32> to vector<16x128xf32>
    %288 = arith.negf %287 : vector<16x128xf32>
    %289 = math.exp %288 : vector<16x128xf32>
    %cst_56 = arith.constant 1.000000e+00 : f32
    %290 = vector.broadcast %cst_56 : f32 to vector<16x128xf32>
    %291 = arith.addf %290, %289 : vector<16x128xf32>
    %292 = arith.divf %290, %291 : vector<16x128xf32>
    %293 = vector.extract_strided_slice %280 {offsets = [0, 256], sizes = [16, 128], strides = [1, 1]} : vector<16x512xf32> to vector<16x128xf32>
    %294 = vector.extract_strided_slice %280 {offsets = [0, 384], sizes = [16, 128], strides = [1, 1]} : vector<16x512xf32> to vector<16x128xf32>
    %295 = arith.mulf %286, %294 : vector<16x128xf32>
    %296 = arith.addf %293, %295 : vector<16x128xf32>
    %297 = math.tanh %296 : vector<16x128xf32>
    %cst_57 = arith.constant 1.000000e+00 : f32
    %298 = vector.broadcast %cst_57 : f32 to vector<16x128xf32>
    %299 = arith.subf %298, %292 : vector<16x128xf32>
    %300 = arith.mulf %299, %297 : vector<16x128xf32>
    %301 = arith.mulf %292, %244 : vector<16x128xf32>
    %302 = arith.addf %300, %301 : vector<16x128xf32>
    %303 = vector.extract_strided_slice %6 {offsets = [80, 0], sizes = [16, 384], strides = [1, 1]} : vector<128x384xf32> to vector<16x384xf32>
    %304 = arith.truncf %275 : vector<16x128xf32> to vector<16x128xbf16>
    %cst_58 = arith.constant dense<0.000000e+00> : vector<16x384xf32>
    %305 = tpu.matmul %304, %7, %cst_58 {dimension_numbers = #tpu.dot_dimension_numbers<[1], [0], [0], [1], [0, 0, 1, 1], [], []>} : vector<16x128xbf16>, vector<128x384xbf16>, vector<16x384xf32> -> vector<16x384xf32>
    %306 = vector.broadcast %8 : vector<1x384xf32> to vector<16x384xf32>
    %307 = arith.addf %305, %306 : vector<16x384xf32>
    %308 = vector.extract_strided_slice %303 {offsets = [0, 0], sizes = [16, 128], strides = [1, 1]} : vector<16x384xf32> to vector<16x128xf32>
    %309 = vector.extract_strided_slice %307 {offsets = [0, 0], sizes = [16, 128], strides = [1, 1]} : vector<16x384xf32> to vector<16x128xf32>
    %310 = arith.addf %308, %309 : vector<16x128xf32>
    %311 = arith.negf %310 : vector<16x128xf32>
    %312 = math.exp %311 : vector<16x128xf32>
    %cst_59 = arith.constant 1.000000e+00 : f32
    %313 = vector.broadcast %cst_59 : f32 to vector<16x128xf32>
    %314 = arith.addf %313, %312 : vector<16x128xf32>
    %315 = arith.divf %313, %314 : vector<16x128xf32>
    %316 = vector.extract_strided_slice %303 {offsets = [0, 128], sizes = [16, 128], strides = [1, 1]} : vector<16x384xf32> to vector<16x128xf32>
    %317 = vector.extract_strided_slice %307 {offsets = [0, 128], sizes = [16, 128], strides = [1, 1]} : vector<16x384xf32> to vector<16x128xf32>
    %318 = arith.addf %316, %317 : vector<16x128xf32>
    %319 = arith.negf %318 : vector<16x128xf32>
    %320 = math.exp %319 : vector<16x128xf32>
    %cst_60 = arith.constant 1.000000e+00 : f32
    %321 = vector.broadcast %cst_60 : f32 to vector<16x128xf32>
    %322 = arith.addf %321, %320 : vector<16x128xf32>
    %323 = arith.divf %321, %322 : vector<16x128xf32>
    %324 = vector.extract_strided_slice %303 {offsets = [0, 256], sizes = [16, 128], strides = [1, 1]} : vector<16x384xf32> to vector<16x128xf32>
    %325 = vector.extract_strided_slice %307 {offsets = [0, 256], sizes = [16, 128], strides = [1, 1]} : vector<16x384xf32> to vector<16x128xf32>
    %326 = arith.mulf %315, %325 : vector<16x128xf32>
    %327 = arith.addf %324, %326 : vector<16x128xf32>
    %328 = math.tanh %327 : vector<16x128xf32>
    %cst_61 = arith.constant 1.000000e+00 : f32
    %329 = vector.broadcast %cst_61 : f32 to vector<16x128xf32>
    %330 = arith.subf %329, %323 : vector<16x128xf32>
    %331 = arith.mulf %330, %328 : vector<16x128xf32>
    %332 = arith.mulf %323, %275 : vector<16x128xf32>
    %333 = arith.addf %331, %332 : vector<16x128xf32>
    %334 = tpu.concatenate %333, %302 in 1 : vector<16x128xf32>, vector<16x128xf32> -> vector<16x256xf32>
    %335 = arith.truncf %334 : vector<16x256xf32> to vector<16x256xbf16>
    %cst_62 = arith.constant dense<0.000000e+00> : vector<16x512xf32>
    %336 = tpu.matmul %335, %9, %cst_62 {dimension_numbers = #tpu.dot_dimension_numbers<[1], [0], [0], [1], [0, 0, 1, 1], [], []>} : vector<16x256xbf16>, vector<256x512xbf16>, vector<16x512xf32> -> vector<16x512xf32>
    %337 = vector.broadcast %10 : vector<1x512xf32> to vector<16x512xf32>
    %338 = arith.addf %336, %337 : vector<16x512xf32>
    %339 = vector.extract_strided_slice %338 {offsets = [0, 0], sizes = [16, 128], strides = [1, 1]} : vector<16x512xf32> to vector<16x128xf32>
    %340 = arith.negf %339 : vector<16x128xf32>
    %341 = math.exp %340 : vector<16x128xf32>
    %cst_63 = arith.constant 1.000000e+00 : f32
    %342 = vector.broadcast %cst_63 : f32 to vector<16x128xf32>
    %343 = arith.addf %342, %341 : vector<16x128xf32>
    %344 = arith.divf %342, %343 : vector<16x128xf32>
    %345 = vector.extract_strided_slice %338 {offsets = [0, 128], sizes = [16, 128], strides = [1, 1]} : vector<16x512xf32> to vector<16x128xf32>
    %346 = arith.negf %345 : vector<16x128xf32>
    %347 = math.exp %346 : vector<16x128xf32>
    %cst_64 = arith.constant 1.000000e+00 : f32
    %348 = vector.broadcast %cst_64 : f32 to vector<16x128xf32>
    %349 = arith.addf %348, %347 : vector<16x128xf32>
    %350 = arith.divf %348, %349 : vector<16x128xf32>
    %351 = vector.extract_strided_slice %338 {offsets = [0, 256], sizes = [16, 128], strides = [1, 1]} : vector<16x512xf32> to vector<16x128xf32>
    %352 = vector.extract_strided_slice %338 {offsets = [0, 384], sizes = [16, 128], strides = [1, 1]} : vector<16x512xf32> to vector<16x128xf32>
    %353 = arith.mulf %344, %352 : vector<16x128xf32>
    %354 = arith.addf %351, %353 : vector<16x128xf32>
    %355 = math.tanh %354 : vector<16x128xf32>
    %cst_65 = arith.constant 1.000000e+00 : f32
    %356 = vector.broadcast %cst_65 : f32 to vector<16x128xf32>
    %357 = arith.subf %356, %350 : vector<16x128xf32>
    %358 = arith.mulf %357, %355 : vector<16x128xf32>
    %359 = arith.mulf %350, %302 : vector<16x128xf32>
    %360 = arith.addf %358, %359 : vector<16x128xf32>
    %361 = vector.extract_strided_slice %6 {offsets = [96, 0], sizes = [16, 384], strides = [1, 1]} : vector<128x384xf32> to vector<16x384xf32>
    %362 = arith.truncf %333 : vector<16x128xf32> to vector<16x128xbf16>
    %cst_66 = arith.constant dense<0.000000e+00> : vector<16x384xf32>
    %363 = tpu.matmul %362, %7, %cst_66 {dimension_numbers = #tpu.dot_dimension_numbers<[1], [0], [0], [1], [0, 0, 1, 1], [], []>} : vector<16x128xbf16>, vector<128x384xbf16>, vector<16x384xf32> -> vector<16x384xf32>
    %364 = vector.broadcast %8 : vector<1x384xf32> to vector<16x384xf32>
    %365 = arith.addf %363, %364 : vector<16x384xf32>
    %366 = vector.extract_strided_slice %361 {offsets = [0, 0], sizes = [16, 128], strides = [1, 1]} : vector<16x384xf32> to vector<16x128xf32>
    %367 = vector.extract_strided_slice %365 {offsets = [0, 0], sizes = [16, 128], strides = [1, 1]} : vector<16x384xf32> to vector<16x128xf32>
    %368 = arith.addf %366, %367 : vector<16x128xf32>
    %369 = arith.negf %368 : vector<16x128xf32>
    %370 = math.exp %369 : vector<16x128xf32>
    %cst_67 = arith.constant 1.000000e+00 : f32
    %371 = vector.broadcast %cst_67 : f32 to vector<16x128xf32>
    %372 = arith.addf %371, %370 : vector<16x128xf32>
    %373 = arith.divf %371, %372 : vector<16x128xf32>
    %374 = vector.extract_strided_slice %361 {offsets = [0, 128], sizes = [16, 128], strides = [1, 1]} : vector<16x384xf32> to vector<16x128xf32>
    %375 = vector.extract_strided_slice %365 {offsets = [0, 128], sizes = [16, 128], strides = [1, 1]} : vector<16x384xf32> to vector<16x128xf32>
    %376 = arith.addf %374, %375 : vector<16x128xf32>
    %377 = arith.negf %376 : vector<16x128xf32>
    %378 = math.exp %377 : vector<16x128xf32>
    %cst_68 = arith.constant 1.000000e+00 : f32
    %379 = vector.broadcast %cst_68 : f32 to vector<16x128xf32>
    %380 = arith.addf %379, %378 : vector<16x128xf32>
    %381 = arith.divf %379, %380 : vector<16x128xf32>
    %382 = vector.extract_strided_slice %361 {offsets = [0, 256], sizes = [16, 128], strides = [1, 1]} : vector<16x384xf32> to vector<16x128xf32>
    %383 = vector.extract_strided_slice %365 {offsets = [0, 256], sizes = [16, 128], strides = [1, 1]} : vector<16x384xf32> to vector<16x128xf32>
    %384 = arith.mulf %373, %383 : vector<16x128xf32>
    %385 = arith.addf %382, %384 : vector<16x128xf32>
    %386 = math.tanh %385 : vector<16x128xf32>
    %cst_69 = arith.constant 1.000000e+00 : f32
    %387 = vector.broadcast %cst_69 : f32 to vector<16x128xf32>
    %388 = arith.subf %387, %381 : vector<16x128xf32>
    %389 = arith.mulf %388, %386 : vector<16x128xf32>
    %390 = arith.mulf %381, %333 : vector<16x128xf32>
    %391 = arith.addf %389, %390 : vector<16x128xf32>
    %392 = tpu.concatenate %391, %360 in 1 : vector<16x128xf32>, vector<16x128xf32> -> vector<16x256xf32>
    %393 = arith.truncf %392 : vector<16x256xf32> to vector<16x256xbf16>
    %cst_70 = arith.constant dense<0.000000e+00> : vector<16x512xf32>
    %394 = tpu.matmul %393, %9, %cst_70 {dimension_numbers = #tpu.dot_dimension_numbers<[1], [0], [0], [1], [0, 0, 1, 1], [], []>} : vector<16x256xbf16>, vector<256x512xbf16>, vector<16x512xf32> -> vector<16x512xf32>
    %395 = vector.broadcast %10 : vector<1x512xf32> to vector<16x512xf32>
    %396 = arith.addf %394, %395 : vector<16x512xf32>
    %397 = vector.extract_strided_slice %396 {offsets = [0, 0], sizes = [16, 128], strides = [1, 1]} : vector<16x512xf32> to vector<16x128xf32>
    %398 = arith.negf %397 : vector<16x128xf32>
    %399 = math.exp %398 : vector<16x128xf32>
    %cst_71 = arith.constant 1.000000e+00 : f32
    %400 = vector.broadcast %cst_71 : f32 to vector<16x128xf32>
    %401 = arith.addf %400, %399 : vector<16x128xf32>
    %402 = arith.divf %400, %401 : vector<16x128xf32>
    %403 = vector.extract_strided_slice %396 {offsets = [0, 128], sizes = [16, 128], strides = [1, 1]} : vector<16x512xf32> to vector<16x128xf32>
    %404 = arith.negf %403 : vector<16x128xf32>
    %405 = math.exp %404 : vector<16x128xf32>
    %cst_72 = arith.constant 1.000000e+00 : f32
    %406 = vector.broadcast %cst_72 : f32 to vector<16x128xf32>
    %407 = arith.addf %406, %405 : vector<16x128xf32>
    %408 = arith.divf %406, %407 : vector<16x128xf32>
    %409 = vector.extract_strided_slice %396 {offsets = [0, 256], sizes = [16, 128], strides = [1, 1]} : vector<16x512xf32> to vector<16x128xf32>
    %410 = vector.extract_strided_slice %396 {offsets = [0, 384], sizes = [16, 128], strides = [1, 1]} : vector<16x512xf32> to vector<16x128xf32>
    %411 = arith.mulf %402, %410 : vector<16x128xf32>
    %412 = arith.addf %409, %411 : vector<16x128xf32>
    %413 = math.tanh %412 : vector<16x128xf32>
    %cst_73 = arith.constant 1.000000e+00 : f32
    %414 = vector.broadcast %cst_73 : f32 to vector<16x128xf32>
    %415 = arith.subf %414, %408 : vector<16x128xf32>
    %416 = arith.mulf %415, %413 : vector<16x128xf32>
    %417 = arith.mulf %408, %360 : vector<16x128xf32>
    %418 = arith.addf %416, %417 : vector<16x128xf32>
    %419 = vector.extract_strided_slice %6 {offsets = [112, 0], sizes = [16, 384], strides = [1, 1]} : vector<128x384xf32> to vector<16x384xf32>
    %420 = arith.truncf %391 : vector<16x128xf32> to vector<16x128xbf16>
    %cst_74 = arith.constant dense<0.000000e+00> : vector<16x384xf32>
    %421 = tpu.matmul %420, %7, %cst_74 {dimension_numbers = #tpu.dot_dimension_numbers<[1], [0], [0], [1], [0, 0, 1, 1], [], []>} : vector<16x128xbf16>, vector<128x384xbf16>, vector<16x384xf32> -> vector<16x384xf32>
    %422 = vector.broadcast %8 : vector<1x384xf32> to vector<16x384xf32>
    %423 = arith.addf %421, %422 : vector<16x384xf32>
    %424 = vector.extract_strided_slice %419 {offsets = [0, 0], sizes = [16, 128], strides = [1, 1]} : vector<16x384xf32> to vector<16x128xf32>
    %425 = vector.extract_strided_slice %423 {offsets = [0, 0], sizes = [16, 128], strides = [1, 1]} : vector<16x384xf32> to vector<16x128xf32>
    %426 = arith.addf %424, %425 : vector<16x128xf32>
    %427 = arith.negf %426 : vector<16x128xf32>
    %428 = math.exp %427 : vector<16x128xf32>
    %cst_75 = arith.constant 1.000000e+00 : f32
    %429 = vector.broadcast %cst_75 : f32 to vector<16x128xf32>
    %430 = arith.addf %429, %428 : vector<16x128xf32>
    %431 = arith.divf %429, %430 : vector<16x128xf32>
    %432 = vector.extract_strided_slice %419 {offsets = [0, 128], sizes = [16, 128], strides = [1, 1]} : vector<16x384xf32> to vector<16x128xf32>
    %433 = vector.extract_strided_slice %423 {offsets = [0, 128], sizes = [16, 128], strides = [1, 1]} : vector<16x384xf32> to vector<16x128xf32>
    %434 = arith.addf %432, %433 : vector<16x128xf32>
    %435 = arith.negf %434 : vector<16x128xf32>
    %436 = math.exp %435 : vector<16x128xf32>
    %cst_76 = arith.constant 1.000000e+00 : f32
    %437 = vector.broadcast %cst_76 : f32 to vector<16x128xf32>
    %438 = arith.addf %437, %436 : vector<16x128xf32>
    %439 = arith.divf %437, %438 : vector<16x128xf32>
    %440 = vector.extract_strided_slice %419 {offsets = [0, 256], sizes = [16, 128], strides = [1, 1]} : vector<16x384xf32> to vector<16x128xf32>
    %441 = vector.extract_strided_slice %423 {offsets = [0, 256], sizes = [16, 128], strides = [1, 1]} : vector<16x384xf32> to vector<16x128xf32>
    %442 = arith.mulf %431, %441 : vector<16x128xf32>
    %443 = arith.addf %440, %442 : vector<16x128xf32>
    %444 = math.tanh %443 : vector<16x128xf32>
    %cst_77 = arith.constant 1.000000e+00 : f32
    %445 = vector.broadcast %cst_77 : f32 to vector<16x128xf32>
    %446 = arith.subf %445, %439 : vector<16x128xf32>
    %447 = arith.mulf %446, %444 : vector<16x128xf32>
    %448 = arith.mulf %439, %391 : vector<16x128xf32>
    %449 = arith.addf %447, %448 : vector<16x128xf32>
    %450 = tpu.concatenate %449, %418 in 1 : vector<16x128xf32>, vector<16x128xf32> -> vector<16x256xf32>
    %451 = arith.truncf %450 : vector<16x256xf32> to vector<16x256xbf16>
    %cst_78 = arith.constant dense<0.000000e+00> : vector<16x512xf32>
    %452 = tpu.matmul %451, %9, %cst_78 {dimension_numbers = #tpu.dot_dimension_numbers<[1], [0], [0], [1], [0, 0, 1, 1], [], []>} : vector<16x256xbf16>, vector<256x512xbf16>, vector<16x512xf32> -> vector<16x512xf32>
    %453 = vector.broadcast %10 : vector<1x512xf32> to vector<16x512xf32>
    %454 = arith.addf %452, %453 : vector<16x512xf32>
    %455 = vector.extract_strided_slice %454 {offsets = [0, 0], sizes = [16, 128], strides = [1, 1]} : vector<16x512xf32> to vector<16x128xf32>
    %456 = arith.negf %455 : vector<16x128xf32>
    %457 = math.exp %456 : vector<16x128xf32>
    %cst_79 = arith.constant 1.000000e+00 : f32
    %458 = vector.broadcast %cst_79 : f32 to vector<16x128xf32>
    %459 = arith.addf %458, %457 : vector<16x128xf32>
    %460 = arith.divf %458, %459 : vector<16x128xf32>
    %461 = vector.extract_strided_slice %454 {offsets = [0, 128], sizes = [16, 128], strides = [1, 1]} : vector<16x512xf32> to vector<16x128xf32>
    %462 = arith.negf %461 : vector<16x128xf32>
    %463 = math.exp %462 : vector<16x128xf32>
    %cst_80 = arith.constant 1.000000e+00 : f32
    %464 = vector.broadcast %cst_80 : f32 to vector<16x128xf32>
    %465 = arith.addf %464, %463 : vector<16x128xf32>
    %466 = arith.divf %464, %465 : vector<16x128xf32>
    %467 = vector.extract_strided_slice %454 {offsets = [0, 256], sizes = [16, 128], strides = [1, 1]} : vector<16x512xf32> to vector<16x128xf32>
    %468 = vector.extract_strided_slice %454 {offsets = [0, 384], sizes = [16, 128], strides = [1, 1]} : vector<16x512xf32> to vector<16x128xf32>
    %469 = arith.mulf %460, %468 : vector<16x128xf32>
    %470 = arith.addf %467, %469 : vector<16x128xf32>
    %471 = math.tanh %470 : vector<16x128xf32>
    %cst_81 = arith.constant 1.000000e+00 : f32
    %472 = vector.broadcast %cst_81 : f32 to vector<16x128xf32>
    %473 = arith.subf %472, %466 : vector<16x128xf32>
    %474 = arith.mulf %473, %471 : vector<16x128xf32>
    %475 = arith.mulf %466, %418 : vector<16x128xf32>
    %476 = arith.addf %474, %475 : vector<16x128xf32>
    %c0_82 = arith.constant 0 : index
    %c0_83 = arith.constant 0 : index
    %477 = vector.load %arg11[%c0_82, %c0_83] : memref<16x128xf32, #tpu.memory_space<vmem>>, vector<16x128xf32>
    tpu.vector_store %arg11[%c0_82, %c0_83], %449 {strides = array<i32>} : memref<16x128xf32, #tpu.memory_space<vmem>>, vector<16x128xf32>,
    %c0_84 = arith.constant 0 : index
    %c0_85 = arith.constant 0 : index
    %478 = vector.load %arg12[%c0_84, %c0_85] : memref<16x128xf32, #tpu.memory_space<vmem>>, vector<16x128xf32>
    tpu.vector_store %arg12[%c0_84, %c0_85], %476 {strides = array<i32>} : memref<16x128xf32, #tpu.memory_space<vmem>>, vector<16x128xf32>,
    %479 = tpu.concatenate %70, %128, %186, %244, %302, %360, %418, %476 in 0 : vector<16x128xf32>, vector<16x128xf32>, vector<16x128xf32>, vector<16x128xf32>, vector<16x128xf32>, vector<16x128xf32>, vector<16x128xf32>, vector<16x128xf32> -> vector<128x128xf32>
    %480 = arith.truncf %479 : vector<128x128xf32> to vector<128x128xbf16>
    %c0_86 = arith.constant 0 : index
    %c0_87 = arith.constant 0 : index
    %481 = vector.load %arg7[%c0_86, %c0_87] : memref<128x128xbf16, #tpu.memory_space<vmem>>, vector<128x128xbf16>
    %cst_88 = arith.constant dense<0.000000e+00> : vector<128x128xf32>
    %482 = tpu.matmul %480, %481, %cst_88 {dimension_numbers = #tpu.dot_dimension_numbers<[1], [0], [0], [1], [0, 0, 1, 1], [], []>} : vector<128x128xbf16>, vector<128x128xbf16>, vector<128x128xf32> -> vector<128x128xf32>
    %c0_89 = arith.constant 0 : index
    %c0_90 = arith.constant 0 : index
    %483 = vector.load %arg8[%c0_89, %c0_90] : memref<1x128xf32, #tpu.memory_space<vmem>>, vector<1x128xf32>
    %484 = vector.broadcast %483 : vector<1x128xf32> to vector<128x128xf32>
    %485 = arith.addf %482, %484 : vector<128x128xf32>
    %486 = arith.addf %485, %1 : vector<128x128xf32>
    %487 = vector.shape_cast %486 : vector<128x128xf32> to vector<8x16x128xf32>
    %c0_91 = arith.constant 0 : index
    %c0_92 = arith.constant 0 : index
    %c0_93 = arith.constant 0 : index
    %488 = vector.load %arg13[%c0_91, %c0_92, %c0_93] : memref<8x16x128xf32, #tpu.memory_space<vmem>>, vector<8x16x128xf32>
    tpu.vector_store %arg13[%c0_91, %c0_92, %c0_93], %487 {strides = array<i32>} : memref<8x16x128xf32, #tpu.memory_space<vmem>>, vector<8x16x128xf32>,
    return
  }
}

</mosaic_0001>

<bundles_post_ra>
// kernel: tpu_custom_call.1
= control target key start
LH: loop header
LB: loop body
LE: loop exit
PB: predicated region body
PF: predicated region fallthrough
CT: control target
= control target key end

     0   :  { %19 = vsyncpa [#allocation3], 0  ;;  %s7043_s0 = inlined_call_operand.hbm [shape: f32[8,16,128], index: 0, kind: input, shape index: {}]   ;;  %s7044_s1 = inlined_call_operand.hbm [shape: f32[128,384], index: 1, kind: input, shape index: {}]   ;;  %s7045_s2 = inlined_call_operand.hbm [shape: f32[1,384], index: 2, kind: input, shape index: {}]   ;;  %s7046_s3 = inlined_call_operand.hbm [shape: bf16[128,384], index: 3, kind: input, shape index: {}]   ;;  %s7047_s4 = inlined_call_operand.hbm [shape: f32[1,384], index: 4, kind: input, shape index: {}]   ;;  %s7048_s5 = inlined_call_operand.hbm [shape: bf16[256,512], index: 5, kind: input, shape index: {}]   ;;  %s7049_s6 = inlined_call_operand.hbm [shape: f32[1,512], index: 6, kind: input, shape index: {}]   ;;  %s7050_s7 = inlined_call_operand.hbm [shape: bf16[128,128], index: 7, kind: input, shape index: {}]   ;;  %s7051_s8 = inlined_call_operand.vmem [shape: f32[1,128], index: 8, kind: input, shape index: {}]   ;;  %s7052_s9 = inlined_call_operand.vmem [shape: f32[16,128], index: 9, kind: input, shape index: {}]   ;;  %s7053_s10 = inlined_call_operand.vmem [shape: f32[16,128], index: 10, kind: input, shape index: {}]   ;;  %s7054_s11 = inlined_call_operand.hbm [shape: f32[16,128], index: 11, kind: output, shape index: {0}]   ;;  %s7055_s12 = inlined_call_operand.hbm [shape: f32[16,128], index: 12, kind: output, shape index: {1}]   ;;  %s7056_s13 = inlined_call_operand.hbm [shape: f32[8,16,128], index: 13, kind: output, shape index: {2}]  }
   0x1   :  { %20 = vsyncpa [#allocation6], 0 }
   0x2   :  { %21 = vsyncpa [#allocation9], 0 }
   0x3   :  { %22 = vsyncpa [#allocation12], 0 }
   0x4   :  { %23 = vsyncpa [#allocation15], 0 }
   0x5   :  { %24 = vsyncpa [#allocation4], 0 }
   0x6   :  { %25 = vsyncpa [#allocation18], 0  ;;  %s4920_s25 = smov [#allocation5]   ;;  %s4664_s29 = scalar_lea.hbm %s7044_s1, 6144 }
   0x7   :  { %s43_s26 = sshll.u32 %s4920_s25, 4  ;;  %p4665_p0 = scmp.ne.s32.totalorder %s7044_s1, %s4664_s29  ;;  %s44_s26 = int_to_ptr.vmem [resolvable:$true] %s43_s26 }
   0x8   :  { %p4668_p1 = scmp.lt.u32.totalorder %s4664_s29, %s7044_s1 }
   0xa   :  { %p4670_p2 = pnand %p4668_p1, %p4665_p0 }
   0xc   :  { %4673 = shalt.err (!%p4670_p2)
}
   0xd   :  { %s4674_s17 = scalar_lea.vmem %s44_s26, 6144  ;;  %p4679_p4 = scmp.lt.s32.totalorder %s44_s26, %s44_s26 }
   0xe   :  { %p4675_p3 = scmp.ne.s32.totalorder %s44_s26, %s4674_s17  ;;  %p4680_p5 = scmp.lt.s32.totalorder %s4674_s17, %s4674_s17 }
  0x10   :  { %p4681_p6 = por %p4680_p5, %p4679_p4 }
  0x12   :  { %p4682_p7 = pnand %p4681_p6, %p4675_p3 }
  0x14   :  { %4685 = shalt.err (!%p4682_p7)
}
  0x15   :  { %s4921_s18 = smov 384   ;;  %s4922_s19 = smov 24  }
  0x16   :  { %49 = dma.hbm_to_vmem [thread:$0]  %s7044_s1, 6144, %s44_s26, [#allocation6], %s4921_s18, %s4921_s18, %s4922_s19  }
  0x17   :  { %s4923_s22 = smov [#allocation8]   ;;  %s4686_s27 = scalar_lea.hbm %s7046_s3, 3072 }
  0x18   :  { %s65_s23 = sshll.u32 %s4923_s22, 4  ;;  %p4687_p8 = scmp.ne.s32.totalorder %s7046_s3, %s4686_s27  ;;  %s66_s23 = int_to_ptr.vmem [resolvable:$true] %s65_s23 }
  0x19   :  { %p4690_p9 = scmp.lt.u32.totalorder %s4686_s27, %s7046_s3 }
  0x1b   :  { %p4692_p10 = pnand %p4690_p9, %p4687_p8 }
  0x1d   :  { %4695 = shalt.err (!%p4692_p10)
}
  0x1e   :  { %s4696_s15 = scalar_lea.vmem %s66_s23, 3072  ;;  %p4701_p12 = scmp.lt.s32.totalorder %s66_s23, %s66_s23 }
  0x1f   :  { %p4697_p11 = scmp.ne.s32.totalorder %s66_s23, %s4696_s15  ;;  %p4702_p13 = scmp.lt.s32.totalorder %s4696_s15, %s4696_s15 }
  0x21   :  { %p4703_p0 = por %p4702_p13, %p4701_p12 }
  0x23   :  { %p4704_p1 = pnand %p4703_p0, %p4697_p11 }
  0x25   :  { %4707 = shalt.err (!%p4704_p1)
}
  0x26   :  { %s4924_s1 = smov 192   ;;  %s4925_s26 = smov 12  }
  0x27   :  { %71 = dma.hbm_to_vmem [thread:$0]  %s7046_s3, 3072, %s66_s23, [#allocation9], %s4924_s1, %s4924_s1, %s4925_s26  }
  0x28   :  { %s4926_s18 = smov [#allocation11]   ;;  %s4708_s22 = scalar_lea.hbm %s7048_s5, 8192 }
  0x29   :  { %s87_s19 = sshll.u32 %s4926_s18, 4  ;;  %p4709_p2 = scmp.ne.s32.totalorder %s7048_s5, %s4708_s22  ;;  %s88_s19 = int_to_ptr.vmem [resolvable:$true] %s87_s19 }
  0x2a   :  { %p4712_p3 = scmp.lt.u32.totalorder %s4708_s22, %s7048_s5 }
  0x2c   :  { %p4714_p4 = pnand %p4712_p3, %p4709_p2 }
  0x2e   :  { %4717 = shalt.err (!%p4714_p4)
}
  0x2f   :  { %s4718_s29 = scalar_lea.vmem %s88_s19, 8192  ;;  %p4723_p6 = scmp.lt.s32.totalorder %s88_s19, %s88_s19 }
  0x30   :  { %p4719_p5 = scmp.ne.s32.totalorder %s88_s19, %s4718_s29  ;;  %p4724_p7 = scmp.lt.s32.totalorder %s4718_s29, %s4718_s29 }
  0x32   :  { %p4725_p8 = por %p4724_p7, %p4723_p6 }
  0x34   :  { %p4726_p9 = pnand %p4725_p8, %p4719_p5 }
  0x36   :  { %4729 = shalt.err (!%p4726_p9)
}
  0x37   :  { %s4927_s3 = smov 256   ;;  %s4928_s23 = smov 16  }
  0x38   :  { %93 = dma.hbm_to_vmem [thread:$0]  %s7048_s5, 8192, %s88_s19, [#allocation12], %s4927_s3, %s4927_s3, %s4928_s23  }
  0x39   :  { %s4929_s15 = smov [#allocation2]   ;;  %s4730_s17 = scalar_lea.hbm %s7043_s0, 2048 }
  0x3a   :  { %s31_s1 = sshll.u32 %s4929_s15, 4  ;;  %p4731_p10 = scmp.ne.s32.totalorder %s7043_s0, %s4730_s17  ;;  %s32_s1 = int_to_ptr.vmem [resolvable:$true] %s31_s1 }
  0x3b   :  { %p4734_p11 = scmp.lt.u32.totalorder %s4730_s17, %s7043_s0 }
  0x3d   :  { %p4736_p12 = pnand %p4734_p11, %p4731_p10 }
  0x3f   :  { %4739 = shalt.err (!%p4736_p12)
}
  0x40   :  { %s4740_s24 = scalar_lea.vmem %s32_s1, 2048  ;;  %p4745_p0 = scmp.lt.s32.totalorder %s32_s1, %s32_s1 }
  0x41   :  { %p4741_p13 = scmp.ne.s32.totalorder %s32_s1, %s4740_s24  ;;  %p4746_p1 = scmp.lt.s32.totalorder %s4740_s24, %s4740_s24 }
  0x43   :  { %p4747_p2 = por %p4746_p1, %p4745_p0 }
  0x45   :  { %p4748_p3 = pnand %p4747_p2, %p4741_p13 }
  0x47   :  { %4751 = shalt.err (!%p4748_p3)
}
  0x48   :  { %s4930_s5 = smov 128   ;;  %s4931_s19 = smov 8  }
  0x49   :  { %37 = dma.hbm_to_vmem [thread:$0]  %s7043_s0, 2048, %s32_s1, [#allocation3], %s4930_s5, %s4930_s5, %s4931_s19  }
  0x4a   :  { %s4932_s28 = smov [#allocation7]   ;;  %s4933_s3 = smov [#allocation10]  }
  0x4b   :  { %s56_s29 = sshll.u32 %s4932_s28, 4  ;;  %s78_s23 = sshll.u32 %s4933_s3, 4  ;;  %s57_s29 = int_to_ptr.vmem [resolvable:$true] %s56_s29  ;;  %s79_s23 = int_to_ptr.vmem [resolvable:$true] %s78_s23 }
  0x4c   :  { %s4752_s15 = scalar_lea.hbm %s7045_s2, 48 }
  0x4d   :  { %p4753_p4 = scmp.ne.s32.totalorder %s7045_s2, %s4752_s15  ;;  %p4756_p5 = scmp.lt.u32.totalorder %s4752_s15, %s7045_s2 }
  0x4f   :  { %p4758_p6 = pnand %p4756_p5, %p4753_p4 }
  0x51   :  { %4761 = shalt.err (!%p4758_p6)
}
  0x52   :  { %s4762_s0 = scalar_lea.vmem %s57_s29, 48  ;;  %s4766_s1 = scalar_lea.vmem %s57_s29, 64 }
  0x53   :  { %p4763_p7 = scmp.ne.s32.totalorder %s57_s29, %s4762_s0  ;;  %p4767_p8 = scmp.lt.s32.totalorder %s57_s29, %s57_s29 }
  0x54   :  { %p4768_p9 = scmp.lt.s32.totalorder %s4766_s1, %s4762_s0 }
  0x56   :  { %p4769_p10 = por %p4768_p9, %p4767_p8 }
  0x58   :  { %p4770_p11 = pnand %p4769_p10, %p4763_p7 }
  0x5a   :  { %4773 = shalt.err (!%p4770_p11)
}
  0x5b   :  { %59 = dma.hbm_to_vmem [thread:$0]  %s7045_s2, 48, %s57_s29, [#allocation6]  }
  0x5c   :  { %s4774_s25 = scalar_lea.hbm %s7047_s4, 48 }
  0x5d   :  { %p4775_p12 = scmp.ne.s32.totalorder %s7047_s4, %s4774_s25  ;;  %p4778_p13 = scmp.lt.u32.totalorder %s4774_s25, %s7047_s4 }
  0x5f   :  { %p4780_p0 = pnand %p4778_p13, %p4775_p12 }
  0x61   :  { %4783 = shalt.err (!%p4780_p0)
}
  0x62   :  { %s4784_s14 = scalar_lea.vmem %s79_s23, 48  ;;  %s4788_s15 = scalar_lea.vmem %s79_s23, 64 }
  0x63   :  { %p4785_p1 = scmp.ne.s32.totalorder %s79_s23, %s4784_s14  ;;  %p4789_p2 = scmp.lt.s32.totalorder %s79_s23, %s79_s23 }
  0x64   :  { %p4790_p3 = scmp.lt.s32.totalorder %s4788_s15, %s4784_s14 }
  0x66   :  { %p4791_p4 = por %p4790_p3, %p4789_p2 }
  0x68   :  { %p4792_p5 = pnand %p4791_p4, %p4785_p1 }
  0x6a   :  { %4795 = shalt.err (!%p4792_p5)
}
  0x6b   :  { %81 = dma.hbm_to_vmem [thread:$0]  %s7047_s4, 48, %s79_s23, [#allocation9]  }
  0x6c   :  { %s4934_s26 = smov [#allocation13]   ;;  %s4935_s17 = smov [#allocation14]  }
  0x6d   :  { %s100_s16 = sshll.u32 %s4934_s26, 4  ;;  %s109_s18 = sshll.u32 %s4935_s17, 4  ;;  %s101_s16 = int_to_ptr.vmem [resolvable:$true] %s100_s16  ;;  %s5089_s18 = int_to_ptr.vmem [resolvable:$true] %s109_s18 }
  0x6e   :  { %s4796_s20 = scalar_lea.hbm %s7049_s6, 64 }
  0x6f   :  { %p4797_p6 = scmp.ne.s32.totalorder %s7049_s6, %s4796_s20  ;;  %p4800_p7 = scmp.lt.u32.totalorder %s4796_s20, %s7049_s6 }
  0x71   :  { %p4802_p8 = pnand %p4800_p7, %p4797_p6 }
  0x73   :  { %4805 = shalt.err (!%p4802_p8)
}
  0x74   :  { %s4806_s4 = scalar_lea.vmem %s101_s16, 64  ;;  %p4811_p10 = scmp.lt.s32.totalorder %s101_s16, %s101_s16 }
  0x75   :  { %p4807_p9 = scmp.ne.s32.totalorder %s101_s16, %s4806_s4  ;;  %p4812_p11 = scmp.lt.s32.totalorder %s4806_s4, %s4806_s4 }
  0x77   :  { %p4813_p12 = por %p4812_p11, %p4811_p10 }
  0x79   :  { %p4814_p13 = pnand %p4813_p12, %p4807_p9 }
  0x7b   :  { %4817 = shalt.err (!%p4814_p13)
}
  0x7c   :  { %103 = dma.hbm_to_vmem [thread:$0]  %s7049_s6, 64, %s101_s16, [#allocation12]  }
  0x7d   :  { %s4818_s30 = scalar_lea.hbm %s7050_s7, 1024 }
  0x7e   :  { %p4819_p0 = scmp.ne.s32.totalorder %s7050_s7, %s4818_s30  ;;  %p4822_p1 = scmp.lt.u32.totalorder %s4818_s30, %s7050_s7 }
  0x80   :  { %p4824_p2 = pnand %p4822_p1, %p4819_p0 }
  0x82   :  { %4827 = shalt.err (!%p4824_p2)
}
  0x83   :  { %s4828_s26 = scalar_lea.vmem %s5089_s18, 1024  ;;  %p4833_p4 = scmp.lt.s32.totalorder %s5089_s18, %s5089_s18 }
  0x84   :  { %p4829_p3 = scmp.ne.s32.totalorder %s5089_s18, %s4828_s26  ;;  %p4834_p5 = scmp.lt.s32.totalorder %s4828_s26, %s4828_s26 }
  0x86   :  { %p4835_p6 = por %p4834_p5, %p4833_p4 }
  0x88   :  { %p4836_p7 = pnand %p4835_p6, %p4829_p3 }
  0x8a   :  { %4839 = shalt.err (!%p4836_p7)
}
  0x8b   :  { %s4936_s6 = smov 64   ;;  %s4937_s16 = smov 4  }
  0x8c   :  { %115 = dma.hbm_to_vmem [thread:$0]  %s7050_s7, 1024, %s5089_s18, [#allocation15], %s4936_s6, %s4936_s6, %s4937_s16  }
  0x8d   :  { %4906 = dma.done.wait [#allocation3], 2048  }
  0x8e   :  { %4907 = vsyncadd [#allocation3], 4294965248 }
  0x8f   :  { %4908 = dma.done.wait [#allocation6], 6192  }
  0x90   :  { %4909 = vsyncadd [#allocation6], 4294961104 }
  0x91   :  { %4910 = dma.done.wait [#allocation9], 3120  }
  0x92   :  { %4911 = vsyncadd [#allocation9], 4294964176 }
  0x93   :  { %4912 = dma.done.wait [#allocation12], 8256  }
  0x94   :  { %4913 = vsyncadd [#allocation12], 4294959040 }
  0x95   :  { %4914 = dma.done.wait [#allocation15], 1024  }
  0x96   :  { %4915 = vsyncadd [#allocation15], 4294966272  ;;  %v7059_v0 = vmov 0.0   ;;  %v164_v1 = vld [vmem:[#allocation5 + $0x8] sm:$0xff]  ;;  %v167_v2 = vld [vmem:[#allocation5 + $0x20] sm:$0xff]  ;;  %vm4940_vm0 = vmmov 0  }
  0x97   :  { %292 = vmatprep.mubr.f32.mxu0 %v7059_v0  ;;  %v165_v3 = vld [vmem:[#allocation5 + $0x10] sm:$0xff]  ;;  %v3924_v4 = vpack.c.bf16 %v167_v2, %v164_v1  ;;  %v168_v5 = vld [vmem:[#allocation5 + $0x28] sm:$0xff]  ;;  %v163_v6 = vld [vmem:[#allocation5] sm:$0xff]  ;;  %s4942_s23 = smov [#allocation16]  }
  0x98   :  { %v166_v7 = vld [vmem:[#allocation5 + $0x18] sm:$0xff]  ;;  %v3956_v8 = vpack.c.bf16 %v168_v5, %v165_v3  ;;  %v173_v11 = vld [vmem:[#allocation5 + $0x50] sm:$0xff]  ;;  %v171_v12 = vld [vmem:[#allocation5 + $0x40] sm:$0xff]  ;;  %s3348_s27 = sshll.u32 %s4942_s23, 4  ;;  %s3349_s27 = int_to_ptr.vmem [resolvable:$true] %s3348_s27 }
  0x99   :  { %v3926_v9 = vpack.c.bf16 %v166_v7, %v163_v6  ;;  %v170_v10 = vld [vmem:[#allocation5 + $0x38] sm:$0xff]  ;;  %3925 = vmatprep.subr.bf16.mxu0 %v3924_v4  ;;  %v169_v15 = vld [vmem:[#allocation5 + $0x30] sm:$0xff]  ;;  %v172_v16 = vld [vmem:[#allocation5 + $0x48] sm:$0xff] }
  0x9a   :  { %v3928_v13 = vpack.c.bf16 %v173_v11, %v170_v10  ;;  %v174_v14 = vld [vmem:[#allocation5 + $0x58] sm:$0xff]  ;;  %3957 = vmatprep.subr.bf16.mxu1 %v3956_v8  ;;  %v3930_v18 = vpack.c.bf16 %v172_v16, %v169_v15  ;;  %v176_v19 = vld [vmem:[#allocation5 + $0x68] sm:$0xff]  ;;  %v179_v20 = vld [vmem:[#allocation5 + $0x80] sm:$0xff] }
  0x9b   :  { %3927 = vmatpush1.bf16.msra.mxu0 %v3926_v9  ;;  %v3960_v17 = vpack.c.bf16 %v174_v14, %v171_v12  ;;  %v177_v21 = vld [vmem:[#allocation5 + $0x70] sm:$0xff]  ;;  %3959 = vmatpush3.bf16.msra.mxu1 %v3956_v8  ;;  %v3932_v22 = vpack.c.bf16 %v179_v20, %v176_v19  ;;  %v180_v23 = vld [vmem:[#allocation5 + $0x88] sm:$0xff]  ;;  %v175_v24 = vld [vmem:[#allocation5 + $0x60] sm:$0xff] }
  0x9c   :  { %3929 = vmatprep.subr.bf16.mxu0 %v3928_v13  ;;  %v178_v25 = vld [vmem:[#allocation5 + $0x78] sm:$0xff]  ;;  %v3964_v26 = vpack.c.bf16 %v180_v23, %v177_v21  ;;  %v185_v28 = vld [vmem:[#allocation5 + $0xb0] sm:$0xff]  ;;  %v183_v29 = vld [vmem:[#allocation5 + $0xa0] sm:$0xff] }
  0x9d   :  { %3961 = vmatprep.subr.bf16.mxu1 %v3960_v17  ;;  %v182_v27 = vld [vmem:[#allocation5 + $0x98] sm:$0xff]  ;;  %v3934_v31 = vpack.c.bf16 %v178_v25, %v175_v24  ;;  %v181_v33 = vld [vmem:[#allocation5 + $0x90] sm:$0xff]  ;;  %v184_v34 = vld [vmem:[#allocation5 + $0xa8] sm:$0xff] }
  0x9e   :  { %v186_v30 = vld [vmem:[#allocation5 + $0xb8] sm:$0xff]  ;;  %v3936_v32 = vpack.c.bf16 %v185_v28, %v182_v27  ;;  %v188_v36 = vld [vmem:[#allocation5 + $0xc8] sm:$0xff]  ;;  %v191_v37 = vld [vmem:[#allocation5 + $0xe0] sm:$0xff]  ;;  %v3938_v40 = vpack.c.bf16 %v184_v34, %v181_v33 }
  0x9f   :  { %3931 = vmatpush1.bf16.msra.mxu0 %v3930_v18  ;;  %3963 = vmatpush3.bf16.msra.mxu1 %v3960_v17  ;;  %v3968_v35 = vpack.c.bf16 %v186_v30, %v183_v29  ;;  %v189_v38 = vld [vmem:[#allocation5 + $0xd0] sm:$0xff]  ;;  %v192_v39 = vld [vmem:[#allocation5 + $0xe8] sm:$0xff]  ;;  %v3940_v41 = vpack.c.bf16 %v191_v37, %v188_v36  ;;  %v187_v42 = vld [vmem:[#allocation5 + $0xc0] sm:$0xff] }
  0xa0   :  { %3933 = vmatprep.subr.bf16.mxu0 %v3932_v22  ;;  %3965 = vmatprep.subr.bf16.mxu1 %v3964_v26  ;;  %v190_v43 = vld [vmem:[#allocation5 + $0xd8] sm:$0xff]  ;;  %v3972_v44 = vpack.c.bf16 %v192_v39, %v189_v38  ;;  %v197_v46 = vld [vmem:[#allocation5 + $0x110] sm:$0xff]  ;;  %v195_v47 = vld [vmem:[#allocation5 + $0x100] sm:$0xff] }
  0xa1   :  { %v194_v45 = vld [vmem:[#allocation5 + $0xf8] sm:$0xff]  ;;  %v3942_v49 = vpack.c.bf16 %v190_v43, %v187_v42  ;;  %v193_v50 = vld [vmem:[#allocation5 + $0xf0] sm:$0xff]  ;;  %v147_v51 = vld [vmem:[#allocation2] sm:$0xff] }
  0xa2   :  { %v198_v48 = vld [vmem:[#allocation5 + $0x118] sm:$0xff]  ;;  %v3944_v52 = vpack.c.bf16 %v197_v46, %v194_v45  ;;  %v196_v53 = vld [vmem:[#allocation5 + $0x108] sm:$0xff]  ;;  %v203_v56 = vld [vmem:[#allocation5 + $0x140] sm:$0xff]  ;;  %3708 = vmatprep.mubr.f32.mxu1 %v147_v51 }
  0xa3   :  { %3935 = vmatpush1.bf16.msra.mxu0 %v3934_v31  ;;  %3967 = vmatpush3.bf16.msra.mxu1 %v3964_v26  ;;  %v200_v54 = vld [vmem:[#allocation5 + $0x128] sm:$0xff]  ;;  %v3976_v55 = vpack.c.bf16 %v198_v48, %v195_v47  ;;  %v201_v57 = vld [vmem:[#allocation5 + $0x130] sm:$0xff]  ;;  %v3946_v59 = vpack.c.bf16 %v196_v53, %v193_v50  ;;  %v199_v60 = vld [vmem:[#allocation5 + $0x120] sm:$0xff]  ;;  %v7057_v53 = vmov 0  }
  0xa4   :  { %3937 = vmatprep.subr.bf16.mxu0 %v3936_v32  ;;  %3969 = vmatprep.subr.bf16.mxu1 %v3968_v35  ;;  %v204_v58 = vld [vmem:[#allocation5 + $0x148] sm:$0xff]  ;;  %v3948_v61 = vpack.c.bf16 %v203_v56, %v200_v54  ;;  %v202_v62 = vld [vmem:[#allocation5 + $0x138] sm:$0xff]  ;;  %v209_v2 = vld [vmem:[#allocation5 + $0x170] sm:$0xff] }
  0xa5   :  { %v206_v63 = vld [vmem:[#allocation5 + $0x158] sm:$0xff]  ;;  %v3980_v1 = vpack.c.bf16 %v204_v58, %v201_v57  ;;  %v207_v3 = vld [vmem:[#allocation5 + $0x160] sm:$0xff]  ;;  %v3950_v5 = vpack.c.bf16 %v202_v62, %v199_v60  ;;  %v205_v7 = vld [vmem:[#allocation5 + $0x150] sm:$0xff] }
  0xa6   :  { %v210_v4 = vld [vmem:[#allocation5 + $0x178] sm:$0xff]  ;;  %v3952_v6 = vpack.c.bf16 %v209_v2, %v206_v63  ;;  %v208_v8 = vld [vmem:[#allocation5 + $0x168] sm:$0xff]  ;;  %v4014_v14 = vld [vmem:[#allocation8] ss:$12 sps:$4 sm:$0xff]  }
  0xa7   :  { %3939 = vmatpush1.bf16.msra.mxu0 %v3938_v40  ;;  %3971 = vmatpush3.bf16.msra.mxu1 %v3968_v35  ;;  %v3984_v9 = vpack.c.bf16 %v210_v4, %v207_v3  ;;  %v3954_v10 = vpack.c.bf16 %v208_v8, %v205_v7  ;;  %v5121_v11 = vld [vmem:[#allocation8 + $0x4] ss:$12 sps:$4 sm:$0xff]   ;;  %v4015_v13 = vld [vmem:[#allocation8 + $0x8] ss:$12 sps:$4 sm:$0xff]   ;;  %v151_v19 = vld [vmem:[#allocation2 + $0x20] sm:$0xff] }
  0xa8   :  { %3941 = vmatprep.subr.bf16.mxu0 %v3940_v41  ;;  %3973 = vmatprep.subr.bf16.mxu1 %v3972_v44  ;;  %v148_v12 = vld [vmem:[#allocation2 + $0x8] sm:$0xff]  ;;  %v149_v16 = vld [vmem:[#allocation2 + $0x10] sm:$0xff]  ;;  %v150_v17 = vld [vmem:[#allocation2 + $0x18] sm:$0xff] }
  0xa9   :  { %v4016_v15 = vld [vmem:[#allocation8 + $0x1c] ss:$12 sps:$4 sm:$0xff]   ;;  %v4018_v18 = vld [vmem:[#allocation8 + $0x18] ss:$12 sps:$4 sm:$0xff]   ;;  %v5126_v20 = vld [vmem:[#allocation8 + $0x34] ss:$12 sps:$4 sm:$0xff]  }
  0xaa   :  { %v5128_v21 = vld [vmem:[#allocation8 + $0x20] ss:$12 sps:$4 sm:$0xff]   ;;  %v152_v22 = vld [vmem:[#allocation2 + $0x28] sm:$0xff]  ;;  %v5131_v23 = vld [vmem:[#allocation8 + $0x30] ss:$12 sps:$4 sm:$0xff]  }
  0xab   :  { %3943 = vmatpush1.bf16.msra.mxu0 %v3942_v49  ;;  %3975 = vmatpush3.bf16.msra.mxu1 %v3972_v44  ;;  %v153_v24 = vld [vmem:[#allocation2 + $0x30] sm:$0xff]  ;;  %v5136_v26 = vld [vmem:[#allocation8 + $0x38] ss:$12 sps:$4 sm:$0xff]   ;;  %v5142_v28 = vld [vmem:[#allocation8 + $0x48] ss:$12 sps:$4 sm:$0xff]  }
  0xac   :  { %3945 = vmatprep.subr.bf16.mxu0 %v3944_v52  ;;  %3977 = vmatprep.subr.bf16.mxu1 %v3976_v55  ;;  %v5134_v25 = vld [vmem:[#allocation8 + $0x4c] ss:$12 sps:$4 sm:$0xff]   ;;  %v5146_v29 = vld [vmem:[#allocation2 + $0x40] sm:$0xff]  ;;  %v5148_v30 = vld [vmem:[#allocation8 + $0x64] ss:$12 sps:$4 sm:$0xff]  }
  0xad   :  { %v5140_v27 = vld [vmem:[#allocation2 + $0x38] sm:$0xff]  ;;  %v5150_v31 = vld [vmem:[#allocation8 + $0x50] ss:$12 sps:$4 sm:$0xff]   ;;  %v156_v32 = vld [vmem:[#allocation2 + $0x48] sm:$0xff] }
  0xae   :  { %v5155_v33 = vld [vmem:[#allocation8 + $0x60] ss:$12 sps:$4 sm:$0xff]   ;;  %v5160_v35 = vld [vmem:[#allocation8 + $0x7c] ss:$12 sps:$4 sm:$0xff]   ;;  %v158_v37 = vld [vmem:[#allocation2 + $0x58] sm:$0xff] }
  0xaf   :  { %3947 = vmatpush1.bf16.msra.mxu0 %v3946_v59  ;;  %3979 = vmatpush3.bf16.msra.mxu1 %v3976_v55  ;;  %v157_v34 = vld [vmem:[#allocation2 + $0x50] sm:$0xff]  ;;  %v5162_v36 = vld [vmem:[#allocation8 + $0x68] ss:$12 sps:$4 sm:$0xff]   ;;  %v5168_v38 = vld [vmem:[#allocation8 + $0x78] ss:$12 sps:$4 sm:$0xff]  }
  0xb0   :  { %3949 = vmatprep.subr.bf16.mxu0 %v3948_v61  ;;  %3981 = vmatprep.subr.bf16.mxu1 %v3980_v1  ;;  %v159_v39 = vld [vmem:[#allocation2 + $0x60] sm:$0xff]  ;;  %v160_v42 = vld [vmem:[#allocation2 + $0x68] sm:$0xff]  ;;  %v161_v44 = vld [vmem:[#allocation2 + $0x70] sm:$0xff] }
  0xb1   :  { %v5172_v40 = vld [vmem:[#allocation8 + $0x94] ss:$12 sps:$4 sm:$0xff]   ;;  %v5179_v43 = vld [vmem:[#allocation8 + $0x90] ss:$12 sps:$4 sm:$0xff]   ;;  %v5183_v45 = vld [vmem:[#allocation8 + $0xac] ss:$12 sps:$4 sm:$0xff]  }
  0xb2   :  { %v5174_v41 = vld [vmem:[#allocation8 + $0x80] ss:$12 sps:$4 sm:$0xff]   ;;  %v5185_v46 = vld [vmem:[#allocation8 + $0x98] ss:$12 sps:$4 sm:$0xff]   ;;  %v5190_v48 = vld [vmem:[#allocation8 + $0xa8] ss:$12 sps:$4 sm:$0xff]  }
  0xb3   :  { %3951 = vmatpush1.bf16.msra.mxu0 %v3950_v5  ;;  %3983 = vmatpush3.bf16.msra.mxu1 %v3980_v1  ;;  %v162_v47 = vld [vmem:[#allocation2 + $0x78] sm:$0xff]  ;;  %v5195_v49 = vld [vmem:[%s7052_s9] sm:$0xff]  ;;  %v5200_v50 = vld [vmem:[%s7052_s9 + $0x8] sm:$0xff] }
  0xb4   :  { %3953 = vmatprep.subr.bf16.mxu0 %v3952_v6  ;;  %3985 = vmatprep.subr.bf16.mxu1 %v3984_v9  ;;  %v636_v52 = vpack.c.bf16 %v5200_v50, %v5195_v49  ;;  %v5227_v54 = vld [vmem:[#allocation11 + $0x4] ss:$16 sps:$4 sm:$0xff]   ;;  %v5229_v55 = vld [vmem:[#allocation11 + $0xc] ss:$16 sps:$4 sm:$0xff]   ;;  %v5231_v56 = vld [vmem:[#allocation11] ss:$16 sps:$4 sm:$0xff]  }
  0xb5   :  { %v5233_v57 = vld [vmem:[#allocation11 + $0x8] ss:$16 sps:$4 sm:$0xff]   ;;  %v5239_v58 = vld [vmem:[#allocation11 + $0x24] ss:$16 sps:$4 sm:$0xff]   ;;  %v5241_v59 = vld [vmem:[#allocation11 + $0x2c] ss:$16 sps:$4 sm:$0xff]  }
  0xb6   :  { %v5243_v60 = vld [vmem:[#allocation11 + $0x20] ss:$16 sps:$4 sm:$0xff]   ;;  %v5245_v61 = vld [vmem:[#allocation11 + $0x28] ss:$16 sps:$4 sm:$0xff]   ;;  %v5251_v62 = vld [vmem:[#allocation11 + $0x44] ss:$16 sps:$4 sm:$0xff]  }
  0xb7   :  { %3955 = vmatpush1.bf16.msra.mxu0 %v3954_v10  ;;  %3987 = vmatpush3.bf16.msra.mxu1 %v3984_v9  ;;  %v5253_v63 = vld [vmem:[#allocation11 + $0x4c] ss:$16 sps:$4 sm:$0xff]   ;;  %v5255_v1 = vld [vmem:[#allocation11 + $0x40] ss:$16 sps:$4 sm:$0xff]   ;;  %v5257_v2 = vld [vmem:[#allocation11 + $0x48] ss:$16 sps:$4 sm:$0xff]  }
  0xb8   :  { %3732 = vmatprep.subr.bf16.mxu0 %v7059_v0  ;;  %781 = vmatprep.subr.bf16.mxu1 %v5121_v11  ;;  %v5263_v3 = vld [vmem:[#allocation11 + $0x64] ss:$16 sps:$4 sm:$0xff]   ;;  %v5265_v4 = vld [vmem:[#allocation11 + $0x6c] ss:$16 sps:$4 sm:$0xff]   ;;  %v5267_v5 = vld [vmem:[#allocation11 + $0x60] ss:$16 sps:$4 sm:$0xff]  }
  0xb9   :  { %7367 = vst [vmem:[#allocation27_spill] sm:$0xff] %v5265_v4  ;;  %7368 = vst [vmem:[#allocation28_spill] sm:$0xff] %v5267_v5  ;;  %v5269_v6 = vld [vmem:[#allocation11 + $0x68] ss:$16 sps:$4 sm:$0xff]   ;;  %v5275_v7 = vld [vmem:[#allocation11 + $0x84] ss:$16 sps:$4 sm:$0xff]  }
  0xba   :  { %293 = vmatmul.mubr.f32.vlgmr.msra.gmra.mrb[0].mxu0 %v147_v51  ;;  %3709 = vmatmul.mubr.f32.vlgmr.msra.gmra.mrb[0].mxu1 %v148_v12  ;;  %v5204_v51 = vld [vmem:[#allocation8 + $0xb0] ss:$12 sps:$4 sm:$0xff]   ;;  %7369 = vst [vmem:[#allocation29_spill] sm:$0xff] %v5269_v6  ;;  %7370 = vst [vmem:[#allocation30_spill] sm:$0xff] %v5275_v7  ;;  %v5279_v9 = vld [vmem:[#allocation11 + $0x80] ss:$16 sps:$4 sm:$0xff]  }
  0xbb   :  { %3733 = vmatpush3.bf16.msra.mxu0 %v4015_v13  ;;  %782 = vmatpush1.bf16.msra.mxu1 %v4014_v14  ;;  %v5277_v8 = vld [vmem:[#allocation11 + $0x8c] ss:$16 sps:$4 sm:$0xff]   ;;  %7372 = vst [vmem:[#allocation32_spill] sm:$0xff] %v5279_v9  ;;  %v5281_v10 = vld [vmem:[#allocation11 + $0x88] ss:$16 sps:$4 sm:$0xff]  }
  0xbc   :  { %298 = vmatprep.mubr.f32.mxu0 %v7059_v0  ;;  %3711 = vmatprep.mubr.f32.mxu1 %v149_v16  ;;  %7371 = vst [vmem:[#allocation31_spill] sm:$0xff] %v5277_v8  ;;  %7373 = vst [vmem:[#allocation33_spill] sm:$0xff] %v5281_v10  ;;  %v5289_v13 = vld [vmem:[#allocation11 + $0xac] ss:$16 sps:$4 sm:$0xff]   ;;  %v5291_v14 = vld [vmem:[#allocation11 + $0xa0] ss:$16 sps:$4 sm:$0xff]  }
  0xbd   :  { %783 = vmatprep.subr.bf16.mxu1 %v4016_v15  ;;  %3734 = vmatprep.subr.bf16.mxu0 %v7059_v0  ;;  %7375 = vst [vmem:[#allocation35_spill] sm:$0xff] %v5289_v13  ;;  %7376 = vst [vmem:[#allocation36_spill] sm:$0xff] %v5291_v14  ;;  %v5293_v15 = vld [vmem:[#allocation11 + $0xa8] ss:$16 sps:$4 sm:$0xff]  }
  0xbe   :  { %299 = vmatmul.mubr.f32.gmra.mrb[2].mxu0 %v148_v12  ;;  %3712 = vmatmul.mubr.f32.gmra.mrb[2].mxu1 %v150_v17  ;;  %v5287_v12 = vld [vmem:[#allocation11 + $0xa4] ss:$16 sps:$4 sm:$0xff]   ;;  %7377 = vst [vmem:[#allocation37_spill] sm:$0xff] %v5293_v15 }
  0xbf   :  { %304 = vmatprep.mubr.f32.mxu0 %v7059_v0  ;;  %784 = vmatpush1.bf16.msra.mxu1 %v4018_v18  ;;  %7374 = vst [vmem:[#allocation34_spill] sm:$0xff] %v5287_v12  ;;  %v5303_v18 = vld [vmem:[#allocation11 + $0xc0] ss:$16 sps:$4 sm:$0xff]  }
  0xc0   :  { %3714 = vmatprep.mubr.f32.mxu1 %v151_v19  ;;  %785 = vmatprep.subr.bf16.mxu1 %v5126_v20  ;;  %7380 = vst [vmem:[#allocation40_spill] sm:$0xff] %v5303_v18 }
  0xc1   :  { %3735 = vmatpush3.bf16.msra.mxu0 %v5128_v21 }
  0xc2   :  { %305 = vmatmul.mubr.f32.gmra.mrb[4].mxu0 %v149_v16  ;;  %3736 = vmatprep.subr.bf16.mxu0 %v7059_v0  ;;  %v5299_v16 = vld [vmem:[#allocation11 + $0xc4] ss:$16 sps:$4 sm:$0xff]  }
  0xc3   :  { %3715 = vmatmul.mubr.f32.gmra.mrb[4].mxu1 %v152_v22  ;;  %310 = vmatprep.mubr.f32.mxu0 %v7059_v0  ;;  %7378 = vst [vmem:[#allocation38_spill] sm:$0xff] %v5299_v16 }
  0xc4   :  { %786 = vmatpush1.bf16.msra.mxu1 %v5131_v23  ;;  %3717 = vmatprep.mubr.f32.mxu1 %v153_v24 }
  0xc5   :  { %787 = vmatprep.subr.bf16.mxu1 %v5134_v25  ;;  %3737 = vmatpush3.bf16.msra.mxu0 %v5136_v26 }
  0xc6   :  { %311 = vmatmul.mubr.f32.gmra.mrb[6].mxu0 %v150_v17  ;;  %3738 = vmatprep.subr.bf16.mxu0 %v7059_v0  ;;  %v5301_v17 = vld [vmem:[#allocation11 + $0xcc] ss:$16 sps:$4 sm:$0xff]  }
  0xc7   :  { %3718 = vmatmul.mubr.f32.gmra.mrb[6].mxu1 %v5140_v27  ;;  %316 = vmatprep.mubr.f32.mxu0 %v7059_v0  ;;  %7379 = vst [vmem:[#allocation39_spill] sm:$0xff] %v5301_v17 }
  0xc8   :  { %788 = vmatpush1.bf16.msra.mxu1 %v5142_v28  ;;  %3720 = vmatprep.mubr.f32.mxu1 %v5146_v29 }
  0xc9   :  { %789 = vmatprep.subr.bf16.mxu1 %v5148_v30  ;;  %3739 = vmatpush3.bf16.msra.mxu0 %v5150_v31 }
  0xca   :  { %317 = vmatmul.mubr.f32.gmra.mrb[8].mxu0 %v151_v19  ;;  %3740 = vmatprep.subr.bf16.mxu0 %v7059_v0  ;;  %v5305_v19 = vld [vmem:[#allocation11 + $0xc8] ss:$16 sps:$4 sm:$0xff]  }
  0xcb   :  { %3721 = vmatmul.mubr.f32.gmra.mrb[8].mxu1 %v156_v32  ;;  %322 = vmatprep.mubr.f32.mxu0 %v7059_v0  ;;  %7381 = vst [vmem:[#allocation41_spill] sm:$0xff] %v5305_v19 }
  0xcc   :  { %790 = vmatpush1.bf16.msra.mxu1 %v5155_v33  ;;  %3723 = vmatprep.mubr.f32.mxu1 %v157_v34 }
  0xcd   :  { %791 = vmatprep.subr.bf16.mxu1 %v5160_v35  ;;  %3741 = vmatpush3.bf16.msra.mxu0 %v5162_v36 }
  0xce   :  { %323 = vmatmul.mubr.f32.gmra.mrb[10].mxu0 %v152_v22  ;;  %3742 = vmatprep.subr.bf16.mxu0 %v7059_v0  ;;  %v5311_v22 = vld [vmem:[#allocation11 + $0xe4] ss:$16 sps:$4 sm:$0xff]  }
  0xcf   :  { %3724 = vmatmul.mubr.f32.gmra.mrb[10].mxu1 %v158_v37  ;;  %328 = vmatprep.mubr.f32.mxu0 %v7059_v0  ;;  %7382 = vst [vmem:[#allocation42_spill] sm:$0xff] %v5311_v22 }
  0xd0   :  { %792 = vmatpush1.bf16.msra.mxu1 %v5168_v38  ;;  %3726 = vmatprep.mubr.f32.mxu1 %v159_v39 }
  0xd1   :  { %793 = vmatprep.subr.bf16.mxu1 %v5172_v40  ;;  %3743 = vmatpush3.bf16.msra.mxu0 %v5174_v41 }
  0xd2   :  { %329 = vmatmul.mubr.f32.gmra.mrb[12].mxu0 %v153_v24  ;;  %3744 = vmatprep.subr.bf16.mxu0 %v7059_v0  ;;  %v5313_v24 = vld [vmem:[#allocation11 + $0xec] ss:$16 sps:$4 sm:$0xff]  }
  0xd3   :  { %3727 = vmatmul.mubr.f32.gmra.mrb[12].mxu1 %v160_v42  ;;  %334 = vmatprep.mubr.f32.mxu0 %v7059_v0  ;;  %7383 = vst [vmem:[#allocation43_spill] sm:$0xff] %v5313_v24 }
  0xd4   :  { %794 = vmatpush1.bf16.msra.mxu1 %v5179_v43  ;;  %3729 = vmatprep.mubr.f32.mxu1 %v161_v44 }
  0xd5   :  { %795 = vmatprep.subr.bf16.mxu1 %v5183_v45  ;;  %3745 = vmatpush3.bf16.msra.mxu0 %v5185_v46 }
  0xd6   :  { %335 = vmatmul.mubr.f32.gmra.mrb[14].mxu0 %v5140_v27  ;;  %3746 = vmatprep.subr.bf16.mxu0 %v7059_v0  ;;  %v5315_v27 = vld [vmem:[#allocation11 + $0xe0] ss:$16 sps:$4 sm:$0xff]  }
  0xd7   :  { %3730 = vmatmul.mubr.f32.gmra.mrb[14].mxu1 %v162_v47  ;;  %340 = vmatprep.mubr.f32.mxu0 %v7059_v0  ;;  %7384 = vst [vmem:[#allocation44_spill] sm:$0xff] %v5315_v27 }
  0xd8   :  { %796 = vmatpush1.bf16.msra.mxu1 %v5190_v48  ;;  %813 = vmatprep.mubr.bf16.mxu1 %v7057_v53  ;;  %v5347_v53 = vld [vmem:[#allocation11 + $0x144] ss:$16 sps:$4 sm:$0xff]  }
  0xd9   :  { %3747 = vmatpush3.bf16.msra.mxu0 %v5204_v51  ;;  %1250 = vmatprep.subr.bf16.mxu1 %v5227_v54  ;;  %7394 = vst [vmem:[#allocation54_spill] sm:$0xff] %v5347_v53 }
  0xda   :  { %341 = vmatmul.mubr.f32.gmra.mrb[16].mxu0 %v5146_v29  ;;  %1293 = vmatprep.subr.bf16.mxu0 %v5229_v55  ;;  %v5317_v29 = vld [vmem:[#allocation11 + $0xe8] ss:$16 sps:$4 sm:$0xff]  }
  0xdb   :  { %814 = vmatmul.mubr.bf16.vlgmr.msra.gmra.mrb[16].mxu1 %v636_v52  ;;  %346 = vmatprep.mubr.f32.mxu0 %v7059_v0  ;;  %7385 = vst [vmem:[#allocation45_spill] sm:$0xff] %v5317_v29 }
  0xdc   :  { %1251 = vmatpush1.bf16.msra.mxu1 %v5231_v56 }
  0xdd   :  { %1252 = vmatprep.subr.bf16.mxu1 %v5239_v58 }
  0xde   :  { %347 = vmatmul.mubr.f32.gmra.mrb[18].mxu0 %v156_v32  ;;  %v5323_v32 = vld [vmem:[#allocation11 + $0x104] ss:$16 sps:$4 sm:$0xff]  }
  0xdf   :  { %352 = vmatprep.mubr.f32.mxu0 %v7059_v0  ;;  %7386 = vst [vmem:[#allocation46_spill] sm:$0xff] %v5323_v32 }
  0xe0   :  { %1253 = vmatpush1.bf16.msra.mxu1 %v5243_v60 }
  0xe1   :  { %1254 = vmatprep.subr.bf16.mxu1 %v5251_v62 }
  0xe2   :  { %353 = vmatmul.mubr.f32.gmra.mrb[20].mxu0 %v157_v34  ;;  %v5325_v34 = vld [vmem:[#allocation11 + $0x10c] ss:$16 sps:$4 sm:$0xff]  }
  0xe3   :  { %358 = vmatprep.mubr.f32.mxu0 %v7059_v0  ;;  %7387 = vst [vmem:[#allocation47_spill] sm:$0xff] %v5325_v34 }
  0xe4   :  { %1255 = vmatpush1.bf16.msra.mxu1 %v5255_v1 }
  0xe5   :  { %1256 = vmatprep.subr.bf16.mxu1 %v5263_v3 }
  0xe6   :  { %359 = vmatmul.mubr.f32.gmra.mrb[22].mxu0 %v158_v37  ;;  %v5327_v37 = vld [vmem:[#allocation11 + $0x100] ss:$16 sps:$4 sm:$0xff]  }
  0xe7   :  { %364 = vmatprep.mubr.f32.mxu0 %v7059_v0  ;;  %7388 = vst [vmem:[#allocation48_spill] sm:$0xff] %v5327_v37 }
  0xe8   :  { %1257 = vmatpush1.bf16.msra.mxu1 %v5267_v5 }
  0xe9   :  { %1258 = vmatprep.subr.bf16.mxu1 %v5275_v7 }
  0xea   :  { %365 = vmatmul.mubr.f32.gmra.mrb[24].mxu0 %v159_v39  ;;  %v5329_v39 = vld [vmem:[#allocation11 + $0x108] ss:$16 sps:$4 sm:$0xff]  }
  0xeb   :  { %370 = vmatprep.mubr.f32.mxu0 %v7059_v0  ;;  %7389 = vst [vmem:[#allocation49_spill] sm:$0xff] %v5329_v39 }
  0xec   :  { %1259 = vmatpush1.bf16.msra.mxu1 %v5279_v9 }
  0xed   :  { %1260 = vmatprep.subr.bf16.mxu1 %v5287_v12 }
  0xee   :  { %371 = vmatmul.mubr.f32.gmra.mrb[26].mxu0 %v160_v42  ;;  %v5335_v42 = vld [vmem:[#allocation11 + $0x124] ss:$16 sps:$4 sm:$0xff]  }
  0xef   :  { %376 = vmatprep.mubr.f32.mxu0 %v7059_v0  ;;  %7390 = vst [vmem:[#allocation50_spill] sm:$0xff] %v5335_v42 }
  0xf0   :  { %1261 = vmatpush1.bf16.msra.mxu1 %v5291_v14 }
  0xf1   :  { %1262 = vmatprep.subr.bf16.mxu1 %v5299_v16 }
  0xf2   :  { %377 = vmatmul.mubr.f32.gmra.mrb[28].mxu0 %v161_v44  ;;  %v5337_v44 = vld [vmem:[#allocation11 + $0x12c] ss:$16 sps:$4 sm:$0xff]  }
  0xf3   :  { %382 = vmatprep.mubr.f32.mxu0 %v7059_v0  ;;  %7391 = vst [vmem:[#allocation51_spill] sm:$0xff] %v5337_v44 }
  0xf4   :  { %1263 = vmatpush1.bf16.msra.mxu1 %v5303_v18 }
  0xf5   :  { %1264 = vmatprep.subr.bf16.mxu1 %v5311_v22 }
  0xf6   :  { %383 = vmatmul.mubr.f32.gmra.mrb[30].mxu0 %v162_v47  ;;  %v5339_v47 = vld [vmem:[#allocation11 + $0x120] ss:$16 sps:$4 sm:$0xff]  }
  0xf7   :  { %3748 = vmatprep.mubr.msk.bf16.mxu0 %vm4940_vm0, %v7059_v0  ;;  %7392 = vst [vmem:[#allocation52_spill] sm:$0xff] %v5339_v47  ;;  %v5349_v0 = vld [vmem:[#allocation11 + $0x14c] ss:$16 sps:$4 sm:$0xff]  }
  0xf8   :  { %1265 = vmatpush1.bf16.msra.mxu1 %v5315_v27  ;;  %7395 = vst [vmem:[#allocation55_spill] sm:$0xff] %v5349_v0 }
  0xf9   :  { %1266 = vmatprep.subr.bf16.mxu1 %v5323_v32  ;;  %v5395_v32 = vld [vmem:[#allocation11 + $0x1cc] ss:$16 sps:$4 sm:$0xff]  }
  0xfa   :  { %3749 = vmatmul.mubr.bf16.vlgmr.msra.gmra.mrb[32].mxu0 %v636_v52  ;;  %v5341_v52 = vld [vmem:[#allocation11 + $0x128] ss:$16 sps:$4 sm:$0xff]   ;;  %7411 = vst [vmem:[#allocation71_spill] sm:$0xff] %v5395_v32 }
  0xfb   :  { %1294 = vmatpush1.bf16.msra.mxu0 %v5233_v57  ;;  %7393 = vst [vmem:[#allocation53_spill] sm:$0xff] %v5341_v52 }
  0xfc   :  { %1295 = vmatprep.subr.bf16.mxu0 %v5241_v59  ;;  %1267 = vmatpush1.bf16.msra.mxu1 %v5327_v37  ;;  %v5353_v37 = vld [vmem:[#allocation11 + $0x148] ss:$16 sps:$4 sm:$0xff]  }
  0xfd   :  { %1268 = vmatprep.subr.bf16.mxu1 %v5335_v42  ;;  %7397 = vst [vmem:[#allocation57_spill] sm:$0xff] %v5353_v37  ;;  %v5365_v42 = vld [vmem:[#allocation11 + $0x168] ss:$16 sps:$4 sm:$0xff]  }
  0xfe   :  { %7401 = vst [vmem:[#allocation61_spill] sm:$0xff] %v5365_v42 }
  0xff   :  { %1296 = vmatpush1.bf16.msra.mxu0 %v5245_v61 }
 0x100   :  { %1297 = vmatprep.subr.bf16.mxu0 %v5253_v63  ;;  %1269 = vmatpush1.bf16.msra.mxu1 %v5339_v47  ;;  %v5361_v47 = vld [vmem:[#allocation11 + $0x16c] ss:$16 sps:$4 sm:$0xff]  }
 0x101   :  { %1270 = vmatprep.subr.bf16.mxu1 %v5347_v53  ;;  %7399 = vst [vmem:[#allocation59_spill] sm:$0xff] %v5361_v47  ;;  %v5377_v53 = vld [vmem:[#allocation11 + $0x188] ss:$16 sps:$4 sm:$0xff]  }
 0x102   :  { %7405 = vst [vmem:[#allocation65_spill] sm:$0xff] %v5377_v53 }
 0x103   :  { %1298 = vmatpush1.bf16.msra.mxu0 %v5257_v2 }
 0x104   :  { %1299 = vmatprep.subr.bf16.mxu0 %v5265_v4 }
 0x107   :  { %1300 = vmatpush1.bf16.msra.mxu0 %v5269_v6 }
 0x108   :  { %1301 = vmatprep.subr.bf16.mxu0 %v5277_v8 }
 0x10b   :  { %1302 = vmatpush1.bf16.msra.mxu0 %v5281_v10 }
 0x10c   :  { %1303 = vmatprep.subr.bf16.mxu0 %v5289_v13 }
 0x10f   :  { %1304 = vmatpush1.bf16.msra.mxu0 %v5293_v15 }
 0x110   :  { %1305 = vmatprep.subr.bf16.mxu0 %v5301_v17 }
 0x113   :  { %1306 = vmatpush1.bf16.msra.mxu0 %v5305_v19 }
 0x114   :  { %1307 = vmatprep.subr.bf16.mxu0 %v5313_v24 }
 0x117   :  { %1308 = vmatpush1.bf16.msra.mxu0 %v5317_v29  ;;  %v5419_v29 = vld [vmem:[#allocation11 + $0x1ec] ss:$16 sps:$4 sm:$0xff]  }
 0x118   :  { %1309 = vmatprep.subr.bf16.mxu0 %v5325_v34  ;;  %v5379_v34 = vld [vmem:[#allocation11 + $0x1a4] ss:$16 sps:$4 sm:$0xff]   ;;  %7417 = vst [vmem:[#allocation77_spill] sm:$0xff] %v5419_v29 }
 0x119   :  { %7406 = vst [vmem:[#allocation66_spill] sm:$0xff] %v5379_v34 }
 0x11b   :  { %1310 = vmatpush1.bf16.msra.mxu0 %v5329_v39  ;;  %v5351_v39 = vld [vmem:[#allocation11 + $0x140] ss:$16 sps:$4 sm:$0xff]  }
 0x11c   :  { %1311 = vmatprep.subr.bf16.mxu0 %v5337_v44  ;;  %7396 = vst [vmem:[#allocation56_spill] sm:$0xff] %v5351_v39  ;;  %1271 = vmatpush1.bf16.msra.mxu1 %v5351_v39  ;;  %v5359_v44 = vld [vmem:[#allocation11 + $0x164] ss:$16 sps:$4 sm:$0xff]   ;;  %v5373_v39 = vld [vmem:[#allocation11 + $0x18c] ss:$16 sps:$4 sm:$0xff]  }
 0x11d   :  { %7398 = vst [vmem:[#allocation58_spill] sm:$0xff] %v5359_v44  ;;  %1272 = vmatprep.subr.bf16.mxu1 %v5359_v44  ;;  %7403 = vst [vmem:[#allocation63_spill] sm:$0xff] %v5373_v39  ;;  %v5383_v44 = vld [vmem:[#allocation11 + $0x1ac] ss:$16 sps:$4 sm:$0xff]  }
 0x11e   :  { %7407 = vst [vmem:[#allocation67_spill] sm:$0xff] %v5383_v44 }
 0x11f   :  { %1312 = vmatpush1.bf16.msra.mxu0 %v5341_v52  ;;  %v5363_v52 = vld [vmem:[#allocation11 + $0x160] ss:$16 sps:$4 sm:$0xff]  }
 0x120   :  { %1313 = vmatprep.subr.bf16.mxu0 %v5349_v0  ;;  %7400 = vst [vmem:[#allocation60_spill] sm:$0xff] %v5363_v52  ;;  %1273 = vmatpush1.bf16.msra.mxu1 %v5363_v52  ;;  %v5371_v0 = vld [vmem:[#allocation11 + $0x184] ss:$16 sps:$4 sm:$0xff]   ;;  %v5389_v52 = vld [vmem:[#allocation11 + $0x1a8] ss:$16 sps:$4 sm:$0xff]  }
 0x121   :  { %7402 = vst [vmem:[#allocation62_spill] sm:$0xff] %v5371_v0  ;;  %1274 = vmatprep.subr.bf16.mxu1 %v5371_v0  ;;  %7409 = vst [vmem:[#allocation69_spill] sm:$0xff] %v5389_v52  ;;  %v5417_v0 = vld [vmem:[#allocation11 + $0x1e4] ss:$16 sps:$4 sm:$0xff]  }
 0x122   :  { %7416 = vst [vmem:[#allocation76_spill] sm:$0xff] %v5417_v0 }
 0x123   :  { %1314 = vmatpush1.bf16.msra.mxu0 %v5353_v37  ;;  %v5375_v37 = vld [vmem:[#allocation11 + $0x180] ss:$16 sps:$4 sm:$0xff]  }
 0x124   :  { %1315 = vmatprep.subr.bf16.mxu0 %v5361_v47  ;;  %7404 = vst [vmem:[#allocation64_spill] sm:$0xff] %v5375_v37  ;;  %1275 = vmatpush1.bf16.msra.mxu1 %v5375_v37  ;;  %v5393_v47 = vld [vmem:[#allocation11 + $0x1c4] ss:$16 sps:$4 sm:$0xff]  }
 0x125   :  { %1276 = vmatprep.subr.bf16.mxu1 %v5379_v34  ;;  %7410 = vst [vmem:[#allocation70_spill] sm:$0xff] %v5393_v47  ;;  %v5409_v34 = vld [vmem:[#allocation11 + $0x1c0] ss:$16 sps:$4 sm:$0xff]  }
 0x126   :  { %7414 = vst [vmem:[#allocation74_spill] sm:$0xff] %v5409_v34 }
 0x127   :  { %1316 = vmatpush1.bf16.msra.mxu0 %v5365_v42  ;;  %v5387_v42 = vld [vmem:[#allocation11 + $0x1a0] ss:$16 sps:$4 sm:$0xff]  }
 0x128   :  { %1317 = vmatprep.subr.bf16.mxu0 %v5373_v39  ;;  %7408 = vst [vmem:[#allocation68_spill] sm:$0xff] %v5387_v42  ;;  %v5400_v39 = vld [vmem:[%s7053_s10] sm:$0xff]  ;;  %1277 = vmatpush1.bf16.msra.mxu1 %v5387_v42 }
 0x129   :  { %7412 = vst [vmem:[#allocation72_spill] sm:$0xff] %v5400_v39  ;;  %1278 = vmatprep.subr.bf16.mxu1 %v5393_v47  ;;  %v5425_v42 = vld [vmem:[#allocation11 + $0x1e8] ss:$16 sps:$4 sm:$0xff]  }
 0x12a   :  { %7419 = vst [vmem:[#allocation79_spill] sm:$0xff] %v5425_v42 }
 0x12b   :  { %1318 = vmatpush1.bf16.msra.mxu0 %v5377_v53  ;;  %v5405_v53 = vld [vmem:[%s7053_s10 + $0x8] sm:$0xff] }
 0x12c   :  { %1319 = vmatprep.subr.bf16.mxu0 %v5383_v44  ;;  %7413 = vst [vmem:[#allocation73_spill] sm:$0xff] %v5405_v53  ;;  %v5411_v44 = vld [vmem:[#allocation11 + $0x1c8] ss:$16 sps:$4 sm:$0xff]   ;;  %v908_v37 = vpack.c.bf16 %v5405_v53, %v5400_v39  ;;  %1279 = vmatpush1.bf16.msra.mxu1 %v5409_v34  ;;  %v7420_v53 = vmov 0.0  }
 0x12d   :  { %7415 = vst [vmem:[#allocation75_spill] sm:$0xff] %v5411_v44  ;;  %1280 = vmatprep.subr.bf16.mxu1 %v5417_v0 }
 0x12e   :  { %1282 = vmatprep.mubr.bf16.mxu1 %v908_v37  ;;  %1325 = vmatprep.mubr.bf16.mxu0 %v908_v37  ;;  %v213_v37 = vlaneseq }
 0x12f   :  { %1320 = vmatpush1.bf16.msra.mxu0 %v5389_v52  ;;  %v5423_v52 = vld [vmem:[#allocation11 + $0x1e0] ss:$16 sps:$4 sm:$0xff]  }
 0x130   :  { %1321 = vmatprep.subr.bf16.mxu0 %v5395_v32  ;;  %7418 = vst [vmem:[#allocation78_spill] sm:$0xff] %v5423_v52  ;;  %1281 = vmatpush1.bf16.msra.mxu1 %v5423_v52  ;;  %v5433_v39 = vshrl.u32 %v213_v37, 7  ;;  %v211_v52 = vld [vmem:[#allocation7] sm:$0x7] }
 0x131   :  { %1374 = vmatprep.subr.bf16.mxu1 %v5121_v11 }
 0x132   :  { %7421 = vst [vmem:[#allocation80_spill] sm:$0xff] %v5433_v39  ;;  %v5438_v34 = vsub.s32 2, %v5433_v39  ;;  %v5450_v11 = vsub.s32 1, %v5433_v39 }
 0x133   :  { %1322 = vmatpush1.bf16.msra.mxu0 %v5411_v44 }
 0x134   :  { %1323 = vmatprep.subr.bf16.mxu0 %v5419_v29  ;;  %7423 = vst [vmem:[#allocation82_spill] sm:$0xff] %v5450_v11  ;;  %v5455_v47 = vrot.slane %v211_v52, %v5438_v34 }
 0x137   :  { %1324 = vmatpush1.bf16.msra.mxu0 %v5425_v42  ;;  %v5447_v42 = vsub.s32 0, %v5433_v39  ;;  %v5469_v39 = vrot.slane %v211_v52, %v5450_v11 }
 0x138   :  { %3752 = vmatprep.subr.bf16.mxu0 %v7420_v53 }
 0x139   :  { %7422 = vst [vmem:[#allocation81_spill] sm:$0xff] %v5447_v42  ;;  %v5463_v18 = vrot.slane %v211_v52, %v5447_v42 }
 0x18d   :  { %v5435_v44 = vpop.f32.mrb[0].mxu0  ;;  %v5442_v0 = vpop.f32.mrb[0].mxu1 }
 0x18e   :  { %v5440_v32 = vpop.f32.mrb[1].mxu0  ;;  %v5444_v29 = vpop.f32.mrb[1].mxu1 }
 0x191   :  { %v5452_v37 = vpop.f32.mrb[2].mxu0  ;;  %v3713_v24 = vpop.f32.mrb[2].mxu1 }
 0x192   :  { %v5457_v27 = vpop.f32.mrb[3].mxu0  ;;  %v5460_v22 = vadd.f32 %v3713_v24, %v5455_v47  ;;  %v465_v19 = vpop.f32.mrb[3].mxu1 }
 0x193   :  { %v5466_v17 = vadd.f32 %v465_v19, %v5455_v47 }
 0x194   :  { %7424 = vst [vmem:[#allocation83_spill] sm:$0xff] %v5460_v22 }
 0x195   :  { %7425 = vst [vmem:[#allocation84_spill] sm:$0xff] %v5466_v17  ;;  %v306_v16 = vpop.f32.mrb[4].mxu0 }
 0x196   :  { %v5472_v15 = vadd.f32 %v306_v16, %v5463_v18  ;;  %v308_v14 = vpop.f32.mrb[5].mxu0  ;;  %v3716_v13 = vpop.f32.mrb[4].mxu1 }
 0x197   :  { %v5475_v12 = vadd.f32 %v308_v14, %v5469_v39  ;;  %v5478_v24 = vadd.f32 %v3716_v13, %v5455_v47  ;;  %v475_v22 = vpop.f32.mrb[5].mxu1 }
 0x198   :  { %7426 = vst [vmem:[#allocation85_spill] sm:$0xff] %v5472_v15  ;;  %v5481_v10 = vadd.f32 %v475_v22, %v5455_v47 }
 0x199   :  { %7427 = vst [vmem:[#allocation86_spill] sm:$0xff] %v5475_v12  ;;  %7428 = vst [vmem:[#allocation87_spill] sm:$0xff] %v5478_v24  ;;  %v312_v19 = vpop.f32.mrb[6].mxu0 }
 0x19a   :  { %7429 = vst [vmem:[#allocation88_spill] sm:$0xff] %v5481_v10  ;;  %v5484_v52 = vadd.f32 %v312_v19, %v5463_v18  ;;  %v314_v17 = vpop.f32.mrb[7].mxu0  ;;  %v3719_v9 = vpop.f32.mrb[6].mxu1 }
 0x19b   :  { %v5487_v16 = vadd.f32 %v314_v17, %v5469_v39  ;;  %v5490_v15 = vadd.f32 %v3719_v9, %v5455_v47  ;;  %v485_v14 = vpop.f32.mrb[7].mxu1 }
 0x19c   :  { %7430 = vst [vmem:[#allocation89_spill] sm:$0xff] %v5484_v52  ;;  %v5493_v13 = vadd.f32 %v485_v14, %v5455_v47 }
 0x19d   :  { %7431 = vst [vmem:[#allocation90_spill] sm:$0xff] %v5487_v16  ;;  %7432 = vst [vmem:[#allocation91_spill] sm:$0xff] %v5490_v15  ;;  %v318_v24 = vpop.f32.mrb[8].mxu0 }
 0x19e   :  { %7433 = vst [vmem:[#allocation92_spill] sm:$0xff] %v5493_v13  ;;  %v5496_v22 = vadd.f32 %v318_v24, %v5463_v18  ;;  %v320_v10 = vpop.f32.mrb[9].mxu0  ;;  %v3722_v12 = vpop.f32.mrb[8].mxu1 }
 0x19f   :  { %v5499_v19 = vadd.f32 %v320_v10, %v5469_v39  ;;  %v5502_v52 = vadd.f32 %v3722_v12, %v5455_v47  ;;  %v495_v17 = vpop.f32.mrb[9].mxu1 }
 0x1a0   :  { %7434 = vst [vmem:[#allocation93_spill] sm:$0xff] %v5496_v22  ;;  %v5505_v9 = vadd.f32 %v495_v17, %v5455_v47 }
 0x1a1   :  { %7435 = vst [vmem:[#allocation94_spill] sm:$0xff] %v5499_v19  ;;  %7436 = vst [vmem:[#allocation95_spill] sm:$0xff] %v5502_v52  ;;  %v324_v15 = vpop.f32.mrb[10].mxu0 }
 0x1a2   :  { %7437 = vst [vmem:[#allocation96_spill] sm:$0xff] %v5505_v9  ;;  %v5508_v14 = vadd.f32 %v324_v15, %v5463_v18  ;;  %v326_v13 = vpop.f32.mrb[11].mxu0  ;;  %v3725_v16 = vpop.f32.mrb[10].mxu1 }
 0x1a3   :  { %v5511_v24 = vadd.f32 %v326_v13, %v5469_v39  ;;  %v5514_v22 = vadd.f32 %v3725_v16, %v5455_v47  ;;  %v505_v10 = vpop.f32.mrb[11].mxu1 }
 0x1a4   :  { %7438 = vst [vmem:[#allocation97_spill] sm:$0xff] %v5508_v14  ;;  %v5517_v12 = vadd.f32 %v505_v10, %v5455_v47 }
 0x1a5   :  { %7439 = vst [vmem:[#allocation98_spill] sm:$0xff] %v5511_v24  ;;  %7440 = vst [vmem:[#allocation99_spill] sm:$0xff] %v5514_v22  ;;  %v330_v52 = vpop.f32.mrb[12].mxu0  ;;  %v5531_v22 = vld [vmem:[#allocation10] sm:$0x7] }
 0x1a6   :  { %7441 = vst [vmem:[#allocation100_spill] sm:$0xff] %v5517_v12  ;;  %v5520_v17 = vadd.f32 %v330_v52, %v5463_v18  ;;  %v332_v9 = vpop.f32.mrb[13].mxu0  ;;  %v3728_v19 = vpop.f32.mrb[12].mxu1 }
 0x1a7   :  { %v5523_v15 = vadd.f32 %v332_v9, %v5469_v39  ;;  %v5526_v14 = vadd.f32 %v3728_v19, %v5455_v47  ;;  %v515_v13 = vpop.f32.mrb[13].mxu1 }
 0x1a8   :  { %7442 = vst [vmem:[#allocation101_spill] sm:$0xff] %v5520_v17  ;;  %v5529_v16 = vadd.f32 %v515_v13, %v5455_v47 }
 0x1a9   :  { %7443 = vst [vmem:[#allocation102_spill] sm:$0xff] %v5523_v15  ;;  %7444 = vst [vmem:[#allocation103_spill] sm:$0xff] %v5526_v14  ;;  %v336_v10 = vpop.f32.mrb[14].mxu0  ;;  %v5544_v14 = vrot.slane %v5531_v22, %v5447_v42 }
 0x1aa   :  { %7445 = vst [vmem:[#allocation104_spill] sm:$0xff] %v5529_v16  ;;  %v5534_v12 = vadd.f32 %v336_v10, %v5463_v18  ;;  %v338_v52 = vpop.f32.mrb[15].mxu0  ;;  %v3731_v17 = vpop.f32.mrb[14].mxu1  ;;  %v5551_v10 = vrot.slane %v5531_v22, %v5450_v11 }
 0x1ab   :  { %v5537_v24 = vadd.f32 %v338_v52, %v5469_v39  ;;  %v5540_v9 = vadd.f32 %v3731_v17, %v5455_v47  ;;  %v525_v19 = vpop.f32.mrb[15].mxu1  ;;  %7449 = vst [vmem:[#allocation108_spill] sm:$0xff] %v5544_v14  ;;  %v295_v17 = vadd.f32 %v5435_v44, %v5463_v18 }
 0x1ac   :  { %7446 = vst [vmem:[#allocation105_spill] sm:$0xff] %v5534_v12  ;;  %v5547_v13 = vadd.f32 %v525_v19, %v5455_v47 }
 0x1ad   :  { %7447 = vst [vmem:[#allocation106_spill] sm:$0xff] %v5537_v24  ;;  %7448 = vst [vmem:[#allocation107_spill] sm:$0xff] %v5540_v9  ;;  %v342_v16 = vpop.f32.mrb[16].mxu0 }
 0x1ae   :  { %7450 = vst [vmem:[#allocation109_spill] sm:$0xff] %v5547_v13  ;;  %v5554_v12 = vadd.f32 %v342_v16, %v5463_v18  ;;  %v815_v52 = vpop.f32.mrb[16].mxu1  ;;  %v344_v24 = vpop.f32.mrb[17].mxu0  ;;  %v297_v13 = vadd.f32 %v5440_v32, %v5469_v39  ;;  %v301_v16 = vadd.f32 %v5452_v37, %v5463_v18 }
 0x1af   :  { %v816_v9 = vadd.f32 %v815_v52, %v5544_v14  ;;  %v5560_v15 = vadd.f32 %v344_v24, %v5469_v39  ;;  %v817_v19 = vpop.f32.mrb[17].mxu1  ;;  %v303_v52 = vadd.f32 %v5457_v27, %v5469_v39 }
 0x1b0   :  { %7451 = vst [vmem:[#allocation110_spill] sm:$0xff] %v5554_v12  ;;  %v818_v11 = vadd.f32 %v817_v19, %v5551_v10  ;;  %v819_v42 = vpop.f32.mrb[18].mxu1 }
 0x1b1   :  { %7452 = vst [vmem:[#allocation111_spill] sm:$0xff] %v5560_v15  ;;  %v865_v12 = vadd.f32 %v816_v9, %v295_v17  ;;  %v820_v8 = vadd.f32 %v819_v42, %v5544_v14  ;;  %v821_v7 = vpop.f32.mrb[19].mxu1  ;;  %v348_v44 = vpop.f32.mrb[18].mxu0 }
 0x1b2   :  { %v879_v24 = vadd.f32 %v818_v11, %v297_v13  ;;  %v822_v15 = vadd.f32 %v821_v7, %v5551_v10  ;;  %v5572_v6 = vadd.f32 %v348_v44, %v5463_v18  ;;  %v350_v32 = vpop.f32.mrb[19].mxu0 }
 0x1b3   :  { %v3419_v19 = vmul.f32 -1.442695, %v865_v12  ;;  %v866_v5 = vadd.f32 %v820_v8, %v301_v16  ;;  %v5575_v4 = vadd.f32 %v350_v32, %v5469_v39 }
 0x1b4   :  { %7453 = vst [vmem:[#allocation112_spill] sm:$0xff] %v5572_v6  ;;  %v880_v37 = vadd.f32 %v822_v15, %v303_v52  ;;  %v3421_v12 = vmul.f32 -1.442695, %v879_v24  ;;  %v5917_v6 = vld [vmem:[#allocation11 + $0x80] ss:$16 sps:$4 sm:$0xff]  }
 0x1b5   :  { %7454 = vst [vmem:[#allocation113_spill] sm:$0xff] %v5575_v4  ;;  %4148 = vpow2.f32 %v3419_v19  ;;  %v3420_v42 = vmul.f32 -1.442695, %v866_v5  ;;  %v354_v9 = vpop.f32.mrb[20].mxu0  ;;  %v5914_v4 = vld [vmem:[#allocation11 + $0x8c] ss:$16 sps:$4 sm:$0xff]  }
 0x1b6   :  { %v5578_v17 = vadd.f32 %v354_v9, %v5463_v18  ;;  %v356_v27 = vpop.f32.mrb[21].mxu0  ;;  %v3422_v15 = vmul.f32 -1.442695, %v880_v37 }
 0x1b7   :  { %4150 = vpow2.f32 %v3420_v42  ;;  %v5581_v7 = vadd.f32 %v356_v27, %v5469_v39 }
 0x1b8   :  { %7455 = vst [vmem:[#allocation114_spill] sm:$0xff] %v5578_v17  ;;  %4152 = vpow2.f32 %v3421_v12  ;;  %v5911_v17 = vld [vmem:[#allocation11 + $0x84] ss:$16 sps:$4 sm:$0xff]  }
 0x1b9   :  { %7456 = vst [vmem:[#allocation115_spill] sm:$0xff] %v5581_v7  ;;  %v360_v11 = vpop.f32.mrb[22].mxu0  ;;  %4154 = vpow2.f32 %v3422_v15 }
 0x1ba   :  { %v5584_v13 = vadd.f32 %v360_v11, %v5463_v18  ;;  %v362_v8 = vpop.f32.mrb[23].mxu0 }
 0x1bb   :  { %v5587_v16 = vadd.f32 %v362_v8, %v5469_v39 }
 0x1bc   :  { %7457 = vst [vmem:[#allocation116_spill] sm:$0xff] %v5584_v13 }
 0x1bd   :  { %7458 = vst [vmem:[#allocation117_spill] sm:$0xff] %v5587_v16  ;;  %v366_v5 = vpop.f32.mrb[24].mxu0 }
 0x1be   :  { %v5590_v44 = vadd.f32 %v366_v5, %v5463_v18  ;;  %v368_v52 = vpop.f32.mrb[25].mxu0 }
 0x1bf   :  { %v4149_v32 = vpop.eup %4148  ;;  %v5593_v19 = vadd.f32 %v368_v52, %v5469_v39 }
 0x1c0   :  { %7459 = vst [vmem:[#allocation118_spill] sm:$0xff] %v5590_v44  ;;  %v873_v9 = vadd.f32 1.0, %v4149_v32 }
 0x1c1   :  { %7460 = vst [vmem:[#allocation119_spill] sm:$0xff] %v5593_v19  ;;  %v4151_v42 = vpop.eup %4150  ;;  %v372_v27 = vpop.f32.mrb[26].mxu0 }
 0x1c2   :  { %v5596_v24 = vadd.f32 %v372_v27, %v5463_v18  ;;  %v374_v11 = vpop.f32.mrb[27].mxu0  ;;  %v874_v8 = vadd.f32 1.0, %v4151_v42  ;;  %4156 = vrcp.f32 %v873_v9  ;;  %v4153_v15 = vpop.eup %4152  ;;  %v5612_v42 = vrot.slane %v5531_v22, %v5438_v34 }
 0x1c3   :  { %v5599_v37 = vadd.f32 %v374_v11, %v5469_v39  ;;  %v4155_v9 = vpop.eup %4154 }
 0x1c4   :  { %7461 = vst [vmem:[#allocation120_spill] sm:$0xff] %v5596_v24  ;;  %4158 = vrcp.f32 %v874_v8  ;;  %v888_v8 = vadd.f32 1.0, %v4155_v9 }
 0x1c5   :  { %7462 = vst [vmem:[#allocation121_spill] sm:$0xff] %v5599_v37  ;;  %v378_v5 = vpop.f32.mrb[28].mxu0 }
 0x1c6   :  { %v5602_v44 = vadd.f32 %v378_v5, %v5463_v18  ;;  %v380_v12 = vpop.f32.mrb[29].mxu0  ;;  %v887_v5 = vadd.f32 1.0, %v4153_v15 }
 0x1c7   :  { %v5605_v52 = vadd.f32 %v380_v12, %v5469_v39 }
 0x1c8   :  { %7463 = vst [vmem:[#allocation122_spill] sm:$0xff] %v5602_v44  ;;  %4160 = vrcp.f32 %v887_v5 }
 0x1c9   :  { %7464 = vst [vmem:[#allocation123_spill] sm:$0xff] %v5605_v52  ;;  %v384_v32 = vpop.f32.mrb[30].mxu0  ;;  %4162 = vrcp.f32 %v888_v8  ;;  %v7500_v8 = vld [vmem:[#allocation59_spill] sm:$0xff] }
 0x1ca   :  { %v5608_v27 = vadd.f32 %v384_v32, %v5463_v18  ;;  %v386_v24 = vpop.f32.mrb[31].mxu0  ;;  %v456_v18 = vadd.f32 %v5444_v29, %v5455_v47 }
 0x1cb   :  { %v5615_v11 = vadd.f32 %v386_v24, %v5469_v39  ;;  %v461_v39 = vadd.f32 %v5442_v0, %v5455_v47 }
 0x1cc   :  { %7465 = vst [vmem:[#allocation124_spill] sm:$0xff] %v5608_v27  ;;  %v4157_v37 = vpop.eup %4156 }
 0x1cd   :  { %7466 = vst [vmem:[#allocation125_spill] sm:$0xff] %v5615_v11  ;;  %v858_v44 = vpop.f32.mrb[32].mxu0 }
 0x1ce   :  { %v859_v12 = vadd.f32 %v858_v44, %v5612_v42  ;;  %v3750_v52 = vpop.f32.mrb[33].mxu0  ;;  %v4159_v16 = vpop.eup %4158 }
 0x1cf   :  { %v861_v19 = vpop.f32.mrb[34].mxu0 }
 0x1d0   :  { %v893_v32 = vmul.f32 %v4157_v37, %v859_v12  ;;  %v862_v22 = vadd.f32 %v861_v19, %v5612_v42  ;;  %v3751_v27 = vpop.f32.mrb[35].mxu0 }
 0x1d2   :  { %v895_v24 = vadd.f32 %v893_v32, %v456_v18  ;;  %v894_v15 = vmul.f32 %v4159_v16, %v862_v22  ;;  %v4161_v52 = vpop.eup %4160  ;;  %v5631_v16 = vld [vmem:[#allocation8] ss:$12 sps:$4 sm:$0xff]   ;;  %v7501_v18 = vld [vmem:[#allocation60_spill] sm:$0xff]  ;;  %v7502_v32 = vld [vmem:[#allocation61_spill] sm:$0xff] }
 0x1d3   :  { %v4163_v9 = vpop.eup %4162  ;;  %v899_v11 = vsub.f32 1.0, %v4161_v52  ;;  %v903_v37 = vmul.f32 %v4161_v52, %v5195_v49  ;;  %v5637_v49 = vld [vmem:[#allocation8 + $0x1c] ss:$12 sps:$4 sm:$0xff]   ;;  %v7503_v22 = vld [vmem:[#allocation62_spill] sm:$0xff] }
 0x1d4   :  { %4164 = vtanh.f32 %v895_v24  ;;  %v896_v44 = vadd.f32 %v894_v15, %v461_v39  ;;  %v900_v29 = vsub.f32 1.0, %v4163_v9  ;;  %v904_v12 = vmul.f32 %v4163_v9, %v5200_v50  ;;  %v7504_v39 = vld [vmem:[#allocation63_spill] sm:$0xff]  ;;  %v7505_v24 = vld [vmem:[#allocation64_spill] sm:$0xff]  ;;  %v7506_v15 = vld [vmem:[#allocation65_spill] sm:$0xff] }
 0x1d5   :  { %v7467_v50 = vmov 0   ;;  %v7508_v52 = vld [vmem:[#allocation67_spill] sm:$0xff]  ;;  %v7509_v9 = vld [vmem:[#allocation68_spill] sm:$0xff] }
 0x1d6   :  { %4166 = vtanh.f32 %v896_v44  ;;  %v7507_v44 = vld [vmem:[#allocation66_spill] sm:$0xff] }
 0x1de   :  { %v4165_v13 = vpop.eup %4164 }
 0x1df   :  { %v901_v5 = vmul.f32 %v4165_v13, %v899_v11  ;;  %v5634_v13 = vld [vmem:[#allocation8 + $0x8] ss:$12 sps:$4 sm:$0xff]   ;;  %v5644_v11 = vld [vmem:[#allocation8 + $0x18] ss:$12 sps:$4 sm:$0xff]  }
 0x1e0   :  { %v4167_v19 = vpop.eup %4166 }
 0x1e1   :  { %v902_v27 = vmul.f32 %v4167_v19, %v900_v29  ;;  %v5625_v7 = vadd.f32 %v903_v37, %v901_v5  ;;  %v7510_v29 = vld [vmem:[#allocation69_spill] sm:$0xff]  ;;  %v7511_v5 = vld [vmem:[#allocation70_spill] sm:$0xff]  ;;  %v7512_v37 = vld [vmem:[#allocation71_spill] sm:$0xff] }
 0x1e2   :  { %v7513_v19 = vld [vmem:[#allocation74_spill] sm:$0xff] }
 0x1e3   :  { %v5627_v0 = vadd.f32 %v904_v12, %v902_v27  ;;  %v7514_v27 = vld [vmem:[#allocation75_spill] sm:$0xff]  ;;  %v7515_v12 = vld [vmem:[#allocation76_spill] sm:$0xff] }
 0x1e5   :  { %v907_v47 = vpack.c.bf16 %v5627_v0, %v5625_v7 }
 0x1e7   :  { %1283 = vmatmul.mubr.bf16.vlgmr.msra.gmra.mrb[20].mxu1 %v907_v47  ;;  %1326 = vmatmul.mubr.bf16.vlgmr.msra.gmra.mrb[36].mxu0 %v907_v47 }
 0x1e8   :  { %1375 = vmatpush1.bf16.msra.mxu1 %v5631_v16  ;;  %3753 = vmatpush3.bf16.msra.mxu0 %v5634_v13 }
 0x1e9   :  { %1376 = vmatprep.subr.bf16.mxu1 %v5637_v49  ;;  %3754 = vmatprep.subr.bf16.mxu0 %v7420_v53 }
 0x1ea   :  { %1406 = vmatprep.mubr.bf16.mxu1 %v7467_v50  ;;  %3768 = vmatprep.mubr.msk.bf16.mxu0 %vm4940_vm0, %v7420_v53 }
 0x1ec   :  { %1377 = vmatpush1.bf16.msra.mxu1 %v5644_v11  ;;  %3755 = vmatpush3.bf16.msra.mxu0 %v5128_v21  ;;  %v7469_v21 = vld [vmem:[#allocation28_spill] sm:$0xff] }
 0x1ed   :  { %1378 = vmatprep.subr.bf16.mxu1 %v5126_v20  ;;  %3756 = vmatprep.subr.bf16.mxu0 %v7420_v53  ;;  %v7468_v20 = vld [vmem:[#allocation27_spill] sm:$0xff] }
 0x1f0   :  { %1379 = vmatpush1.bf16.msra.mxu1 %v5131_v23  ;;  %3757 = vmatpush3.bf16.msra.mxu0 %v5136_v26  ;;  %v7470_v23 = vld [vmem:[#allocation29_spill] sm:$0xff]  ;;  %v7472_v26 = vld [vmem:[#allocation31_spill] sm:$0xff] }
 0x1f1   :  { %1380 = vmatprep.subr.bf16.mxu1 %v5134_v25  ;;  %3758 = vmatprep.subr.bf16.mxu0 %v7420_v53  ;;  %v7471_v25 = vld [vmem:[#allocation30_spill] sm:$0xff] }
 0x1f4   :  { %1381 = vmatpush1.bf16.msra.mxu1 %v5142_v28  ;;  %3759 = vmatpush3.bf16.msra.mxu0 %v5150_v31  ;;  %v7473_v28 = vld [vmem:[#allocation32_spill] sm:$0xff]  ;;  %v7475_v31 = vld [vmem:[#allocation34_spill] sm:$0xff] }
 0x1f5   :  { %1382 = vmatprep.subr.bf16.mxu1 %v5148_v30  ;;  %3760 = vmatprep.subr.bf16.mxu0 %v7420_v53  ;;  %v7474_v30 = vld [vmem:[#allocation33_spill] sm:$0xff] }
 0x1f8   :  { %1383 = vmatpush1.bf16.msra.mxu1 %v5155_v33  ;;  %3761 = vmatpush3.bf16.msra.mxu0 %v5162_v36  ;;  %v7476_v33 = vld [vmem:[#allocation35_spill] sm:$0xff]  ;;  %v7478_v36 = vld [vmem:[#allocation37_spill] sm:$0xff] }
 0x1f9   :  { %1384 = vmatprep.subr.bf16.mxu1 %v5160_v35  ;;  %3762 = vmatprep.subr.bf16.mxu0 %v7420_v53  ;;  %v7477_v35 = vld [vmem:[#allocation36_spill] sm:$0xff] }
 0x1fc   :  { %1385 = vmatpush1.bf16.msra.mxu1 %v5168_v38  ;;  %3763 = vmatpush3.bf16.msra.mxu0 %v5174_v41  ;;  %v7479_v38 = vld [vmem:[#allocation38_spill] sm:$0xff]  ;;  %v7481_v41 = vld [vmem:[#allocation40_spill] sm:$0xff] }
 0x1fd   :  { %1386 = vmatprep.subr.bf16.mxu1 %v5172_v40  ;;  %3764 = vmatprep.subr.bf16.mxu0 %v7420_v53  ;;  %v7480_v40 = vld [vmem:[#allocation39_spill] sm:$0xff]  ;;  %7543 = vst [vmem:[#allocation40_spill] sm:$0xff] %v5911_v17 }
 0x200   :  { %1387 = vmatpush1.bf16.msra.mxu1 %v5179_v43  ;;  %3765 = vmatpush3.bf16.msra.mxu0 %v5185_v46  ;;  %v7482_v43 = vld [vmem:[#allocation41_spill] sm:$0xff]  ;;  %v7484_v46 = vld [vmem:[#allocation43_spill] sm:$0xff] }
 0x201   :  { %1388 = vmatprep.subr.bf16.mxu1 %v5183_v45  ;;  %3766 = vmatprep.subr.bf16.mxu0 %v7420_v53  ;;  %v7483_v45 = vld [vmem:[#allocation42_spill] sm:$0xff]  ;;  %7544 = vst [vmem:[#allocation41_spill] sm:$0xff] %v5914_v4 }
 0x202   :  { %7545 = vst [vmem:[#allocation42_spill] sm:$0xff] %v5917_v6 }
 0x204   :  { %1389 = vmatpush1.bf16.msra.mxu1 %v5190_v48  ;;  %3767 = vmatpush3.bf16.msra.mxu0 %v5204_v51  ;;  %v7485_v48 = vld [vmem:[#allocation44_spill] sm:$0xff]  ;;  %v7486_v51 = vld [vmem:[#allocation45_spill] sm:$0xff] }
 0x205   :  { %1502 = vmatprep.subr.bf16.mxu1 %v5227_v54  ;;  %1545 = vmatprep.subr.bf16.mxu0 %v5229_v55  ;;  %v7487_v54 = vld [vmem:[#allocation46_spill] sm:$0xff]  ;;  %v7488_v55 = vld [vmem:[#allocation47_spill] sm:$0xff] }
 0x207   :  { %1407 = vmatmul.mubr.bf16.vlgmr.msra.gmra.mrb[24].mxu1 %v907_v47  ;;  %3769 = vmatmul.mubr.bf16.vlgmr.msra.gmra.mrb[40].mxu0 %v907_v47  ;;  %v7516_v47 = vld [vmem:[#allocation77_spill] sm:$0xff] }
 0x208   :  { %1503 = vmatpush1.bf16.msra.mxu1 %v5231_v56  ;;  %1546 = vmatpush1.bf16.msra.mxu0 %v5233_v57  ;;  %v7489_v56 = vld [vmem:[#allocation48_spill] sm:$0xff]  ;;  %v7490_v57 = vld [vmem:[#allocation49_spill] sm:$0xff] }
 0x209   :  { %1504 = vmatprep.subr.bf16.mxu1 %v5239_v58  ;;  %1547 = vmatprep.subr.bf16.mxu0 %v5241_v59  ;;  %v7491_v58 = vld [vmem:[#allocation50_spill] sm:$0xff]  ;;  %v7492_v59 = vld [vmem:[#allocation51_spill] sm:$0xff] }
 0x20c   :  { %1505 = vmatpush1.bf16.msra.mxu1 %v5243_v60  ;;  %1548 = vmatpush1.bf16.msra.mxu0 %v5245_v61  ;;  %v7493_v60 = vld [vmem:[#allocation52_spill] sm:$0xff]  ;;  %v7494_v61 = vld [vmem:[#allocation53_spill] sm:$0xff] }
 0x20d   :  { %1506 = vmatprep.subr.bf16.mxu1 %v5251_v62  ;;  %1549 = vmatprep.subr.bf16.mxu0 %v5253_v63  ;;  %v7495_v62 = vld [vmem:[#allocation54_spill] sm:$0xff]  ;;  %v7496_v63 = vld [vmem:[#allocation55_spill] sm:$0xff] }
 0x210   :  { %1507 = vmatpush1.bf16.msra.mxu1 %v5255_v1  ;;  %1550 = vmatpush1.bf16.msra.mxu0 %v5257_v2  ;;  %v7497_v1 = vld [vmem:[#allocation56_spill] sm:$0xff]  ;;  %v7498_v2 = vld [vmem:[#allocation57_spill] sm:$0xff] }
 0x211   :  { %1508 = vmatprep.subr.bf16.mxu1 %v5263_v3  ;;  %1551 = vmatprep.subr.bf16.mxu0 %v7468_v20  ;;  %v7499_v3 = vld [vmem:[#allocation58_spill] sm:$0xff] }
 0x212   :  { %v7517_v20 = vld [vmem:[#allocation78_spill] sm:$0xff] }
 0x214   :  { %1509 = vmatpush1.bf16.msra.mxu1 %v7469_v21  ;;  %1552 = vmatpush1.bf16.msra.mxu0 %v7470_v23  ;;  %v7518_v21 = vld [vmem:[#allocation79_spill] sm:$0xff]  ;;  %v5736_v23 = vld [vmem:[#allocation8 + $0x4] ss:$12 sps:$4 sm:$0xff]  }
 0x215   :  { %1510 = vmatprep.subr.bf16.mxu1 %v7471_v25  ;;  %1553 = vmatprep.subr.bf16.mxu0 %v7472_v26  ;;  %7519 = vst [vmem:[#allocation27_spill] sm:$0xff] %v5736_v23  ;;  %v631_v25 = vld [vmem:[#allocation13] sm:$0xf]  ;;  %v7520_v26 = vld [vmem:[#allocation81_spill] sm:$0xff] }
 0x218   :  { %1511 = vmatpush1.bf16.msra.mxu1 %v7473_v28  ;;  %1554 = vmatpush1.bf16.msra.mxu0 %v7474_v30  ;;  %v5741_v28 = vrot.slane %v631_v25, %v7520_v26 }
 0x219   :  { %1512 = vmatprep.subr.bf16.mxu1 %v7475_v31  ;;  %1555 = vmatprep.subr.bf16.mxu0 %v7476_v33  ;;  %v7522_v33 = vld [vmem:[#allocation82_spill] sm:$0xff] }
 0x21a   :  { %7521 = vst [vmem:[#allocation28_spill] sm:$0xff] %v5741_v28 }
 0x21c   :  { %1513 = vmatpush1.bf16.msra.mxu1 %v7477_v35  ;;  %1556 = vmatpush1.bf16.msra.mxu0 %v7478_v36  ;;  %v5744_v35 = vrot.slane %v631_v25, %v7522_v33 }
 0x21d   :  { %1514 = vmatprep.subr.bf16.mxu1 %v7479_v38  ;;  %1557 = vmatprep.subr.bf16.mxu0 %v7480_v40 }
 0x21e   :  { %7523 = vst [vmem:[#allocation29_spill] sm:$0xff] %v5744_v35 }
 0x220   :  { %1515 = vmatpush1.bf16.msra.mxu1 %v7481_v41  ;;  %1558 = vmatpush1.bf16.msra.mxu0 %v7482_v43 }
 0x221   :  { %1516 = vmatprep.subr.bf16.mxu1 %v7483_v45  ;;  %1559 = vmatprep.subr.bf16.mxu0 %v7484_v46 }
 0x224   :  { %1517 = vmatpush1.bf16.msra.mxu1 %v7485_v48  ;;  %1560 = vmatpush1.bf16.msra.mxu0 %v7486_v51 }
 0x225   :  { %1518 = vmatprep.subr.bf16.mxu1 %v7487_v54  ;;  %1561 = vmatprep.subr.bf16.mxu0 %v7488_v55 }
 0x228   :  { %1519 = vmatpush1.bf16.msra.mxu1 %v7489_v56  ;;  %1562 = vmatpush1.bf16.msra.mxu0 %v7490_v57 }
 0x229   :  { %1520 = vmatprep.subr.bf16.mxu1 %v7491_v58  ;;  %1563 = vmatprep.subr.bf16.mxu0 %v7492_v59 }
 0x22c   :  { %1521 = vmatpush1.bf16.msra.mxu1 %v7493_v60  ;;  %1564 = vmatpush1.bf16.msra.mxu0 %v7494_v61 }
 0x22d   :  { %1522 = vmatprep.subr.bf16.mxu1 %v7495_v62  ;;  %1565 = vmatprep.subr.bf16.mxu0 %v7496_v63  ;;  %v7524_v63 = vld [vmem:[#allocation80_spill] sm:$0xff] }
 0x230   :  { %1523 = vmatpush1.bf16.msra.mxu1 %v7497_v1  ;;  %1566 = vmatpush1.bf16.msra.mxu0 %v7498_v2  ;;  %v924_v1 = vsub.s32 3, %v7524_v63 }
 0x231   :  { %1524 = vmatprep.subr.bf16.mxu1 %v7499_v3  ;;  %1567 = vmatprep.subr.bf16.mxu0 %v7500_v8 }
 0x232   :  { %v5751_v3 = vrot.slane %v631_v25, %v924_v1 }
 0x234   :  { %1525 = vmatpush1.bf16.msra.mxu1 %v7501_v18  ;;  %1568 = vmatpush1.bf16.msra.mxu0 %v7502_v32  ;;  %7525 = vst [vmem:[#allocation30_spill] sm:$0xff] %v5751_v3  ;;  %v5754_v18 = vrot.slane %v631_v25, %v5438_v34 }
 0x235   :  { %1526 = vmatprep.subr.bf16.mxu1 %v7503_v22  ;;  %1569 = vmatprep.subr.bf16.mxu0 %v7504_v39 }
 0x236   :  { %7526 = vst [vmem:[#allocation31_spill] sm:$0xff] %v5754_v18 }
 0x238   :  { %1527 = vmatpush1.bf16.msra.mxu1 %v7505_v24  ;;  %1570 = vmatpush1.bf16.msra.mxu0 %v7506_v15 }
 0x239   :  { %1528 = vmatprep.subr.bf16.mxu1 %v7507_v44  ;;  %1571 = vmatprep.subr.bf16.mxu0 %v7508_v52 }
 0x23c   :  { %1529 = vmatpush1.bf16.msra.mxu1 %v7509_v9  ;;  %1572 = vmatpush1.bf16.msra.mxu0 %v7510_v29 }
 0x23d   :  { %1530 = vmatprep.subr.bf16.mxu1 %v7511_v5  ;;  %1573 = vmatprep.subr.bf16.mxu0 %v7512_v37 }
 0x240   :  { %1531 = vmatpush1.bf16.msra.mxu1 %v7513_v19  ;;  %1574 = vmatpush1.bf16.msra.mxu0 %v7514_v27 }
 0x241   :  { %1532 = vmatprep.subr.bf16.mxu1 %v7515_v12  ;;  %1575 = vmatprep.subr.bf16.mxu0 %v7516_v47 }
 0x244   :  { %1533 = vmatpush1.bf16.msra.mxu1 %v7517_v20  ;;  %1576 = vmatpush1.bf16.msra.mxu0 %v7518_v21 }
 0x245   :  { %1626 = vmatprep.subr.bf16.mxu1 %v5736_v23  ;;  %3772 = vmatprep.subr.bf16.mxu0 %v7420_v53 }
 0x2ba   :  { %v1284_v30 = vpop.f32.mrb[20].mxu1  ;;  %v1327_v31 = vpop.f32.mrb[36].mxu0 }
 0x2bb   :  { %v1285_v36 = vadd.f32 %v1284_v30, %v5741_v28  ;;  %v1286_v38 = vpop.f32.mrb[21].mxu1  ;;  %v1329_v40 = vpop.f32.mrb[37].mxu0  ;;  %v1328_v15 = vadd.f32 %v1327_v31, %v5754_v18 }
 0x2bc   :  { %v1288_v41 = vpop.f32.mrb[22].mxu1  ;;  %v1331_v43 = vpop.f32.mrb[38].mxu0  ;;  %v1287_v54 = vadd.f32 %v1286_v38, %v5744_v35  ;;  %v1330_v22 = vadd.f32 %v1329_v40, %v5751_v3 }
 0x2bd   :  { %v3487_v45 = vmul.f32 -1.442695, %v1285_v36  ;;  %v1289_v46 = vadd.f32 %v1288_v41, %v5741_v28  ;;  %v1290_v48 = vpop.f32.mrb[23].mxu1  ;;  %v1333_v51 = vpop.f32.mrb[39].mxu0  ;;  %v1332_v26 = vadd.f32 %v1331_v43, %v5754_v18 }
 0x2be   :  { %v1291_v56 = vadd.f32 %v1290_v48, %v5744_v35  ;;  %v3489_v57 = vmul.f32 -1.442695, %v1287_v54  ;;  %v1334_v52 = vadd.f32 %v1333_v51, %v5751_v3 }
 0x2bf   :  { %4168 = vpow2.f32 %v3487_v45  ;;  %v3488_v55 = vmul.f32 -1.442695, %v1289_v46  ;;  %v7527_v46 = vld [vmem:[#allocation85_spill] sm:$0xff] }
 0x2c0   :  { %v3490_v58 = vmul.f32 -1.442695, %v1291_v56 }
 0x2c1   :  { %4170 = vpow2.f32 %v3488_v55  ;;  %v7528_v55 = vld [vmem:[#allocation86_spill] sm:$0xff] }
 0x2c2   :  { %4172 = vpow2.f32 %v3489_v57 }
 0x2c3   :  { %4174 = vpow2.f32 %v3490_v58 }
 0x2c9   :  { %v4169_v59 = vpop.eup %4168 }
 0x2ca   :  { %v1342_v60 = vadd.f32 1.0, %v4169_v59  ;;  %v7529_v59 = vld [vmem:[#allocation89_spill] sm:$0xff] }
 0x2cb   :  { %v4171_v61 = vpop.eup %4170 }
 0x2cc   :  { %4176 = vrcp.f32 %v1342_v60  ;;  %v1343_v62 = vadd.f32 1.0, %v4171_v61  ;;  %v4173_v2 = vpop.eup %4172  ;;  %v7530_v61 = vld [vmem:[#allocation90_spill] sm:$0xff] }
 0x2cd   :  { %v4175_v8 = vpop.eup %4174  ;;  %v1354_v32 = vadd.f32 1.0, %v4173_v2 }
 0x2ce   :  { %4178 = vrcp.f32 %v1343_v62  ;;  %v1355_v39 = vadd.f32 1.0, %v4175_v8 }
 0x2cf   :  { %4180 = vrcp.f32 %v1354_v32 }
 0x2d0   :  { %4182 = vrcp.f32 %v1355_v39 }
 0x2d6   :  { %v4177_v24 = vpop.eup %4176 }
 0x2d7   :  { %v1360_v44 = vmul.f32 %v4177_v24, %v1330_v22 }
 0x2d8   :  { %v4179_v9 = vpop.eup %4178 }
 0x2d9   :  { %v1362_v29 = vadd.f32 %v1360_v44, %v1328_v15  ;;  %v1361_v30 = vmul.f32 %v4179_v9, %v1334_v52  ;;  %v4181_v63 = vpop.eup %4180  ;;  %v7531_v44 = vld [vmem:[#allocation72_spill] sm:$0xff] }
 0x2da   :  { %v1408_v33 = vpop.f32.mrb[24].mxu1  ;;  %v1451_v34 = vpop.f32.mrb[40].mxu0  ;;  %v1366_v32 = vsub.f32 1.0, %v4181_v63  ;;  %v1370_v52 = vmul.f32 %v4181_v63, %v7531_v44 }
 0x2db   :  { %4184 = vtanh.f32 %v1362_v29  ;;  %v1363_v25 = vadd.f32 %v1361_v30, %v1332_v26  ;;  %v1409_v36 = vadd.f32 %v1408_v33, %v5544_v14  ;;  %v1410_v38 = vpop.f32.mrb[25].mxu1  ;;  %v3770_v40 = vpop.f32.mrb[41].mxu0  ;;  %v7532_v26 = vld [vmem:[#allocation73_spill] sm:$0xff] }
 0x2dc   :  { %v1411_v31 = vadd.f32 %v1410_v38, %v5551_v10  ;;  %v1412_v41 = vpop.f32.mrb[26].mxu1  ;;  %v1454_v45 = vpop.f32.mrb[42].mxu0 }
 0x2dd   :  { %4186 = vtanh.f32 %v1363_v25  ;;  %v1458_v48 = vadd.f32 %v1409_v36, %v7527_v46  ;;  %v1413_v51 = vadd.f32 %v1412_v41, %v5544_v14  ;;  %v1414_v43 = vpop.f32.mrb[27].mxu1  ;;  %v3771_v54 = vpop.f32.mrb[43].mxu0 }
 0x2de   :  { %v1472_v56 = vadd.f32 %v1411_v31, %v7528_v55  ;;  %v1415_v57 = vadd.f32 %v1414_v43, %v5551_v10  ;;  %v4183_v2 = vpop.eup %4182  ;;  %v1452_v43 = vadd.f32 %v1451_v34, %v5612_v42 }
 0x2df   :  { %v3491_v58 = vmul.f32 -1.442695, %v1458_v48  ;;  %v1459_v60 = vadd.f32 %v1413_v51, %v7529_v59  ;;  %v1367_v24 = vsub.f32 1.0, %v4183_v2  ;;  %v1371_v30 = vmul.f32 %v4183_v2, %v7532_v26  ;;  %v7534_v59 = vld [vmem:[#allocation84_spill] sm:$0xff]  ;;  %v5810_v26 = vld [vmem:[#allocation8 + $0x38] ss:$12 sps:$4 sm:$0xff]  }
 0x2e0   :  { %v1473_v62 = vadd.f32 %v1415_v57, %v7530_v61  ;;  %v3493_v8 = vmul.f32 -1.442695, %v1472_v56  ;;  %v1455_v57 = vadd.f32 %v1454_v45, %v5612_v42 }
 0x2e1   :  { %4188 = vpow2.f32 %v3491_v58  ;;  %v3492_v1 = vmul.f32 -1.442695, %v1459_v60 }
 0x2e2   :  { %v3494_v39 = vmul.f32 -1.442695, %v1473_v62  ;;  %v7535_v62 = vld [vmem:[#allocation83_spill] sm:$0xff] }
 0x2e3   :  { %4190 = vpow2.f32 %v3492_v1 }
 0x2e4   :  { %4192 = vpow2.f32 %v3493_v8 }
 0x2e5   :  { %v4185_v22 = vpop.eup %4184  ;;  %4194 = vpow2.f32 %v3494_v39 }
 0x2e6   :  { %v1368_v15 = vmul.f32 %v4185_v22, %v1366_v32 }
 0x2e7   :  { %v4187_v9 = vpop.eup %4186 }
 0x2e8   :  { %v1369_v29 = vmul.f32 %v4187_v9, %v1367_v24  ;;  %v5770_v33 = vadd.f32 %v1370_v52, %v1368_v15 }
 0x2ea   :  { %v5772_v25 = vadd.f32 %v1371_v30, %v1369_v29  ;;  %v5807_v29 = vld [vmem:[#allocation8 + $0x30] ss:$12 sps:$4 sm:$0xff]   ;;  %v5813_v30 = vld [vmem:[#allocation8 + $0x4c] ss:$12 sps:$4 sm:$0xff]  }
 0x2eb   :  { %v4189_v36 = vpop.eup %4188 }
 0x2ec   :  { %v1466_v38 = vadd.f32 1.0, %v4189_v36  ;;  %v5776_v40 = vpack.c.bf16 %v5772_v25, %v5770_v33  ;;  %v5817_v36 = vld [vmem:[#allocation8 + $0x48] ss:$12 sps:$4 sm:$0xff]  }
 0x2ed   :  { %v4191_v31 = vpop.eup %4190 }
 0x2ee   :  { %7533 = vst [vmem:[#allocation32_spill] sm:$0xff] %v5776_v40  ;;  %4196 = vrcp.f32 %v1466_v38  ;;  %v1467_v41 = vadd.f32 1.0, %v4191_v31  ;;  %1534 = vmatprep.mubr.bf16.mxu1 %v5776_v40  ;;  %1577 = vmatprep.mubr.bf16.mxu0 %v5776_v40  ;;  %v4193_v46 = vpop.eup %4192  ;;  %v5820_v38 = vld [vmem:[#allocation8 + $0x50] ss:$12 sps:$4 sm:$0xff]  }
 0x2ef   :  { %v4195_v48 = vpop.eup %4194  ;;  %v1480_v51 = vadd.f32 1.0, %v4193_v46  ;;  %v5823_v31 = vld [vmem:[#allocation8 + $0x64] ss:$12 sps:$4 sm:$0xff]   ;;  %v5830_v46 = vld [vmem:[#allocation8 + $0x68] ss:$12 sps:$4 sm:$0xff]  }
 0x2f0   :  { %4198 = vrcp.f32 %v1467_v41  ;;  %v1481_v54 = vadd.f32 1.0, %v4195_v48  ;;  %v5827_v41 = vld [vmem:[#allocation8 + $0x60] ss:$12 sps:$4 sm:$0xff]   ;;  %v5833_v48 = vld [vmem:[#allocation8 + $0x7c] ss:$12 sps:$4 sm:$0xff]  }
 0x2f1   :  { %4200 = vrcp.f32 %v1480_v51  ;;  %v5837_v51 = vld [vmem:[#allocation8 + $0x78] ss:$12 sps:$4 sm:$0xff]   ;;  %v5908_v40 = vld [vmem:[#allocation11 + $0x68] ss:$16 sps:$4 sm:$0xff]  }
 0x2f2   :  { %4202 = vrcp.f32 %v1481_v54  ;;  %v5843_v54 = vld [vmem:[#allocation8 + $0x94] ss:$12 sps:$4 sm:$0xff]   ;;  %7542 = vst [vmem:[#allocation39_spill] sm:$0xff] %v5908_v40 }
 0x2f8   :  { %v4197_v55 = vpop.eup %4196 }
 0x2f9   :  { %v1486_v56 = vmul.f32 %v4197_v55, %v1452_v43  ;;  %v5840_v43 = vld [vmem:[#allocation8 + $0x80] ss:$12 sps:$4 sm:$0xff]   ;;  %v5847_v55 = vld [vmem:[#allocation8 + $0x90] ss:$12 sps:$4 sm:$0xff]  }
 0x2fa   :  { %v4199_v58 = vpop.eup %4198 }
 0x2fb   :  { %v1488_v60 = vadd.f32 %v1486_v56, %v7534_v59  ;;  %v1487_v61 = vmul.f32 %v4199_v58, %v1455_v57  ;;  %v4201_v1 = vpop.eup %4200  ;;  %v5850_v56 = vld [vmem:[#allocation8 + $0x98] ss:$12 sps:$4 sm:$0xff]   ;;  %v5857_v58 = vld [vmem:[#allocation8 + $0xa8] ss:$12 sps:$4 sm:$0xff]   ;;  %v5860_v59 = vld [vmem:[#allocation8 + $0xb0] ss:$12 sps:$4 sm:$0xff]  }
 0x2fc   :  { %v4203_v2 = vpop.eup %4202  ;;  %v1492_v8 = vsub.f32 1.0, %v4201_v1  ;;  %v1496_v39 = vmul.f32 %v4201_v1, %v5625_v7  ;;  %v5800_v7 = vld [vmem:[#allocation8 + $0x20] ss:$12 sps:$4 sm:$0xff]   ;;  %v5875_v1 = vld [vmem:[#allocation11 + $0x24] ss:$16 sps:$4 sm:$0xff]  }
 0x2fd   :  { %4204 = vtanh.f32 %v1488_v60  ;;  %v1489_v63 = vadd.f32 %v1487_v61, %v7535_v62  ;;  %v1493_v34 = vsub.f32 1.0, %v4203_v2  ;;  %v1497_v45 = vmul.f32 %v4203_v2, %v5627_v0  ;;  %v5803_v0 = vld [vmem:[#allocation8 + $0x34] ss:$12 sps:$4 sm:$0xff]   ;;  %v5853_v57 = vld [vmem:[#allocation8 + $0xac] ss:$12 sps:$4 sm:$0xff]  }
 0x2fe   :  { %v5863_v60 = vld [vmem:[#allocation11 + $0x4] ss:$16 sps:$4 sm:$0xff]   ;;  %v5866_v61 = vld [vmem:[#allocation11 + $0xc] ss:$16 sps:$4 sm:$0xff]   ;;  %v5869_v62 = vld [vmem:[#allocation11] ss:$16 sps:$4 sm:$0xff]  }
 0x2ff   :  { %4206 = vtanh.f32 %v1489_v63  ;;  %v5872_v63 = vld [vmem:[#allocation11 + $0x8] ss:$16 sps:$4 sm:$0xff]   ;;  %v5878_v2 = vld [vmem:[#allocation11 + $0x2c] ss:$16 sps:$4 sm:$0xff]  }
 0x307   :  { %v4205_v32 = vpop.eup %4204 }
 0x308   :  { %v1494_v22 = vmul.f32 %v4205_v32, %v1492_v8  ;;  %v5881_v8 = vld [vmem:[#allocation11 + $0x20] ss:$16 sps:$4 sm:$0xff]   ;;  %v5884_v32 = vld [vmem:[#allocation11 + $0x28] ss:$16 sps:$4 sm:$0xff]  }
 0x309   :  { %v4207_v24 = vpop.eup %4206 }
 0x30a   :  { %v1495_v15 = vmul.f32 %v4207_v24, %v1493_v34  ;;  %v5786_v44 = vadd.f32 %v1496_v39, %v1494_v22  ;;  %v5887_v34 = vld [vmem:[#allocation11 + $0x44] ss:$16 sps:$4 sm:$0xff]   ;;  %v5890_v22 = vld [vmem:[#allocation11 + $0x4c] ss:$16 sps:$4 sm:$0xff]   ;;  %v5893_v39 = vld [vmem:[#allocation11 + $0x40] ss:$16 sps:$4 sm:$0xff]  }
 0x30b   :  { %7536 = vst [vmem:[#allocation33_spill] sm:$0xff] %v5890_v22  ;;  %7537 = vst [vmem:[#allocation34_spill] sm:$0xff] %v5893_v39  ;;  %v5896_v24 = vld [vmem:[#allocation11 + $0x48] ss:$16 sps:$4 sm:$0xff]  }
 0x30c   :  { %v5788_v52 = vadd.f32 %v1497_v45, %v1495_v15  ;;  %7538 = vst [vmem:[#allocation35_spill] sm:$0xff] %v5896_v24  ;;  %v5899_v15 = vld [vmem:[#allocation11 + $0x64] ss:$16 sps:$4 sm:$0xff]   ;;  %v5902_v45 = vld [vmem:[#allocation11 + $0x6c] ss:$16 sps:$4 sm:$0xff]  }
 0x30d   :  { %7539 = vst [vmem:[#allocation36_spill] sm:$0xff] %v5899_v15  ;;  %7540 = vst [vmem:[#allocation37_spill] sm:$0xff] %v5902_v45 }
 0x30e   :  { %v1500_v9 = vpack.c.bf16 %v5788_v52, %v5786_v44 }
 0x310   :  { %1535 = vmatmul.mubr.bf16.vlgmr.msra.gmra.mrb[28].mxu1 %v1500_v9  ;;  %1578 = vmatmul.mubr.bf16.vlgmr.msra.gmra.mrb[44].mxu0 %v1500_v9 }
 0x311   :  { %1627 = vmatpush1.bf16.msra.mxu1 %v5631_v16  ;;  %3773 = vmatpush3.bf16.msra.mxu0 %v5634_v13 }
 0x312   :  { %1628 = vmatprep.subr.bf16.mxu1 %v5637_v49  ;;  %3774 = vmatprep.subr.bf16.mxu0 %v7420_v53 }
 0x313   :  { %1658 = vmatprep.mubr.bf16.mxu1 %v7467_v50  ;;  %3788 = vmatprep.mubr.msk.bf16.mxu0 %vm4940_vm0, %v7420_v53 }
 0x315   :  { %1629 = vmatpush1.bf16.msra.mxu1 %v5644_v11  ;;  %3775 = vmatpush3.bf16.msra.mxu0 %v5800_v7 }
 0x316   :  { %1630 = vmatprep.subr.bf16.mxu1 %v5803_v0  ;;  %3776 = vmatprep.subr.bf16.mxu0 %v7420_v53 }
 0x319   :  { %1631 = vmatpush1.bf16.msra.mxu1 %v5807_v29  ;;  %3777 = vmatpush3.bf16.msra.mxu0 %v5810_v26 }
 0x31a   :  { %1632 = vmatprep.subr.bf16.mxu1 %v5813_v30  ;;  %3778 = vmatprep.subr.bf16.mxu0 %v7420_v53 }
 0x31d   :  { %1633 = vmatpush1.bf16.msra.mxu1 %v5817_v36  ;;  %3779 = vmatpush3.bf16.msra.mxu0 %v5820_v38 }
 0x31e   :  { %1634 = vmatprep.subr.bf16.mxu1 %v5823_v31  ;;  %3780 = vmatprep.subr.bf16.mxu0 %v7420_v53 }
 0x321   :  { %1635 = vmatpush1.bf16.msra.mxu1 %v5827_v41  ;;  %3781 = vmatpush3.bf16.msra.mxu0 %v5830_v46 }
 0x322   :  { %1636 = vmatprep.subr.bf16.mxu1 %v5833_v48  ;;  %3782 = vmatprep.subr.bf16.mxu0 %v7420_v53 }
 0x325   :  { %1637 = vmatpush1.bf16.msra.mxu1 %v5837_v51  ;;  %3783 = vmatpush3.bf16.msra.mxu0 %v5840_v43 }
 0x326   :  { %1638 = vmatprep.subr.bf16.mxu1 %v5843_v54  ;;  %3784 = vmatprep.subr.bf16.mxu0 %v7420_v53 }
 0x329   :  { %1639 = vmatpush1.bf16.msra.mxu1 %v5847_v55  ;;  %3785 = vmatpush3.bf16.msra.mxu0 %v5850_v56 }
 0x32a   :  { %1640 = vmatprep.subr.bf16.mxu1 %v5853_v57  ;;  %3786 = vmatprep.subr.bf16.mxu0 %v7420_v53 }
 0x32d   :  { %1641 = vmatpush1.bf16.msra.mxu1 %v5857_v58  ;;  %3787 = vmatpush3.bf16.msra.mxu0 %v5860_v59 }
 0x32e   :  { %1754 = vmatprep.subr.bf16.mxu1 %v5863_v60  ;;  %1797 = vmatprep.subr.bf16.mxu0 %v5866_v61 }
 0x330   :  { %1659 = vmatmul.mubr.bf16.vlgmr.msra.gmra.mrb[32].mxu1 %v1500_v9  ;;  %3789 = vmatmul.mubr.bf16.vlgmr.msra.gmra.mrb[48].mxu0 %v1500_v9  ;;  %v5905_v9 = vld [vmem:[#allocation11 + $0x60] ss:$16 sps:$4 sm:$0xff]  }
 0x331   :  { %1755 = vmatpush1.bf16.msra.mxu1 %v5869_v62  ;;  %1798 = vmatpush1.bf16.msra.mxu0 %v5872_v63  ;;  %7541 = vst [vmem:[#allocation38_spill] sm:$0xff] %v5905_v9 }
 0x332   :  { %1756 = vmatprep.subr.bf16.mxu1 %v5875_v1  ;;  %1799 = vmatprep.subr.bf16.mxu0 %v5878_v2 }
 0x335   :  { %1757 = vmatpush1.bf16.msra.mxu1 %v5881_v8  ;;  %1800 = vmatpush1.bf16.msra.mxu0 %v5884_v32 }
 0x336   :  { %1758 = vmatprep.subr.bf16.mxu1 %v5887_v34  ;;  %1801 = vmatprep.subr.bf16.mxu0 %v5890_v22 }
 0x339   :  { %1759 = vmatpush1.bf16.msra.mxu1 %v5893_v39  ;;  %1802 = vmatpush1.bf16.msra.mxu0 %v5896_v24 }
 0x33a   :  { %1760 = vmatprep.subr.bf16.mxu1 %v5899_v15  ;;  %1803 = vmatprep.subr.bf16.mxu0 %v5902_v45  ;;  %v5920_v45 = vld [vmem:[#allocation11 + $0x88] ss:$16 sps:$4 sm:$0xff]  }
 0x33b   :  { %7546 = vst [vmem:[#allocation43_spill] sm:$0xff] %v5920_v45 }
 0x33d   :  { %1761 = vmatpush1.bf16.msra.mxu1 %v5905_v9  ;;  %1804 = vmatpush1.bf16.msra.mxu0 %v5908_v40  ;;  %v5923_v9 = vld [vmem:[#allocation11 + $0xa4] ss:$16 sps:$4 sm:$0xff]   ;;  %v5926_v40 = vld [vmem:[#allocation11 + $0xac] ss:$16 sps:$4 sm:$0xff]  }
 0x33e   :  { %1762 = vmatprep.subr.bf16.mxu1 %v5911_v17  ;;  %1805 = vmatprep.subr.bf16.mxu0 %v5914_v4  ;;  %7547 = vst [vmem:[#allocation44_spill] sm:$0xff] %v5923_v9  ;;  %7548 = vst [vmem:[#allocation45_spill] sm:$0xff] %v5926_v40  ;;  %v5929_v17 = vld [vmem:[#allocation11 + $0xa0] ss:$16 sps:$4 sm:$0xff]   ;;  %v5932_v4 = vld [vmem:[#allocation11 + $0xa8] ss:$16 sps:$4 sm:$0xff]  }
 0x33f   :  { %7549 = vst [vmem:[#allocation46_spill] sm:$0xff] %v5929_v17  ;;  %7550 = vst [vmem:[#allocation47_spill] sm:$0xff] %v5932_v4 }
 0x341   :  { %1763 = vmatpush1.bf16.msra.mxu1 %v5917_v6  ;;  %1806 = vmatpush1.bf16.msra.mxu0 %v5920_v45  ;;  %v5935_v6 = vld [vmem:[#allocation11 + $0xc4] ss:$16 sps:$4 sm:$0xff]   ;;  %v5938_v45 = vld [vmem:[#allocation11 + $0xcc] ss:$16 sps:$4 sm:$0xff]  }
 0x342   :  { %1764 = vmatprep.subr.bf16.mxu1 %v5923_v9  ;;  %1807 = vmatprep.subr.bf16.mxu0 %v5926_v40  ;;  %7551 = vst [vmem:[#allocation48_spill] sm:$0xff] %v5935_v6  ;;  %7552 = vst [vmem:[#allocation49_spill] sm:$0xff] %v5938_v45  ;;  %v5941_v9 = vld [vmem:[#allocation11 + $0xc0] ss:$16 sps:$4 sm:$0xff]   ;;  %v5944_v40 = vld [vmem:[#allocation11 + $0xc8] ss:$16 sps:$4 sm:$0xff]  }
 0x343   :  { %7553 = vst [vmem:[#allocation50_spill] sm:$0xff] %v5941_v9  ;;  %7554 = vst [vmem:[#allocation51_spill] sm:$0xff] %v5944_v40 }
 0x345   :  { %1765 = vmatpush1.bf16.msra.mxu1 %v5929_v17  ;;  %1808 = vmatpush1.bf16.msra.mxu0 %v5932_v4  ;;  %v5947_v17 = vld [vmem:[#allocation11 + $0xe4] ss:$16 sps:$4 sm:$0xff]   ;;  %v5950_v4 = vld [vmem:[#allocation11 + $0xec] ss:$16 sps:$4 sm:$0xff]  }
 0x346   :  { %1766 = vmatprep.subr.bf16.mxu1 %v5935_v6  ;;  %1809 = vmatprep.subr.bf16.mxu0 %v5938_v45  ;;  %7555 = vst [vmem:[#allocation52_spill] sm:$0xff] %v5947_v17  ;;  %7556 = vst [vmem:[#allocation53_spill] sm:$0xff] %v5950_v4  ;;  %v5953_v6 = vld [vmem:[#allocation11 + $0xe0] ss:$16 sps:$4 sm:$0xff]   ;;  %v5956_v45 = vld [vmem:[#allocation11 + $0xe8] ss:$16 sps:$4 sm:$0xff]  }
 0x347   :  { %7557 = vst [vmem:[#allocation54_spill] sm:$0xff] %v5953_v6  ;;  %7558 = vst [vmem:[#allocation55_spill] sm:$0xff] %v5956_v45 }
 0x349   :  { %1767 = vmatpush1.bf16.msra.mxu1 %v5941_v9  ;;  %1810 = vmatpush1.bf16.msra.mxu0 %v5944_v40  ;;  %v5959_v9 = vld [vmem:[#allocation11 + $0x104] ss:$16 sps:$4 sm:$0xff]   ;;  %v5962_v40 = vld [vmem:[#allocation11 + $0x10c] ss:$16 sps:$4 sm:$0xff]  }
 0x34a   :  { %1768 = vmatprep.subr.bf16.mxu1 %v5947_v17  ;;  %1811 = vmatprep.subr.bf16.mxu0 %v5950_v4  ;;  %7559 = vst [vmem:[#allocation56_spill] sm:$0xff] %v5959_v9  ;;  %7560 = vst [vmem:[#allocation57_spill] sm:$0xff] %v5962_v40  ;;  %v5965_v17 = vld [vmem:[#allocation11 + $0x100] ss:$16 sps:$4 sm:$0xff]   ;;  %v5968_v4 = vld [vmem:[#allocation11 + $0x108] ss:$16 sps:$4 sm:$0xff]  }
 0x34b   :  { %7561 = vst [vmem:[#allocation58_spill] sm:$0xff] %v5965_v17  ;;  %7562 = vst [vmem:[#allocation59_spill] sm:$0xff] %v5968_v4 }
 0x34d   :  { %1769 = vmatpush1.bf16.msra.mxu1 %v5953_v6  ;;  %1812 = vmatpush1.bf16.msra.mxu0 %v5956_v45  ;;  %v5971_v6 = vld [vmem:[#allocation11 + $0x124] ss:$16 sps:$4 sm:$0xff]   ;;  %v5974_v45 = vld [vmem:[#allocation11 + $0x12c] ss:$16 sps:$4 sm:$0xff]  }
 0x34e   :  { %1770 = vmatprep.subr.bf16.mxu1 %v5959_v9  ;;  %1813 = vmatprep.subr.bf16.mxu0 %v5962_v40  ;;  %7563 = vst [vmem:[#allocation60_spill] sm:$0xff] %v5971_v6  ;;  %7564 = vst [vmem:[#allocation61_spill] sm:$0xff] %v5974_v45  ;;  %v5977_v9 = vld [vmem:[#allocation11 + $0x120] ss:$16 sps:$4 sm:$0xff]   ;;  %v5980_v40 = vld [vmem:[#allocation11 + $0x128] ss:$16 sps:$4 sm:$0xff]  }
 0x34f   :  { %7565 = vst [vmem:[#allocation62_spill] sm:$0xff] %v5977_v9  ;;  %7566 = vst [vmem:[#allocation63_spill] sm:$0xff] %v5980_v40 }
 0x351   :  { %1771 = vmatpush1.bf16.msra.mxu1 %v5965_v17  ;;  %1814 = vmatpush1.bf16.msra.mxu0 %v5968_v4  ;;  %v5983_v17 = vld [vmem:[#allocation11 + $0x144] ss:$16 sps:$4 sm:$0xff]   ;;  %v5986_v4 = vld [vmem:[#allocation11 + $0x14c] ss:$16 sps:$4 sm:$0xff]  }
 0x352   :  { %1772 = vmatprep.subr.bf16.mxu1 %v5971_v6  ;;  %1815 = vmatprep.subr.bf16.mxu0 %v5974_v45  ;;  %7567 = vst [vmem:[#allocation64_spill] sm:$0xff] %v5983_v17  ;;  %7568 = vst [vmem:[#allocation65_spill] sm:$0xff] %v5986_v4  ;;  %v5989_v6 = vld [vmem:[#allocation11 + $0x140] ss:$16 sps:$4 sm:$0xff]   ;;  %v5992_v45 = vld [vmem:[#allocation11 + $0x148] ss:$16 sps:$4 sm:$0xff]  }
 0x353   :  { %7569 = vst [vmem:[#allocation66_spill] sm:$0xff] %v5989_v6  ;;  %7570 = vst [vmem:[#allocation67_spill] sm:$0xff] %v5992_v45 }
 0x355   :  { %1773 = vmatpush1.bf16.msra.mxu1 %v5977_v9  ;;  %1816 = vmatpush1.bf16.msra.mxu0 %v5980_v40  ;;  %v5995_v9 = vld [vmem:[#allocation11 + $0x164] ss:$16 sps:$4 sm:$0xff]   ;;  %v5998_v40 = vld [vmem:[#allocation11 + $0x16c] ss:$16 sps:$4 sm:$0xff]  }
 0x356   :  { %1774 = vmatprep.subr.bf16.mxu1 %v5983_v17  ;;  %1817 = vmatprep.subr.bf16.mxu0 %v5986_v4  ;;  %7571 = vst [vmem:[#allocation68_spill] sm:$0xff] %v5995_v9  ;;  %7572 = vst [vmem:[#allocation69_spill] sm:$0xff] %v5998_v40  ;;  %v6001_v17 = vld [vmem:[#allocation11 + $0x160] ss:$16 sps:$4 sm:$0xff]   ;;  %v6004_v4 = vld [vmem:[#allocation11 + $0x168] ss:$16 sps:$4 sm:$0xff]  }
 0x357   :  { %7573 = vst [vmem:[#allocation70_spill] sm:$0xff] %v6001_v17  ;;  %7574 = vst [vmem:[#allocation71_spill] sm:$0xff] %v6004_v4 }
 0x359   :  { %1775 = vmatpush1.bf16.msra.mxu1 %v5989_v6  ;;  %1818 = vmatpush1.bf16.msra.mxu0 %v5992_v45  ;;  %v6007_v6 = vld [vmem:[#allocation11 + $0x184] ss:$16 sps:$4 sm:$0xff]   ;;  %v6010_v45 = vld [vmem:[#allocation11 + $0x18c] ss:$16 sps:$4 sm:$0xff]  }
 0x35a   :  { %1776 = vmatprep.subr.bf16.mxu1 %v5995_v9  ;;  %1819 = vmatprep.subr.bf16.mxu0 %v5998_v40  ;;  %7575 = vst [vmem:[#allocation74_spill] sm:$0xff] %v6007_v6  ;;  %7576 = vst [vmem:[#allocation75_spill] sm:$0xff] %v6010_v45  ;;  %v6013_v9 = vld [vmem:[#allocation11 + $0x180] ss:$16 sps:$4 sm:$0xff]   ;;  %v6016_v40 = vld [vmem:[#allocation11 + $0x188] ss:$16 sps:$4 sm:$0xff]  }
 0x35b   :  { %7577 = vst [vmem:[#allocation76_spill] sm:$0xff] %v6013_v9  ;;  %7578 = vst [vmem:[#allocation77_spill] sm:$0xff] %v6016_v40 }
 0x35d   :  { %1777 = vmatpush1.bf16.msra.mxu1 %v6001_v17  ;;  %1820 = vmatpush1.bf16.msra.mxu0 %v6004_v4  ;;  %v6019_v17 = vld [vmem:[#allocation11 + $0x1a4] ss:$16 sps:$4 sm:$0xff]   ;;  %v6022_v4 = vld [vmem:[#allocation11 + $0x1ac] ss:$16 sps:$4 sm:$0xff]  }
 0x35e   :  { %1778 = vmatprep.subr.bf16.mxu1 %v6007_v6  ;;  %1821 = vmatprep.subr.bf16.mxu0 %v6010_v45  ;;  %7579 = vst [vmem:[#allocation78_spill] sm:$0xff] %v6019_v17  ;;  %7580 = vst [vmem:[#allocation79_spill] sm:$0xff] %v6022_v4  ;;  %v6025_v6 = vld [vmem:[#allocation11 + $0x1a0] ss:$16 sps:$4 sm:$0xff]   ;;  %v6028_v45 = vld [vmem:[#allocation11 + $0x1a8] ss:$16 sps:$4 sm:$0xff]  }
 0x35f   :  { %7581 = vst [vmem:[#allocation81_spill] sm:$0xff] %v6025_v6  ;;  %7582 = vst [vmem:[#allocation82_spill] sm:$0xff] %v6028_v45 }
 0x361   :  { %1779 = vmatpush1.bf16.msra.mxu1 %v6013_v9  ;;  %1822 = vmatpush1.bf16.msra.mxu0 %v6016_v40 }
 0x362   :  { %1780 = vmatprep.subr.bf16.mxu1 %v6019_v17  ;;  %1823 = vmatprep.subr.bf16.mxu0 %v6022_v4 }
 0x365   :  { %1781 = vmatpush1.bf16.msra.mxu1 %v6025_v6  ;;  %1824 = vmatpush1.bf16.msra.mxu0 %v6028_v45 }
 0x366   :  { %1782 = vmatprep.subr.bf16.mxu1 %v7511_v5  ;;  %1825 = vmatprep.subr.bf16.mxu0 %v7512_v37 }
 0x369   :  { %1783 = vmatpush1.bf16.msra.mxu1 %v7513_v19  ;;  %1826 = vmatpush1.bf16.msra.mxu0 %v7514_v27 }
 0x36a   :  { %1784 = vmatprep.subr.bf16.mxu1 %v7515_v12  ;;  %1827 = vmatprep.subr.bf16.mxu0 %v7516_v47 }
 0x36d   :  { %1785 = vmatpush1.bf16.msra.mxu1 %v7517_v20  ;;  %1828 = vmatpush1.bf16.msra.mxu0 %v7518_v21 }
 0x36e   :  { %1878 = vmatprep.subr.bf16.mxu1 %v5736_v23  ;;  %3792 = vmatprep.subr.bf16.mxu0 %v7420_v53 }
 0x3e3   :  { %v1536_v45 = vpop.f32.mrb[28].mxu1  ;;  %v1579_v5 = vpop.f32.mrb[44].mxu0 }
 0x3e4   :  { %v1537_v37 = vadd.f32 %v1536_v45, %v5741_v28  ;;  %v1538_v6 = vpop.f32.mrb[29].mxu1  ;;  %v1581_v19 = vpop.f32.mrb[45].mxu0 }
 0x3e5   :  { %v1540_v4 = vpop.f32.mrb[30].mxu1  ;;  %v1583_v27 = vpop.f32.mrb[46].mxu0  ;;  %v1539_v20 = vadd.f32 %v1538_v6, %v5744_v35  ;;  %v1582_v6 = vadd.f32 %v1581_v19, %v5751_v3 }
 0x3e6   :  { %v3495_v17 = vmul.f32 -1.442695, %v1537_v37  ;;  %v1541_v12 = vadd.f32 %v1540_v4, %v5741_v28  ;;  %v1542_v47 = vpop.f32.mrb[31].mxu1  ;;  %v1585_v40 = vpop.f32.mrb[47].mxu0 }
 0x3e7   :  { %v1543_v23 = vadd.f32 %v1542_v47, %v5744_v35  ;;  %v3497_v9 = vmul.f32 -1.442695, %v1539_v20  ;;  %v1580_v47 = vadd.f32 %v1579_v5, %v5754_v18 }
 0x3e8   :  { %4208 = vpow2.f32 %v3495_v17  ;;  %v3496_v21 = vmul.f32 -1.442695, %v1541_v12 }
 0x3e9   :  { %v3498_v15 = vmul.f32 -1.442695, %v1543_v23  ;;  %v1586_v23 = vadd.f32 %v1585_v40, %v5751_v3  ;;  %v7583_v40 = vld [vmem:[#allocation93_spill] sm:$0xff] }
 0x3ea   :  { %4210 = vpow2.f32 %v3496_v21  ;;  %v1584_v21 = vadd.f32 %v1583_v27, %v5754_v18 }
 0x3eb   :  { %4212 = vpow2.f32 %v3497_v9 }
 0x3ec   :  { %4214 = vpow2.f32 %v3498_v15 }
 0x3f2   :  { %v4209_v45 = vpop.eup %4208 }
 0x3f3   :  { %v1594_v24 = vadd.f32 1.0, %v4209_v45 }
 0x3f4   :  { %v4211_v39 = vpop.eup %4210 }
 0x3f5   :  { %4216 = vrcp.f32 %v1594_v24  ;;  %v1595_v37 = vadd.f32 1.0, %v4211_v39  ;;  %v4213_v4 = vpop.eup %4212 }
 0x3f6   :  { %v4215_v28 = vpop.eup %4214  ;;  %v1606_v22 = vadd.f32 1.0, %v4213_v4 }
 0x3f7   :  { %4218 = vrcp.f32 %v1595_v37  ;;  %v1607_v17 = vadd.f32 1.0, %v4215_v28 }
 0x3f8   :  { %4220 = vrcp.f32 %v1606_v22 }
 0x3f9   :  { %4222 = vrcp.f32 %v1607_v17 }
 0x3ff   :  { %v4217_v12 = vpop.eup %4216 }
 0x400   :  { %v1612_v20 = vmul.f32 %v4217_v12, %v1582_v6 }
 0x401   :  { %v4219_v15 = vpop.eup %4218 }
 0x402   :  { %v1614_v9 = vadd.f32 %v1612_v20, %v1580_v47  ;;  %v1613_v39 = vmul.f32 %v4219_v15, %v1586_v23  ;;  %v7584_v20 = vld [vmem:[#allocation94_spill] sm:$0xff]  ;;  %v4221_v18 = vpop.eup %4220 }
 0x403   :  { %v1660_v24 = vpop.f32.mrb[32].mxu1  ;;  %v1703_v45 = vpop.f32.mrb[48].mxu0 }
 0x404   :  { %4224 = vtanh.f32 %v1614_v9  ;;  %v1615_v37 = vadd.f32 %v1613_v39, %v1584_v21  ;;  %v1661_v19 = vadd.f32 %v1660_v24, %v5544_v14  ;;  %v1662_v28 = vpop.f32.mrb[33].mxu1  ;;  %v3790_v4 = vpop.f32.mrb[49].mxu0  ;;  %v7585_v21 = vld [vmem:[#allocation97_spill] sm:$0xff]  ;;  %v7586_v24 = vld [vmem:[#allocation98_spill] sm:$0xff] }
 0x405   :  { %v1663_v5 = vadd.f32 %v1662_v28, %v5551_v10  ;;  %v1664_v22 = vpop.f32.mrb[34].mxu1  ;;  %v1706_v6 = vpop.f32.mrb[50].mxu0 }
 0x406   :  { %4226 = vtanh.f32 %v1615_v37  ;;  %v1710_v12 = vadd.f32 %v1661_v19, %v7583_v40  ;;  %v1665_v47 = vadd.f32 %v1664_v22, %v5544_v14  ;;  %v1666_v27 = vpop.f32.mrb[35].mxu1  ;;  %v3791_v17 = vpop.f32.mrb[51].mxu0  ;;  %v1618_v19 = vsub.f32 1.0, %v4221_v18 }
 0x407   :  { %v1724_v23 = vadd.f32 %v1663_v5, %v7584_v20  ;;  %v1667_v15 = vadd.f32 %v1666_v27, %v5551_v10  ;;  %v4223_v3 = vpop.eup %4222  ;;  %v1622_v5 = vmul.f32 %v4221_v18, %v5770_v33  ;;  %v1704_v33 = vadd.f32 %v1703_v45, %v5612_v42 }
 0x408   :  { %v3499_v9 = vmul.f32 -1.442695, %v1710_v12  ;;  %v1711_v39 = vadd.f32 %v1665_v47, %v7585_v21  ;;  %v1619_v14 = vsub.f32 1.0, %v4223_v3  ;;  %v1623_v47 = vmul.f32 %v4223_v3, %v5772_v25 }
 0x409   :  { %v1725_v4 = vadd.f32 %v1667_v15, %v7586_v24  ;;  %v3501_v37 = vmul.f32 -1.442695, %v1724_v23 }
 0x40a   :  { %4228 = vpow2.f32 %v3499_v9  ;;  %v3500_v28 = vmul.f32 -1.442695, %v1711_v39 }
 0x40b   :  { %v3502_v22 = vmul.f32 -1.442695, %v1725_v4 }
 0x40c   :  { %4230 = vpow2.f32 %v3500_v28 }
 0x40d   :  { %4232 = vpow2.f32 %v3501_v37  ;;  %v1707_v37 = vadd.f32 %v1706_v6, %v5612_v42 }
 0x40e   :  { %v4225_v40 = vpop.eup %4224  ;;  %4234 = vpow2.f32 %v3502_v22 }
 0x40f   :  { %v1620_v17 = vmul.f32 %v4225_v40, %v1618_v19  ;;  %v7588_v40 = vld [vmem:[#allocation88_spill] sm:$0xff] }
 0x410   :  { %v4227_v20 = vpop.eup %4226 }
 0x411   :  { %v1621_v12 = vmul.f32 %v4227_v20, %v1619_v14  ;;  %v6059_v27 = vadd.f32 %v1622_v5, %v1620_v17  ;;  %v7589_v5 = vld [vmem:[#allocation87_spill] sm:$0xff] }
 0x413   :  { %v6061_v15 = vadd.f32 %v1623_v47, %v1621_v12 }
 0x414   :  { %v4229_v9 = vpop.eup %4228 }
 0x415   :  { %v1718_v21 = vadd.f32 1.0, %v4229_v9  ;;  %v6065_v23 = vpack.c.bf16 %v6061_v15, %v6059_v27 }
 0x416   :  { %v4231_v39 = vpop.eup %4230 }
 0x417   :  { %7587 = vst [vmem:[#allocation80_spill] sm:$0xff] %v6065_v23  ;;  %4236 = vrcp.f32 %v1718_v21  ;;  %v1719_v24 = vadd.f32 1.0, %v4231_v39  ;;  %1786 = vmatprep.mubr.bf16.mxu1 %v6065_v23  ;;  %1829 = vmatprep.mubr.bf16.mxu0 %v6065_v23  ;;  %v4233_v14 = vpop.eup %4232  ;;  %v7616_v23 = vld [vmem:[#allocation59_spill] sm:$0xff] }
 0x418   :  { %v4235_v3 = vpop.eup %4234  ;;  %v1732_v18 = vadd.f32 1.0, %v4233_v14 }
 0x419   :  { %4238 = vrcp.f32 %v1719_v24  ;;  %v1733_v25 = vadd.f32 1.0, %v4235_v3 }
 0x41a   :  { %4240 = vrcp.f32 %v1732_v18 }
 0x41b   :  { %4242 = vrcp.f32 %v1733_v25 }
 0x421   :  { %v4237_v4 = vpop.eup %4236 }
 0x422   :  { %v1738_v28 = vmul.f32 %v4237_v4, %v1704_v33  ;;  %v7596_v4 = vld [vmem:[#allocation39_spill] sm:$0xff] }
 0x423   :  { %v4239_v19 = vpop.eup %4238 }
 0x424   :  { %v1740_v22 = vadd.f32 %v1738_v28, %v7588_v40  ;;  %v1739_v17 = vmul.f32 %v4239_v19, %v1707_v37  ;;  %v4241_v12 = vpop.eup %4240  ;;  %v7597_v28 = vld [vmem:[#allocation40_spill] sm:$0xff]  ;;  %v7598_v37 = vld [vmem:[#allocation41_spill] sm:$0xff]  ;;  %v7599_v19 = vld [vmem:[#allocation42_spill] sm:$0xff] }
 0x425   :  { %v4243_v47 = vpop.eup %4242  ;;  %v1744_v9 = vsub.f32 1.0, %v4241_v12  ;;  %v1748_v24 = vmul.f32 %v4241_v12, %v5786_v44  ;;  %v7594_v44 = vld [vmem:[#allocation37_spill] sm:$0xff]  ;;  %v7600_v40 = vld [vmem:[#allocation43_spill] sm:$0xff]  ;;  %v7605_v12 = vld [vmem:[#allocation48_spill] sm:$0xff] }
 0x426   :  { %4244 = vtanh.f32 %v1740_v22  ;;  %v1741_v20 = vadd.f32 %v1739_v17, %v7589_v5  ;;  %v1745_v45 = vsub.f32 1.0, %v4243_v47  ;;  %v1749_v6 = vmul.f32 %v4243_v47, %v5788_v52  ;;  %v7595_v52 = vld [vmem:[#allocation38_spill] sm:$0xff]  ;;  %v7601_v22 = vld [vmem:[#allocation44_spill] sm:$0xff]  ;;  %v7602_v17 = vld [vmem:[#allocation45_spill] sm:$0xff] }
 0x427   :  { %v7603_v5 = vld [vmem:[#allocation46_spill] sm:$0xff]  ;;  %v7606_v47 = vld [vmem:[#allocation49_spill] sm:$0xff] }
 0x428   :  { %4246 = vtanh.f32 %v1741_v20  ;;  %v7604_v20 = vld [vmem:[#allocation47_spill] sm:$0xff] }
 0x430   :  { %v4245_v21 = vpop.eup %4244 }
 0x431   :  { %v1746_v39 = vmul.f32 %v4245_v21, %v1744_v9  ;;  %v7607_v9 = vld [vmem:[#allocation50_spill] sm:$0xff]  ;;  %v7608_v21 = vld [vmem:[#allocation51_spill] sm:$0xff] }
 0x432   :  { %v4247_v14 = vpop.eup %4246 }
 0x433   :  { %v1747_v3 = vmul.f32 %v4247_v14, %v1745_v45  ;;  %v6075_v18 = vadd.f32 %v1748_v24, %v1746_v39  ;;  %v7609_v45 = vld [vmem:[#allocation52_spill] sm:$0xff]  ;;  %v7610_v39 = vld [vmem:[#allocation53_spill] sm:$0xff]  ;;  %v7611_v24 = vld [vmem:[#allocation54_spill] sm:$0xff] }
 0x434   :  { %v7612_v14 = vld [vmem:[#allocation55_spill] sm:$0xff] }
 0x435   :  { %v6077_v33 = vadd.f32 %v1749_v6, %v1747_v3  ;;  %v7613_v3 = vld [vmem:[#allocation56_spill] sm:$0xff]  ;;  %v7614_v6 = vld [vmem:[#allocation57_spill] sm:$0xff] }
 0x437   :  { %v1752_v25 = vpack.c.bf16 %v6077_v33, %v6075_v18 }
 0x439   :  { %1787 = vmatmul.mubr.bf16.vlgmr.msra.gmra.mrb[36].mxu1 %v1752_v25  ;;  %1830 = vmatmul.mubr.bf16.vlgmr.msra.gmra.mrb[52].mxu0 %v1752_v25 }
 0x43a   :  { %1879 = vmatpush1.bf16.msra.mxu1 %v5631_v16  ;;  %3793 = vmatpush3.bf16.msra.mxu0 %v5634_v13  ;;  %v7590_v16 = vld [vmem:[#allocation33_spill] sm:$0xff]  ;;  %v7591_v13 = vld [vmem:[#allocation34_spill] sm:$0xff] }
 0x43b   :  { %1880 = vmatprep.subr.bf16.mxu1 %v5637_v49  ;;  %3794 = vmatprep.subr.bf16.mxu0 %v7420_v53  ;;  %v7592_v49 = vld [vmem:[#allocation35_spill] sm:$0xff] }
 0x43c   :  { %1910 = vmatprep.mubr.bf16.mxu1 %v7467_v50  ;;  %3808 = vmatprep.mubr.msk.bf16.mxu0 %vm4940_vm0, %v7420_v53 }
 0x43e   :  { %1881 = vmatpush1.bf16.msra.mxu1 %v5644_v11  ;;  %3795 = vmatpush3.bf16.msra.mxu0 %v5800_v7  ;;  %v7593_v11 = vld [vmem:[#allocation36_spill] sm:$0xff] }
 0x43f   :  { %1882 = vmatprep.subr.bf16.mxu1 %v5803_v0  ;;  %3796 = vmatprep.subr.bf16.mxu0 %v7420_v53 }
 0x442   :  { %1883 = vmatpush1.bf16.msra.mxu1 %v5807_v29  ;;  %3797 = vmatpush3.bf16.msra.mxu0 %v5810_v26 }
 0x443   :  { %1884 = vmatprep.subr.bf16.mxu1 %v5813_v30  ;;  %3798 = vmatprep.subr.bf16.mxu0 %v7420_v53 }
 0x446   :  { %1885 = vmatpush1.bf16.msra.mxu1 %v5817_v36  ;;  %3799 = vmatpush3.bf16.msra.mxu0 %v5820_v38 }
 0x447   :  { %1886 = vmatprep.subr.bf16.mxu1 %v5823_v31  ;;  %3800 = vmatprep.subr.bf16.mxu0 %v7420_v53 }
 0x44a   :  { %1887 = vmatpush1.bf16.msra.mxu1 %v5827_v41  ;;  %3801 = vmatpush3.bf16.msra.mxu0 %v5830_v46 }
 0x44b   :  { %1888 = vmatprep.subr.bf16.mxu1 %v5833_v48  ;;  %3802 = vmatprep.subr.bf16.mxu0 %v7420_v53 }
 0x44e   :  { %1889 = vmatpush1.bf16.msra.mxu1 %v5837_v51  ;;  %3803 = vmatpush3.bf16.msra.mxu0 %v5840_v43 }
 0x44f   :  { %1890 = vmatprep.subr.bf16.mxu1 %v5843_v54  ;;  %3804 = vmatprep.subr.bf16.mxu0 %v7420_v53 }
 0x452   :  { %1891 = vmatpush1.bf16.msra.mxu1 %v5847_v55  ;;  %3805 = vmatpush3.bf16.msra.mxu0 %v5850_v56 }
 0x453   :  { %1892 = vmatprep.subr.bf16.mxu1 %v5853_v57  ;;  %3806 = vmatprep.subr.bf16.mxu0 %v7420_v53 }
 0x456   :  { %1893 = vmatpush1.bf16.msra.mxu1 %v5857_v58  ;;  %3807 = vmatpush3.bf16.msra.mxu0 %v5860_v59 }
 0x457   :  { %2006 = vmatprep.subr.bf16.mxu1 %v5863_v60  ;;  %2049 = vmatprep.subr.bf16.mxu0 %v5866_v61 }
 0x459   :  { %1911 = vmatmul.mubr.bf16.vlgmr.msra.gmra.mrb[40].mxu1 %v1752_v25  ;;  %3809 = vmatmul.mubr.bf16.vlgmr.msra.gmra.mrb[56].mxu0 %v1752_v25  ;;  %v7615_v25 = vld [vmem:[#allocation58_spill] sm:$0xff] }
 0x45a   :  { %2007 = vmatpush1.bf16.msra.mxu1 %v5869_v62  ;;  %2050 = vmatpush1.bf16.msra.mxu0 %v5872_v63 }
 0x45b   :  { %2008 = vmatprep.subr.bf16.mxu1 %v5875_v1  ;;  %2051 = vmatprep.subr.bf16.mxu0 %v5878_v2 }
 0x45e   :  { %2009 = vmatpush1.bf16.msra.mxu1 %v5881_v8  ;;  %2052 = vmatpush1.bf16.msra.mxu0 %v5884_v32 }
 0x45f   :  { %2010 = vmatprep.subr.bf16.mxu1 %v5887_v34  ;;  %2053 = vmatprep.subr.bf16.mxu0 %v7590_v16 }
 0x462   :  { %2011 = vmatpush1.bf16.msra.mxu1 %v7591_v13  ;;  %2054 = vmatpush1.bf16.msra.mxu0 %v7592_v49 }
 0x463   :  { %2012 = vmatprep.subr.bf16.mxu1 %v7593_v11  ;;  %2055 = vmatprep.subr.bf16.mxu0 %v7594_v44 }
 0x466   :  { %2013 = vmatpush1.bf16.msra.mxu1 %v7595_v52  ;;  %2056 = vmatpush1.bf16.msra.mxu0 %v7596_v4  ;;  %v7647_v4 = vld [vmem:[#allocation30_spill] sm:$0xff]  ;;  %v7648_v52 = vld [vmem:[#allocation31_spill] sm:$0xff] }
 0x467   :  { %2014 = vmatprep.subr.bf16.mxu1 %v7597_v28  ;;  %2057 = vmatprep.subr.bf16.mxu0 %v7598_v37 }
 0x46a   :  { %2015 = vmatpush1.bf16.msra.mxu1 %v7599_v19  ;;  %2058 = vmatpush1.bf16.msra.mxu0 %v7600_v40 }
 0x46b   :  { %2016 = vmatprep.subr.bf16.mxu1 %v7601_v22  ;;  %2059 = vmatprep.subr.bf16.mxu0 %v7602_v17 }
 0x46e   :  { %2017 = vmatpush1.bf16.msra.mxu1 %v7603_v5  ;;  %2060 = vmatpush1.bf16.msra.mxu0 %v7604_v20 }
 0x46f   :  { %2018 = vmatprep.subr.bf16.mxu1 %v7605_v12  ;;  %2061 = vmatprep.subr.bf16.mxu0 %v7606_v47  ;;  %v7617_v47 = vld [vmem:[#allocation60_spill] sm:$0xff] }
 0x472   :  { %2019 = vmatpush1.bf16.msra.mxu1 %v7607_v9  ;;  %2062 = vmatpush1.bf16.msra.mxu0 %v7608_v21  ;;  %v7618_v9 = vld [vmem:[#allocation61_spill] sm:$0xff]  ;;  %v7619_v21 = vld [vmem:[#allocation62_spill] sm:$0xff] }
 0x473   :  { %2020 = vmatprep.subr.bf16.mxu1 %v7609_v45  ;;  %2063 = vmatprep.subr.bf16.mxu0 %v7610_v39  ;;  %v7620_v45 = vld [vmem:[#allocation63_spill] sm:$0xff]  ;;  %v7621_v39 = vld [vmem:[#allocation64_spill] sm:$0xff] }
 0x476   :  { %2021 = vmatpush1.bf16.msra.mxu1 %v7611_v24  ;;  %2064 = vmatpush1.bf16.msra.mxu0 %v7612_v14  ;;  %v7622_v24 = vld [vmem:[#allocation65_spill] sm:$0xff]  ;;  %v7623_v14 = vld [vmem:[#allocation66_spill] sm:$0xff] }
 0x477   :  { %2022 = vmatprep.subr.bf16.mxu1 %v7613_v3  ;;  %2065 = vmatprep.subr.bf16.mxu0 %v7614_v6  ;;  %v7624_v3 = vld [vmem:[#allocation67_spill] sm:$0xff]  ;;  %v7625_v6 = vld [vmem:[#allocation68_spill] sm:$0xff] }
 0x47a   :  { %2023 = vmatpush1.bf16.msra.mxu1 %v7615_v25  ;;  %2066 = vmatpush1.bf16.msra.mxu0 %v7616_v23  ;;  %v7626_v25 = vld [vmem:[#allocation69_spill] sm:$0xff]  ;;  %v7627_v23 = vld [vmem:[#allocation70_spill] sm:$0xff] }
 0x47b   :  { %2024 = vmatprep.subr.bf16.mxu1 %v7617_v47  ;;  %2067 = vmatprep.subr.bf16.mxu0 %v7618_v9  ;;  %v7628_v47 = vld [vmem:[#allocation71_spill] sm:$0xff]  ;;  %v7629_v9 = vld [vmem:[#allocation74_spill] sm:$0xff] }
 0x47e   :  { %2025 = vmatpush1.bf16.msra.mxu1 %v7619_v21  ;;  %2068 = vmatpush1.bf16.msra.mxu0 %v7620_v45  ;;  %v7630_v21 = vld [vmem:[#allocation75_spill] sm:$0xff]  ;;  %v7631_v45 = vld [vmem:[#allocation76_spill] sm:$0xff] }
 0x47f   :  { %2026 = vmatprep.subr.bf16.mxu1 %v7621_v39  ;;  %2069 = vmatprep.subr.bf16.mxu0 %v7622_v24  ;;  %v7632_v39 = vld [vmem:[#allocation77_spill] sm:$0xff]  ;;  %v7633_v24 = vld [vmem:[#allocation78_spill] sm:$0xff] }
 0x482   :  { %2027 = vmatpush1.bf16.msra.mxu1 %v7623_v14  ;;  %2070 = vmatpush1.bf16.msra.mxu0 %v7624_v3  ;;  %v7634_v14 = vld [vmem:[#allocation79_spill] sm:$0xff]  ;;  %v7635_v3 = vld [vmem:[#allocation81_spill] sm:$0xff] }
 0x483   :  { %2028 = vmatprep.subr.bf16.mxu1 %v7625_v6  ;;  %2071 = vmatprep.subr.bf16.mxu0 %v7626_v25  ;;  %v7636_v6 = vld [vmem:[#allocation82_spill] sm:$0xff]  ;;  %v6170_v25 = vld [vmem:[#allocation11 + $0x1c4] ss:$16 sps:$4 sm:$0xff]  }
 0x484   :  { %7637 = vst [vmem:[#allocation85_spill] sm:$0xff] %v6170_v25 }
 0x486   :  { %2029 = vmatpush1.bf16.msra.mxu1 %v7627_v23  ;;  %2072 = vmatpush1.bf16.msra.mxu0 %v7628_v47  ;;  %v6173_v47 = vld [vmem:[#allocation11 + $0x1cc] ss:$16 sps:$4 sm:$0xff]  }
 0x487   :  { %2030 = vmatprep.subr.bf16.mxu1 %v7629_v9  ;;  %2073 = vmatprep.subr.bf16.mxu0 %v7630_v21  ;;  %7638 = vst [vmem:[#allocation86_spill] sm:$0xff] %v6173_v47  ;;  %v6176_v21 = vld [vmem:[#allocation11 + $0x1c0] ss:$16 sps:$4 sm:$0xff]  }
 0x488   :  { %7639 = vst [vmem:[#allocation89_spill] sm:$0xff] %v6176_v21 }
 0x48a   :  { %2031 = vmatpush1.bf16.msra.mxu1 %v7631_v45  ;;  %2074 = vmatpush1.bf16.msra.mxu0 %v7632_v39  ;;  %v6179_v39 = vld [vmem:[#allocation11 + $0x1c8] ss:$16 sps:$4 sm:$0xff]  }
 0x48b   :  { %2032 = vmatprep.subr.bf16.mxu1 %v7633_v24  ;;  %2075 = vmatprep.subr.bf16.mxu0 %v7634_v14  ;;  %7640 = vst [vmem:[#allocation90_spill] sm:$0xff] %v6179_v39  ;;  %v6182_v14 = vld [vmem:[#allocation11 + $0x1e4] ss:$16 sps:$4 sm:$0xff]   ;;  %v7646_v24 = vld [vmem:[#allocation28_spill] sm:$0xff] }
 0x48c   :  { %7641 = vst [vmem:[#allocation72_spill] sm:$0xff] %v6182_v14 }
 0x48e   :  { %2033 = vmatpush1.bf16.msra.mxu1 %v7635_v3  ;;  %2076 = vmatpush1.bf16.msra.mxu0 %v7636_v6  ;;  %v6185_v6 = vld [vmem:[#allocation11 + $0x1ec] ss:$16 sps:$4 sm:$0xff]  }
 0x48f   :  { %2034 = vmatprep.subr.bf16.mxu1 %v6170_v25  ;;  %2077 = vmatprep.subr.bf16.mxu0 %v6173_v47  ;;  %7642 = vst [vmem:[#allocation73_spill] sm:$0xff] %v6185_v6  ;;  %v6188_v25 = vld [vmem:[#allocation11 + $0x1e0] ss:$16 sps:$4 sm:$0xff]   ;;  %v6191_v47 = vld [vmem:[#allocation11 + $0x1e8] ss:$16 sps:$4 sm:$0xff]  }
 0x490   :  { %7643 = vst [vmem:[#allocation84_spill] sm:$0xff] %v6188_v25  ;;  %7644 = vst [vmem:[#allocation83_spill] sm:$0xff] %v6191_v47 }
 0x492   :  { %2035 = vmatpush1.bf16.msra.mxu1 %v6176_v21  ;;  %2078 = vmatpush1.bf16.msra.mxu0 %v6179_v39  ;;  %v7645_v21 = vld [vmem:[#allocation27_spill] sm:$0xff] }
 0x493   :  { %2036 = vmatprep.subr.bf16.mxu1 %v6182_v14  ;;  %2079 = vmatprep.subr.bf16.mxu0 %v6185_v6 }
 0x496   :  { %2037 = vmatpush1.bf16.msra.mxu1 %v6188_v25  ;;  %2080 = vmatpush1.bf16.msra.mxu0 %v6191_v47 }
 0x497   :  { %2130 = vmatprep.subr.bf16.mxu1 %v7645_v21  ;;  %3812 = vmatprep.subr.bf16.mxu0 %v7420_v53 }
 0x50c   :  { %v1788_v39 = vpop.f32.mrb[36].mxu1  ;;  %v1831_v3 = vpop.f32.mrb[52].mxu0 }
 0x50d   :  { %v1789_v14 = vadd.f32 %v1788_v39, %v7646_v24  ;;  %v1790_v45 = vpop.f32.mrb[37].mxu1  ;;  %v1833_v9 = vpop.f32.mrb[53].mxu0 }
 0x50e   :  { %v1792_v23 = vpop.f32.mrb[38].mxu1  ;;  %v1835_v6 = vpop.f32.mrb[54].mxu0  ;;  %v1791_v17 = vadd.f32 %v1790_v45, %v5744_v35  ;;  %v1834_v45 = vadd.f32 %v1833_v9, %v7647_v4 }
 0x50f   :  { %v3503_v12 = vmul.f32 -1.442695, %v1789_v14  ;;  %v1793_v20 = vadd.f32 %v1792_v23, %v7646_v24  ;;  %v1794_v25 = vpop.f32.mrb[39].mxu1  ;;  %v1837_v5 = vpop.f32.mrb[55].mxu0 }
 0x510   :  { %v1795_v21 = vadd.f32 %v1794_v25, %v5744_v35  ;;  %v3505_v22 = vmul.f32 -1.442695, %v1791_v17  ;;  %v1832_v25 = vadd.f32 %v1831_v3, %v7648_v52 }
 0x511   :  { %4248 = vpow2.f32 %v3503_v12  ;;  %v3504_v47 = vmul.f32 -1.442695, %v1793_v20 }
 0x512   :  { %v3506_v40 = vmul.f32 -1.442695, %v1795_v21  ;;  %v1836_v21 = vadd.f32 %v1835_v6, %v7648_v52 }
 0x513   :  { %4250 = vpow2.f32 %v3504_v47 }
 0x514   :  { %4252 = vpow2.f32 %v3505_v22  ;;  %v1838_v22 = vadd.f32 %v1837_v5, %v7647_v4  ;;  %v7650_v5 = vld [vmem:[#allocation101_spill] sm:$0xff] }
 0x515   :  { %4254 = vpow2.f32 %v3506_v40 }
 0x51b   :  { %v4249_v39 = vpop.eup %4248 }
 0x51c   :  { %v1846_v19 = vadd.f32 1.0, %v4249_v39 }
 0x51d   :  { %v4251_v37 = vpop.eup %4250 }
 0x51e   :  { %4256 = vrcp.f32 %v1846_v19  ;;  %v1847_v14 = vadd.f32 1.0, %v4251_v37  ;;  %v4253_v23 = vpop.eup %4252 }
 0x51f   :  { %v4255_v24 = vpop.eup %4254  ;;  %v1858_v28 = vadd.f32 1.0, %v4253_v23  ;;  %v7649_v23 = vld [vmem:[#allocation108_spill] sm:$0xff] }
 0x520   :  { %4258 = vrcp.f32 %v1847_v14  ;;  %v1859_v12 = vadd.f32 1.0, %v4255_v24 }
 0x521   :  { %4260 = vrcp.f32 %v1858_v28 }
 0x522   :  { %4262 = vrcp.f32 %v1859_v12 }
 0x528   :  { %v4257_v20 = vpop.eup %4256 }
 0x529   :  { %v1864_v17 = vmul.f32 %v4257_v20, %v1834_v45 }
 0x52a   :  { %v4259_v40 = vpop.eup %4258 }
 0x52b   :  { %v1866_v47 = vadd.f32 %v1864_v17, %v1832_v25  ;;  %v1865_v37 = vmul.f32 %v4259_v40, %v1838_v22  ;;  %v7651_v17 = vld [vmem:[#allocation102_spill] sm:$0xff]  ;;  %v4261_v52 = vpop.eup %4260 }
 0x52c   :  { %v1912_v19 = vpop.f32.mrb[40].mxu1  ;;  %v1955_v39 = vpop.f32.mrb[56].mxu0 }
 0x52d   :  { %4264 = vtanh.f32 %v1866_v47  ;;  %v1867_v14 = vadd.f32 %v1865_v37, %v1836_v21  ;;  %v1913_v9 = vadd.f32 %v1912_v19, %v7649_v23  ;;  %v1914_v24 = vpop.f32.mrb[41].mxu1  ;;  %v3810_v35 = vpop.f32.mrb[57].mxu0  ;;  %v7652_v21 = vld [vmem:[#allocation105_spill] sm:$0xff]  ;;  %v7653_v19 = vld [vmem:[#allocation106_spill] sm:$0xff] }
 0x52e   :  { %v1915_v3 = vadd.f32 %v1914_v24, %v5551_v10  ;;  %v1916_v28 = vpop.f32.mrb[42].mxu1  ;;  %v1958_v45 = vpop.f32.mrb[58].mxu0 }
 0x52f   :  { %4266 = vtanh.f32 %v1867_v14  ;;  %v1962_v20 = vadd.f32 %v1913_v9, %v7650_v5  ;;  %v1917_v25 = vadd.f32 %v1916_v28, %v7649_v23  ;;  %v1918_v6 = vpop.f32.mrb[43].mxu1  ;;  %v3811_v12 = vpop.f32.mrb[59].mxu0  ;;  %v1870_v9 = vsub.f32 1.0, %v4261_v52 }
 0x530   :  { %v1976_v22 = vadd.f32 %v1915_v3, %v7651_v17  ;;  %v1919_v40 = vadd.f32 %v1918_v6, %v5551_v10  ;;  %v4263_v4 = vpop.eup %4262  ;;  %v1874_v3 = vmul.f32 %v4261_v52, %v6059_v27 }
 0x531   :  { %v3507_v47 = vmul.f32 -1.442695, %v1962_v20  ;;  %v1963_v37 = vadd.f32 %v1917_v25, %v7652_v21  ;;  %v1871_v23 = vsub.f32 1.0, %v4263_v4  ;;  %v1875_v25 = vmul.f32 %v4263_v4, %v6061_v15 }
 0x532   :  { %v1977_v35 = vadd.f32 %v1919_v40, %v7653_v19  ;;  %v3509_v14 = vmul.f32 -1.442695, %v1976_v22  ;;  %v1956_v4 = vadd.f32 %v1955_v39, %v5612_v42 }
 0x533   :  { %4268 = vpow2.f32 %v3507_v47  ;;  %v3508_v24 = vmul.f32 -1.442695, %v1963_v37 }
 0x534   :  { %v3510_v28 = vmul.f32 -1.442695, %v1977_v35 }
 0x535   :  { %4270 = vpow2.f32 %v3508_v24 }
 0x536   :  { %4272 = vpow2.f32 %v3509_v14  ;;  %v1959_v14 = vadd.f32 %v1958_v45, %v5612_v42 }
 0x537   :  { %v4265_v5 = vpop.eup %4264  ;;  %4274 = vpow2.f32 %v3510_v28 }
 0x538   :  { %v1872_v12 = vmul.f32 %v4265_v5, %v1870_v9  ;;  %v7655_v5 = vld [vmem:[#allocation92_spill] sm:$0xff] }
 0x539   :  { %v4267_v17 = vpop.eup %4266 }
 0x53a   :  { %v1873_v20 = vmul.f32 %v4267_v17, %v1871_v23  ;;  %v6214_v6 = vadd.f32 %v1874_v3, %v1872_v12  ;;  %v7656_v3 = vld [vmem:[#allocation91_spill] sm:$0xff] }
 0x53c   :  { %v6216_v40 = vadd.f32 %v1875_v25, %v1873_v20 }
 0x53d   :  { %v4269_v47 = vpop.eup %4268 }
 0x53e   :  { %v1970_v21 = vadd.f32 1.0, %v4269_v47  ;;  %v6220_v22 = vpack.c.bf16 %v6216_v40, %v6214_v6 }
 0x53f   :  { %v4271_v37 = vpop.eup %4270 }
 0x540   :  { %7654 = vst [vmem:[#allocation93_spill] sm:$0xff] %v6220_v22  ;;  %4276 = vrcp.f32 %v1970_v21  ;;  %v1971_v19 = vadd.f32 1.0, %v4271_v37  ;;  %2038 = vmatprep.mubr.bf16.mxu1 %v6220_v22  ;;  %2081 = vmatprep.mubr.bf16.mxu0 %v6220_v22  ;;  %v4273_v27 = vpop.eup %4272  ;;  %v6510_v22 = vld [vmem:[#allocation11 + $0x80] ss:$16 sps:$4 sm:$0xff]  }
 0x541   :  { %v4275_v15 = vpop.eup %4274  ;;  %v1984_v52 = vadd.f32 1.0, %v4273_v27  ;;  %7729 = vst [vmem:[#allocation101_spill] sm:$0xff] %v6510_v22 }
 0x542   :  { %4278 = vrcp.f32 %v1971_v19  ;;  %v1985_v23 = vadd.f32 1.0, %v4275_v15 }
 0x543   :  { %4280 = vrcp.f32 %v1984_v52 }
 0x544   :  { %4282 = vrcp.f32 %v1985_v23 }
 0x54a   :  { %v4277_v35 = vpop.eup %4276 }
 0x54b   :  { %v1990_v24 = vmul.f32 %v4277_v35, %v1956_v4  ;;  %v6236_v35 = vld [vmem:[#allocation8] ss:$12 sps:$4 sm:$0xff]  }
 0x54c   :  { %v4279_v9 = vpop.eup %4278 }
 0x54d   :  { %v1992_v28 = vadd.f32 %v1990_v24, %v7655_v5  ;;  %v1991_v12 = vmul.f32 %v4279_v9, %v1959_v14  ;;  %v4281_v20 = vpop.eup %4280  ;;  %v6239_v24 = vld [vmem:[#allocation8 + $0x8] ss:$12 sps:$4 sm:$0xff]   ;;  %v7691_v9 = vld [vmem:[#allocation74_spill] sm:$0xff] }
 0x54e   :  { %v4283_v25 = vpop.eup %4282  ;;  %v1996_v47 = vsub.f32 1.0, %v4281_v20  ;;  %v2000_v19 = vmul.f32 %v4281_v20, %v6075_v18  ;;  %v6242_v18 = vld [vmem:[#allocation8 + $0x1c] ss:$12 sps:$4 sm:$0xff]  }
 0x54f   :  { %4284 = vtanh.f32 %v1992_v28  ;;  %v1993_v17 = vadd.f32 %v1991_v12, %v7656_v3  ;;  %v1997_v39 = vsub.f32 1.0, %v4283_v25  ;;  %v2001_v45 = vmul.f32 %v4283_v25, %v6077_v33  ;;  %v6249_v33 = vld [vmem:[#allocation8 + $0x18] ss:$12 sps:$4 sm:$0xff]   ;;  %v7690_v14 = vld [vmem:[#allocation71_spill] sm:$0xff]  ;;  %v7693_v28 = vld [vmem:[#allocation76_spill] sm:$0xff] }
 0x550   :  { %v7692_v5 = vld [vmem:[#allocation75_spill] sm:$0xff]  ;;  %v7694_v12 = vld [vmem:[#allocation77_spill] sm:$0xff]  ;;  %v7695_v3 = vld [vmem:[#allocation78_spill] sm:$0xff] }
 0x551   :  { %4286 = vtanh.f32 %v1993_v17  ;;  %v7696_v17 = vld [vmem:[#allocation79_spill] sm:$0xff]  ;;  %v7697_v20 = vld [vmem:[#allocation81_spill] sm:$0xff]  ;;  %v7698_v25 = vld [vmem:[#allocation82_spill] sm:$0xff] }
 0x559   :  { %v4285_v21 = vpop.eup %4284 }
 0x55a   :  { %v1998_v37 = vmul.f32 %v4285_v21, %v1996_v47  ;;  %v7699_v47 = vld [vmem:[#allocation85_spill] sm:$0xff]  ;;  %v7700_v21 = vld [vmem:[#allocation86_spill] sm:$0xff] }
 0x55b   :  { %v4287_v27 = vpop.eup %4286 }
 0x55c   :  { %v1999_v15 = vmul.f32 %v4287_v27, %v1997_v39  ;;  %v6230_v52 = vadd.f32 %v2000_v19, %v1998_v37  ;;  %v7701_v39 = vld [vmem:[#allocation89_spill] sm:$0xff]  ;;  %v7702_v37 = vld [vmem:[#allocation90_spill] sm:$0xff]  ;;  %v7703_v19 = vld [vmem:[#allocation72_spill] sm:$0xff] }
 0x55d   :  { %v7704_v27 = vld [vmem:[#allocation73_spill] sm:$0xff] }
 0x55e   :  { %v6232_v4 = vadd.f32 %v2001_v45, %v1999_v15  ;;  %v7705_v15 = vld [vmem:[#allocation84_spill] sm:$0xff]  ;;  %v7706_v45 = vld [vmem:[#allocation83_spill] sm:$0xff] }
 0x560   :  { %v2004_v23 = vpack.c.bf16 %v6232_v4, %v6230_v52 }
 0x562   :  { %2039 = vmatmul.mubr.bf16.vlgmr.msra.gmra.mrb[44].mxu1 %v2004_v23  ;;  %2082 = vmatmul.mubr.bf16.vlgmr.msra.gmra.mrb[60].mxu0 %v2004_v23 }
 0x563   :  { %2131 = vmatpush1.bf16.msra.mxu1 %v6236_v35  ;;  %3813 = vmatpush3.bf16.msra.mxu0 %v6239_v24 }
 0x564   :  { %2132 = vmatprep.subr.bf16.mxu1 %v6242_v18  ;;  %3814 = vmatprep.subr.bf16.mxu0 %v7420_v53 }
 0x565   :  { %2162 = vmatprep.mubr.bf16.mxu1 %v7467_v50  ;;  %3828 = vmatprep.mubr.msk.bf16.mxu0 %vm4940_vm0, %v7420_v53 }
 0x567   :  { %2133 = vmatpush1.bf16.msra.mxu1 %v6249_v33  ;;  %3815 = vmatpush3.bf16.msra.mxu0 %v5800_v7  ;;  %v7657_v7 = vld [vmem:[#allocation38_spill] sm:$0xff] }
 0x568   :  { %2134 = vmatprep.subr.bf16.mxu1 %v5803_v0  ;;  %3816 = vmatprep.subr.bf16.mxu0 %v7420_v53  ;;  %v7658_v0 = vld [vmem:[#allocation39_spill] sm:$0xff] }
 0x56b   :  { %2135 = vmatpush1.bf16.msra.mxu1 %v5807_v29  ;;  %3817 = vmatpush3.bf16.msra.mxu0 %v5810_v26  ;;  %v7659_v29 = vld [vmem:[#allocation40_spill] sm:$0xff]  ;;  %v7660_v26 = vld [vmem:[#allocation41_spill] sm:$0xff] }
 0x56c   :  { %2136 = vmatprep.subr.bf16.mxu1 %v5813_v30  ;;  %3818 = vmatprep.subr.bf16.mxu0 %v7420_v53  ;;  %v7661_v30 = vld [vmem:[#allocation42_spill] sm:$0xff] }
 0x56f   :  { %2137 = vmatpush1.bf16.msra.mxu1 %v5817_v36  ;;  %3819 = vmatpush3.bf16.msra.mxu0 %v5820_v38  ;;  %v7662_v36 = vld [vmem:[#allocation43_spill] sm:$0xff]  ;;  %v7663_v38 = vld [vmem:[#allocation44_spill] sm:$0xff] }
 0x570   :  { %2138 = vmatprep.subr.bf16.mxu1 %v5823_v31  ;;  %3820 = vmatprep.subr.bf16.mxu0 %v7420_v53  ;;  %v7664_v31 = vld [vmem:[#allocation45_spill] sm:$0xff] }
 0x573   :  { %2139 = vmatpush1.bf16.msra.mxu1 %v5827_v41  ;;  %3821 = vmatpush3.bf16.msra.mxu0 %v5830_v46  ;;  %v7665_v41 = vld [vmem:[#allocation46_spill] sm:$0xff]  ;;  %v7666_v46 = vld [vmem:[#allocation47_spill] sm:$0xff] }
 0x574   :  { %2140 = vmatprep.subr.bf16.mxu1 %v5833_v48  ;;  %3822 = vmatprep.subr.bf16.mxu0 %v7420_v53  ;;  %v7667_v48 = vld [vmem:[#allocation48_spill] sm:$0xff] }
 0x577   :  { %2141 = vmatpush1.bf16.msra.mxu1 %v5837_v51  ;;  %3823 = vmatpush3.bf16.msra.mxu0 %v5840_v43  ;;  %v7668_v51 = vld [vmem:[#allocation49_spill] sm:$0xff]  ;;  %v7669_v43 = vld [vmem:[#allocation50_spill] sm:$0xff] }
 0x578   :  { %2142 = vmatprep.subr.bf16.mxu1 %v5843_v54  ;;  %3824 = vmatprep.subr.bf16.mxu0 %v7420_v53  ;;  %v7670_v54 = vld [vmem:[#allocation51_spill] sm:$0xff] }
 0x57b   :  { %2143 = vmatpush1.bf16.msra.mxu1 %v5847_v55  ;;  %3825 = vmatpush3.bf16.msra.mxu0 %v5850_v56  ;;  %v7671_v55 = vld [vmem:[#allocation52_spill] sm:$0xff]  ;;  %v7672_v56 = vld [vmem:[#allocation53_spill] sm:$0xff] }
 0x57c   :  { %2144 = vmatprep.subr.bf16.mxu1 %v5853_v57  ;;  %3826 = vmatprep.subr.bf16.mxu0 %v7420_v53  ;;  %v7673_v57 = vld [vmem:[#allocation54_spill] sm:$0xff] }
 0x57f   :  { %2145 = vmatpush1.bf16.msra.mxu1 %v5857_v58  ;;  %3827 = vmatpush3.bf16.msra.mxu0 %v5860_v59  ;;  %v7674_v58 = vld [vmem:[#allocation55_spill] sm:$0xff]  ;;  %v7675_v59 = vld [vmem:[#allocation56_spill] sm:$0xff] }
 0x580   :  { %2258 = vmatprep.subr.bf16.mxu1 %v5863_v60  ;;  %2301 = vmatprep.subr.bf16.mxu0 %v5866_v61  ;;  %v7676_v60 = vld [vmem:[#allocation57_spill] sm:$0xff]  ;;  %v7677_v61 = vld [vmem:[#allocation58_spill] sm:$0xff] }
 0x582   :  { %2163 = vmatmul.mubr.bf16.vlgmr.msra.gmra.mrb[48].mxu1 %v2004_v23  ;;  %3829 = vmatmul.mubr.bf16.vlgmr.msra.gmra.mrb[64].mxu0 %v2004_v23  ;;  %v6341_v23 = vld [vmem:[#allocation8 + $0x4] ss:$12 sps:$4 sm:$0xff]  }
 0x583   :  { %2259 = vmatpush1.bf16.msra.mxu1 %v5869_v62  ;;  %2302 = vmatpush1.bf16.msra.mxu0 %v5872_v63  ;;  %v7678_v62 = vld [vmem:[#allocation59_spill] sm:$0xff]  ;;  %v7679_v63 = vld [vmem:[#allocation60_spill] sm:$0xff]  ;;  %7707 = vst [vmem:[#allocation94_spill] sm:$0xff] %v6341_v23 }
 0x584   :  { %2260 = vmatprep.subr.bf16.mxu1 %v5875_v1  ;;  %2303 = vmatprep.subr.bf16.mxu0 %v5878_v2  ;;  %v7680_v1 = vld [vmem:[#allocation61_spill] sm:$0xff]  ;;  %v7681_v2 = vld [vmem:[#allocation62_spill] sm:$0xff] }
 0x587   :  { %2261 = vmatpush1.bf16.msra.mxu1 %v5881_v8  ;;  %2304 = vmatpush1.bf16.msra.mxu0 %v5884_v32  ;;  %v7682_v8 = vld [vmem:[#allocation63_spill] sm:$0xff]  ;;  %v7683_v32 = vld [vmem:[#allocation64_spill] sm:$0xff] }
 0x588   :  { %2262 = vmatprep.subr.bf16.mxu1 %v5887_v34  ;;  %2305 = vmatprep.subr.bf16.mxu0 %v7590_v16  ;;  %v7684_v34 = vld [vmem:[#allocation65_spill] sm:$0xff]  ;;  %v7685_v16 = vld [vmem:[#allocation66_spill] sm:$0xff] }
 0x58b   :  { %2263 = vmatpush1.bf16.msra.mxu1 %v7591_v13  ;;  %2306 = vmatpush1.bf16.msra.mxu0 %v7592_v49  ;;  %v7686_v13 = vld [vmem:[#allocation67_spill] sm:$0xff]  ;;  %v7687_v49 = vld [vmem:[#allocation68_spill] sm:$0xff] }
 0x58c   :  { %2264 = vmatprep.subr.bf16.mxu1 %v7593_v11  ;;  %2307 = vmatprep.subr.bf16.mxu0 %v7594_v44  ;;  %v7688_v11 = vld [vmem:[#allocation69_spill] sm:$0xff]  ;;  %v7689_v44 = vld [vmem:[#allocation70_spill] sm:$0xff] }
 0x58f   :  { %2265 = vmatpush1.bf16.msra.mxu1 %v7657_v7  ;;  %2308 = vmatpush1.bf16.msra.mxu0 %v7658_v0 }
 0x590   :  { %2266 = vmatprep.subr.bf16.mxu1 %v7659_v29  ;;  %2309 = vmatprep.subr.bf16.mxu0 %v7660_v26  ;;  %v7708_v29 = vld [vmem:[#allocation28_spill] sm:$0xff] }
 0x593   :  { %2267 = vmatpush1.bf16.msra.mxu1 %v7661_v30  ;;  %2310 = vmatpush1.bf16.msra.mxu0 %v7662_v36 }
 0x594   :  { %2268 = vmatprep.subr.bf16.mxu1 %v7663_v38  ;;  %2311 = vmatprep.subr.bf16.mxu0 %v7664_v31 }
 0x597   :  { %2269 = vmatpush1.bf16.msra.mxu1 %v7665_v41  ;;  %2312 = vmatpush1.bf16.msra.mxu0 %v7666_v46 }
 0x598   :  { %2270 = vmatprep.subr.bf16.mxu1 %v7667_v48  ;;  %2313 = vmatprep.subr.bf16.mxu0 %v7668_v51 }
 0x59b   :  { %2271 = vmatpush1.bf16.msra.mxu1 %v7669_v43  ;;  %2314 = vmatpush1.bf16.msra.mxu0 %v7670_v54  ;;  %v7709_v43 = vld [vmem:[#allocation29_spill] sm:$0xff] }
 0x59c   :  { %2272 = vmatprep.subr.bf16.mxu1 %v7671_v55  ;;  %2315 = vmatprep.subr.bf16.mxu0 %v7672_v56 }
 0x59f   :  { %2273 = vmatpush1.bf16.msra.mxu1 %v7673_v57  ;;  %2316 = vmatpush1.bf16.msra.mxu0 %v7674_v58 }
 0x5a0   :  { %2274 = vmatprep.subr.bf16.mxu1 %v7675_v59  ;;  %2317 = vmatprep.subr.bf16.mxu0 %v7676_v60 }
 0x5a3   :  { %2275 = vmatpush1.bf16.msra.mxu1 %v7677_v61  ;;  %2318 = vmatpush1.bf16.msra.mxu0 %v7678_v62 }
 0x5a4   :  { %2276 = vmatprep.subr.bf16.mxu1 %v7679_v63  ;;  %2319 = vmatprep.subr.bf16.mxu0 %v7680_v1 }
 0x5a7   :  { %2277 = vmatpush1.bf16.msra.mxu1 %v7681_v2  ;;  %2320 = vmatpush1.bf16.msra.mxu0 %v7682_v8  ;;  %v7710_v8 = vld [vmem:[#allocation30_spill] sm:$0xff] }
 0x5a8   :  { %2278 = vmatprep.subr.bf16.mxu1 %v7683_v32  ;;  %2321 = vmatprep.subr.bf16.mxu0 %v7684_v34 }
 0x5ab   :  { %2279 = vmatpush1.bf16.msra.mxu1 %v7685_v16  ;;  %2322 = vmatpush1.bf16.msra.mxu0 %v7686_v13  ;;  %v7711_v13 = vld [vmem:[#allocation31_spill] sm:$0xff] }
 0x5ac   :  { %2280 = vmatprep.subr.bf16.mxu1 %v7687_v49  ;;  %2323 = vmatprep.subr.bf16.mxu0 %v7688_v11 }
 0x5af   :  { %2281 = vmatpush1.bf16.msra.mxu1 %v7689_v44  ;;  %2324 = vmatpush1.bf16.msra.mxu0 %v7690_v14 }
 0x5b0   :  { %2282 = vmatprep.subr.bf16.mxu1 %v7691_v9  ;;  %2325 = vmatprep.subr.bf16.mxu0 %v7692_v5 }
 0x5b3   :  { %2283 = vmatpush1.bf16.msra.mxu1 %v7693_v28  ;;  %2326 = vmatpush1.bf16.msra.mxu0 %v7694_v12 }
 0x5b4   :  { %2284 = vmatprep.subr.bf16.mxu1 %v7695_v3  ;;  %2327 = vmatprep.subr.bf16.mxu0 %v7696_v17 }
 0x5b7   :  { %2285 = vmatpush1.bf16.msra.mxu1 %v7697_v20  ;;  %2328 = vmatpush1.bf16.msra.mxu0 %v7698_v25  ;;  %v7712_v20 = vld [vmem:[#allocation108_spill] sm:$0xff] }
 0x5b8   :  { %2286 = vmatprep.subr.bf16.mxu1 %v7699_v47  ;;  %2329 = vmatprep.subr.bf16.mxu0 %v7700_v21 }
 0x5bb   :  { %2287 = vmatpush1.bf16.msra.mxu1 %v7701_v39  ;;  %2330 = vmatpush1.bf16.msra.mxu0 %v7702_v37 }
 0x5bc   :  { %2288 = vmatprep.subr.bf16.mxu1 %v7703_v19  ;;  %2331 = vmatprep.subr.bf16.mxu0 %v7704_v27 }
 0x5bf   :  { %2289 = vmatpush1.bf16.msra.mxu1 %v7705_v15  ;;  %2332 = vmatpush1.bf16.msra.mxu0 %v7706_v45 }
 0x5c0   :  { %2382 = vmatprep.subr.bf16.mxu1 %v6341_v23  ;;  %3832 = vmatprep.subr.bf16.mxu0 %v7420_v53 }
 0x635   :  { %v2040_v7 = vpop.f32.mrb[44].mxu1  ;;  %v2083_v0 = vpop.f32.mrb[60].mxu0 }
 0x636   :  { %v2041_v26 = vadd.f32 %v2040_v7, %v7708_v29  ;;  %v2042_v30 = vpop.f32.mrb[45].mxu1  ;;  %v2085_v36 = vpop.f32.mrb[61].mxu0  ;;  %v2084_v49 = vadd.f32 %v2083_v0, %v7711_v13 }
 0x637   :  { %v2044_v38 = vpop.f32.mrb[46].mxu1  ;;  %v2087_v31 = vpop.f32.mrb[62].mxu0  ;;  %v2043_v54 = vadd.f32 %v2042_v30, %v7709_v43  ;;  %v2086_v32 = vadd.f32 %v2085_v36, %v7710_v8 }
 0x638   :  { %v3511_v41 = vmul.f32 -1.442695, %v2041_v26  ;;  %v2045_v46 = vadd.f32 %v2044_v38, %v7708_v29  ;;  %v2046_v48 = vpop.f32.mrb[47].mxu1  ;;  %v2089_v51 = vpop.f32.mrb[63].mxu0  ;;  %v2088_v5 = vadd.f32 %v2087_v31, %v7711_v13  ;;  %v7713_v38 = vld [vmem:[#allocation110_spill] sm:$0xff] }
 0x639   :  { %v2047_v56 = vadd.f32 %v2046_v48, %v7709_v43  ;;  %v3513_v57 = vmul.f32 -1.442695, %v2043_v54  ;;  %v2090_v44 = vadd.f32 %v2089_v51, %v7710_v8  ;;  %v7714_v51 = vld [vmem:[#allocation111_spill] sm:$0xff] }
 0x63a   :  { %4288 = vpow2.f32 %v3511_v41  ;;  %v3512_v55 = vmul.f32 -1.442695, %v2045_v46 }
 0x63b   :  { %v3514_v58 = vmul.f32 -1.442695, %v2047_v56 }
 0x63c   :  { %4290 = vpow2.f32 %v3512_v55 }
 0x63d   :  { %4292 = vpow2.f32 %v3513_v57  ;;  %v7715_v57 = vld [vmem:[#allocation112_spill] sm:$0xff] }
 0x63e   :  { %4294 = vpow2.f32 %v3514_v58 }
 0x644   :  { %v4289_v59 = vpop.eup %4288 }
 0x645   :  { %v2098_v60 = vadd.f32 1.0, %v4289_v59  ;;  %v7716_v59 = vld [vmem:[#allocation113_spill] sm:$0xff] }
 0x646   :  { %v4291_v61 = vpop.eup %4290 }
 0x647   :  { %4296 = vrcp.f32 %v2098_v60  ;;  %v2099_v62 = vadd.f32 1.0, %v4291_v61  ;;  %v4293_v63 = vpop.eup %4292 }
 0x648   :  { %v4295_v1 = vpop.eup %4294  ;;  %v2110_v2 = vadd.f32 1.0, %v4293_v63 }
 0x649   :  { %4298 = vrcp.f32 %v2099_v62  ;;  %v2111_v34 = vadd.f32 1.0, %v4295_v1 }
 0x64a   :  { %4300 = vrcp.f32 %v2110_v2 }
 0x64b   :  { %4302 = vrcp.f32 %v2111_v34 }
 0x651   :  { %v4297_v16 = vpop.eup %4296 }
 0x652   :  { %v2116_v11 = vmul.f32 %v4297_v16, %v2086_v32 }
 0x653   :  { %v4299_v14 = vpop.eup %4298 }
 0x654   :  { %v2118_v9 = vadd.f32 %v2116_v11, %v2084_v49  ;;  %v2117_v28 = vmul.f32 %v4299_v14, %v2090_v44  ;;  %v4301_v61 = vpop.eup %4300 }
 0x655   :  { %v2164_v12 = vpop.f32.mrb[48].mxu1  ;;  %v2207_v3 = vpop.f32.mrb[64].mxu0  ;;  %v2122_v2 = vsub.f32 1.0, %v4301_v61  ;;  %v2126_v11 = vmul.f32 %v4301_v61, %v6214_v6 }
 0x656   :  { %4304 = vtanh.f32 %v2118_v9  ;;  %v2119_v17 = vadd.f32 %v2117_v28, %v2088_v5  ;;  %v2165_v25 = vadd.f32 %v2164_v12, %v7712_v20  ;;  %v2166_v7 = vpop.f32.mrb[49].mxu1  ;;  %v3830_v26 = vpop.f32.mrb[65].mxu0 }
 0x657   :  { %v2167_v0 = vadd.f32 %v2166_v7, %v5551_v10  ;;  %v2168_v30 = vpop.f32.mrb[50].mxu1  ;;  %v2210_v36 = vpop.f32.mrb[66].mxu0 }
 0x658   :  { %4306 = vtanh.f32 %v2119_v17  ;;  %v2214_v41 = vadd.f32 %v2165_v25, %v7713_v38  ;;  %v2169_v46 = vadd.f32 %v2168_v30, %v7712_v20  ;;  %v2170_v31 = vpop.f32.mrb[51].mxu1  ;;  %v3831_v48 = vpop.f32.mrb[67].mxu0  ;;  %v2208_v30 = vadd.f32 %v2207_v3, %v5612_v42 }
 0x659   :  { %v2228_v54 = vadd.f32 %v2167_v0, %v7714_v51  ;;  %v2171_v55 = vadd.f32 %v2170_v31, %v5551_v10  ;;  %v4303_v63 = vpop.eup %4302  ;;  %v2211_v31 = vadd.f32 %v2210_v36, %v5612_v42  ;;  %v7718_v51 = vld [vmem:[#allocation96_spill] sm:$0xff] }
 0x65a   :  { %v3515_v56 = vmul.f32 -1.442695, %v2214_v41  ;;  %v2215_v58 = vadd.f32 %v2169_v46, %v7715_v57  ;;  %v2123_v16 = vsub.f32 1.0, %v4303_v63  ;;  %v2127_v9 = vmul.f32 %v4303_v63, %v6216_v40 }
 0x65b   :  { %v2229_v60 = vadd.f32 %v2171_v55, %v7716_v59  ;;  %v3517_v1 = vmul.f32 -1.442695, %v2228_v54 }
 0x65c   :  { %4308 = vpow2.f32 %v3515_v56  ;;  %v3516_v62 = vmul.f32 -1.442695, %v2215_v58  ;;  %v7719_v56 = vld [vmem:[#allocation95_spill] sm:$0xff] }
 0x65d   :  { %v3518_v34 = vmul.f32 -1.442695, %v2229_v60 }
 0x65e   :  { %4310 = vpow2.f32 %v3516_v62 }
 0x65f   :  { %4312 = vpow2.f32 %v3517_v1 }
 0x660   :  { %v4305_v32 = vpop.eup %4304  ;;  %4314 = vpow2.f32 %v3518_v34 }
 0x661   :  { %v2124_v49 = vmul.f32 %v4305_v32, %v2122_v2 }
 0x662   :  { %v4307_v44 = vpop.eup %4306 }
 0x663   :  { %v2125_v14 = vmul.f32 %v4307_v44, %v2123_v16  ;;  %v6363_v5 = vadd.f32 %v2126_v11, %v2124_v49  ;;  %v6400_v49 = vld [vmem:[#allocation8 + $0x30] ss:$12 sps:$4 sm:$0xff]   ;;  %v6403_v11 = vld [vmem:[#allocation8 + $0x38] ss:$12 sps:$4 sm:$0xff]  }
 0x664   :  { %v6406_v44 = vld [vmem:[#allocation8 + $0x4c] ss:$12 sps:$4 sm:$0xff]  }
 0x665   :  { %v6365_v28 = vadd.f32 %v2127_v9, %v2125_v14  ;;  %v6410_v14 = vld [vmem:[#allocation8 + $0x48] ss:$12 sps:$4 sm:$0xff]   ;;  %v6413_v9 = vld [vmem:[#allocation8 + $0x50] ss:$12 sps:$4 sm:$0xff]  }
 0x666   :  { %v4309_v12 = vpop.eup %4308 }
 0x667   :  { %v2222_v17 = vadd.f32 1.0, %v4309_v12  ;;  %v6369_v25 = vpack.c.bf16 %v6365_v28, %v6363_v5  ;;  %v6416_v12 = vld [vmem:[#allocation8 + $0x64] ss:$12 sps:$4 sm:$0xff]  }
 0x668   :  { %v4311_v7 = vpop.eup %4310 }
 0x669   :  { %7717 = vst [vmem:[#allocation97_spill] sm:$0xff] %v6369_v25  ;;  %4316 = vrcp.f32 %v2222_v17  ;;  %v2223_v26 = vadd.f32 1.0, %v4311_v7  ;;  %2290 = vmatprep.mubr.bf16.mxu1 %v6369_v25  ;;  %2333 = vmatprep.mubr.bf16.mxu0 %v6369_v25  ;;  %v4313_v6 = vpop.eup %4312  ;;  %v6420_v17 = vld [vmem:[#allocation8 + $0x60] ss:$12 sps:$4 sm:$0xff]   ;;  %v6423_v7 = vld [vmem:[#allocation8 + $0x68] ss:$12 sps:$4 sm:$0xff]  }
 0x66a   :  { %v4315_v40 = vpop.eup %4314  ;;  %v2236_v0 = vadd.f32 1.0, %v4313_v6  ;;  %v6430_v6 = vld [vmem:[#allocation8 + $0x78] ss:$12 sps:$4 sm:$0xff]   ;;  %v6507_v25 = vld [vmem:[#allocation11 + $0x8c] ss:$16 sps:$4 sm:$0xff]  }
 0x66b   :  { %4318 = vrcp.f32 %v2223_v26  ;;  %v2237_v38 = vadd.f32 1.0, %v4315_v40  ;;  %v6426_v26 = vld [vmem:[#allocation8 + $0x7c] ss:$12 sps:$4 sm:$0xff]   ;;  %v6433_v40 = vld [vmem:[#allocation8 + $0x80] ss:$12 sps:$4 sm:$0xff]   ;;  %7728 = vst [vmem:[#allocation27_spill] sm:$0xff] %v6507_v25 }
 0x66c   :  { %4320 = vrcp.f32 %v2236_v0  ;;  %v6436_v0 = vld [vmem:[#allocation8 + $0x94] ss:$12 sps:$4 sm:$0xff]  }
 0x66d   :  { %4322 = vrcp.f32 %v2237_v38  ;;  %v6443_v38 = vld [vmem:[#allocation8 + $0x98] ss:$12 sps:$4 sm:$0xff]  }
 0x673   :  { %v4317_v41 = vpop.eup %4316 }
 0x674   :  { %v2242_v46 = vmul.f32 %v4317_v41, %v2208_v30  ;;  %v6440_v30 = vld [vmem:[#allocation8 + $0x90] ss:$12 sps:$4 sm:$0xff]   ;;  %v6446_v41 = vld [vmem:[#allocation8 + $0xac] ss:$12 sps:$4 sm:$0xff]  }
 0x675   :  { %v4319_v48 = vpop.eup %4318 }
 0x676   :  { %v2244_v54 = vadd.f32 %v2242_v46, %v7718_v51  ;;  %v2243_v55 = vmul.f32 %v4319_v48, %v2211_v31  ;;  %v4321_v58 = vpop.eup %4320  ;;  %v6450_v46 = vld [vmem:[#allocation8 + $0xa8] ss:$12 sps:$4 sm:$0xff]   ;;  %v6453_v31 = vld [vmem:[#allocation8 + $0xb0] ss:$12 sps:$4 sm:$0xff]  }
 0x677   :  { %v4323_v59 = vpop.eup %4322  ;;  %v2248_v60 = vsub.f32 1.0, %v4321_v58  ;;  %v2252_v63 = vmul.f32 %v4321_v58, %v6230_v52  ;;  %v6393_v52 = vld [vmem:[#allocation8 + $0x20] ss:$12 sps:$4 sm:$0xff]   ;;  %v6456_v48 = vld [vmem:[#allocation11 + $0x4] ss:$16 sps:$4 sm:$0xff]  }
 0x678   :  { %4324 = vtanh.f32 %v2244_v54  ;;  %v2245_v57 = vadd.f32 %v2243_v55, %v7719_v56  ;;  %v2249_v3 = vsub.f32 1.0, %v4323_v59  ;;  %v2253_v36 = vmul.f32 %v4323_v59, %v6232_v4  ;;  %v6396_v4 = vld [vmem:[#allocation8 + $0x34] ss:$12 sps:$4 sm:$0xff]   ;;  %v6465_v55 = vld [vmem:[#allocation11 + $0x8] ss:$16 sps:$4 sm:$0xff]  }
 0x679   :  { %v6459_v51 = vld [vmem:[#allocation11 + $0xc] ss:$16 sps:$4 sm:$0xff]   ;;  %v6462_v54 = vld [vmem:[#allocation11] ss:$16 sps:$4 sm:$0xff]   ;;  %v6468_v56 = vld [vmem:[#allocation11 + $0x24] ss:$16 sps:$4 sm:$0xff]  }
 0x67a   :  { %4326 = vtanh.f32 %v2245_v57  ;;  %v6471_v57 = vld [vmem:[#allocation11 + $0x2c] ss:$16 sps:$4 sm:$0xff]   ;;  %v6474_v58 = vld [vmem:[#allocation11 + $0x20] ss:$16 sps:$4 sm:$0xff]   ;;  %v6477_v59 = vld [vmem:[#allocation11 + $0x28] ss:$16 sps:$4 sm:$0xff]  }
 0x682   :  { %v4325_v61 = vpop.eup %4324 }
 0x683   :  { %v2250_v62 = vmul.f32 %v4325_v61, %v2248_v60  ;;  %v6480_v60 = vld [vmem:[#allocation11 + $0x44] ss:$16 sps:$4 sm:$0xff]   ;;  %v6483_v61 = vld [vmem:[#allocation11 + $0x4c] ss:$16 sps:$4 sm:$0xff]  }
 0x684   :  { %v4327_v1 = vpop.eup %4326  ;;  %7720 = vst [vmem:[#allocation98_spill] sm:$0xff] %v6483_v61 }
 0x685   :  { %v2251_v2 = vmul.f32 %v4327_v1, %v2249_v3  ;;  %v6379_v32 = vadd.f32 %v2252_v63, %v2250_v62  ;;  %v6486_v3 = vld [vmem:[#allocation11 + $0x40] ss:$16 sps:$4 sm:$0xff]   ;;  %v6489_v62 = vld [vmem:[#allocation11 + $0x48] ss:$16 sps:$4 sm:$0xff]   ;;  %v6492_v63 = vld [vmem:[#allocation11 + $0x64] ss:$16 sps:$4 sm:$0xff]  }
 0x686   :  { %7721 = vst [vmem:[#allocation88_spill] sm:$0xff] %v6486_v3  ;;  %7722 = vst [vmem:[#allocation87_spill] sm:$0xff] %v6489_v62  ;;  %v6495_v1 = vld [vmem:[#allocation11 + $0x6c] ss:$16 sps:$4 sm:$0xff]  }
 0x687   :  { %v6381_v34 = vadd.f32 %v2253_v36, %v2251_v2  ;;  %7723 = vst [vmem:[#allocation33_spill] sm:$0xff] %v6492_v63  ;;  %7724 = vst [vmem:[#allocation34_spill] sm:$0xff] %v6495_v1  ;;  %v6498_v2 = vld [vmem:[#allocation11 + $0x60] ss:$16 sps:$4 sm:$0xff]   ;;  %v6501_v36 = vld [vmem:[#allocation11 + $0x68] ss:$16 sps:$4 sm:$0xff]  }
 0x688   :  { %7725 = vst [vmem:[#allocation35_spill] sm:$0xff] %v6498_v2  ;;  %7726 = vst [vmem:[#allocation36_spill] sm:$0xff] %v6501_v36 }
 0x689   :  { %v2256_v16 = vpack.c.bf16 %v6381_v34, %v6379_v32 }
 0x68b   :  { %2291 = vmatmul.mubr.bf16.vlgmr.msra.gmra.mrb[52].mxu1 %v2256_v16  ;;  %2334 = vmatmul.mubr.bf16.vlgmr.msra.gmra.mrb[68].mxu0 %v2256_v16 }
 0x68c   :  { %2383 = vmatpush1.bf16.msra.mxu1 %v6236_v35  ;;  %3833 = vmatpush3.bf16.msra.mxu0 %v6239_v24 }
 0x68d   :  { %2384 = vmatprep.subr.bf16.mxu1 %v6242_v18  ;;  %3834 = vmatprep.subr.bf16.mxu0 %v7420_v53 }
 0x68e   :  { %2414 = vmatprep.mubr.bf16.mxu1 %v7467_v50  ;;  %3848 = vmatprep.mubr.msk.bf16.mxu0 %vm4940_vm0, %v7420_v53 }
 0x690   :  { %2385 = vmatpush1.bf16.msra.mxu1 %v6249_v33  ;;  %3835 = vmatpush3.bf16.msra.mxu0 %v6393_v52 }
 0x691   :  { %2386 = vmatprep.subr.bf16.mxu1 %v6396_v4  ;;  %3836 = vmatprep.subr.bf16.mxu0 %v7420_v53 }
 0x694   :  { %2387 = vmatpush1.bf16.msra.mxu1 %v6400_v49  ;;  %3837 = vmatpush3.bf16.msra.mxu0 %v6403_v11 }
 0x695   :  { %2388 = vmatprep.subr.bf16.mxu1 %v6406_v44  ;;  %3838 = vmatprep.subr.bf16.mxu0 %v7420_v53 }
 0x698   :  { %2389 = vmatpush1.bf16.msra.mxu1 %v6410_v14  ;;  %3839 = vmatpush3.bf16.msra.mxu0 %v6413_v9 }
 0x699   :  { %2390 = vmatprep.subr.bf16.mxu1 %v6416_v12  ;;  %3840 = vmatprep.subr.bf16.mxu0 %v7420_v53 }
 0x69c   :  { %2391 = vmatpush1.bf16.msra.mxu1 %v6420_v17  ;;  %3841 = vmatpush3.bf16.msra.mxu0 %v6423_v7 }
 0x69d   :  { %2392 = vmatprep.subr.bf16.mxu1 %v6426_v26  ;;  %3842 = vmatprep.subr.bf16.mxu0 %v7420_v53 }
 0x6a0   :  { %2393 = vmatpush1.bf16.msra.mxu1 %v6430_v6  ;;  %3843 = vmatpush3.bf16.msra.mxu0 %v6433_v40 }
 0x6a1   :  { %2394 = vmatprep.subr.bf16.mxu1 %v6436_v0  ;;  %3844 = vmatprep.subr.bf16.mxu0 %v7420_v53 }
 0x6a4   :  { %2395 = vmatpush1.bf16.msra.mxu1 %v6440_v30  ;;  %3845 = vmatpush3.bf16.msra.mxu0 %v6443_v38 }
 0x6a5   :  { %2396 = vmatprep.subr.bf16.mxu1 %v6446_v41  ;;  %3846 = vmatprep.subr.bf16.mxu0 %v7420_v53 }
 0x6a8   :  { %2397 = vmatpush1.bf16.msra.mxu1 %v6450_v46  ;;  %3847 = vmatpush3.bf16.msra.mxu0 %v6453_v31 }
 0x6a9   :  { %2510 = vmatprep.subr.bf16.mxu1 %v6456_v48  ;;  %2553 = vmatprep.subr.bf16.mxu0 %v6459_v51 }
 0x6ab   :  { %2415 = vmatmul.mubr.bf16.vlgmr.msra.gmra.mrb[56].mxu1 %v2256_v16  ;;  %3849 = vmatmul.mubr.bf16.vlgmr.msra.gmra.mrb[72].mxu0 %v2256_v16  ;;  %v6504_v16 = vld [vmem:[#allocation11 + $0x84] ss:$16 sps:$4 sm:$0xff]  }
 0x6ac   :  { %2511 = vmatpush1.bf16.msra.mxu1 %v6462_v54  ;;  %2554 = vmatpush1.bf16.msra.mxu0 %v6465_v55  ;;  %7727 = vst [vmem:[#allocation37_spill] sm:$0xff] %v6504_v16 }
 0x6ad   :  { %2512 = vmatprep.subr.bf16.mxu1 %v6468_v56  ;;  %2555 = vmatprep.subr.bf16.mxu0 %v6471_v57 }
 0x6b0   :  { %2513 = vmatpush1.bf16.msra.mxu1 %v6474_v58  ;;  %2556 = vmatpush1.bf16.msra.mxu0 %v6477_v59 }
 0x6b1   :  { %2514 = vmatprep.subr.bf16.mxu1 %v6480_v60  ;;  %2557 = vmatprep.subr.bf16.mxu0 %v6483_v61 }
 0x6b4   :  { %2515 = vmatpush1.bf16.msra.mxu1 %v6486_v3  ;;  %2558 = vmatpush1.bf16.msra.mxu0 %v6489_v62 }
 0x6b5   :  { %2516 = vmatprep.subr.bf16.mxu1 %v6492_v63  ;;  %2559 = vmatprep.subr.bf16.mxu0 %v6495_v1  ;;  %v6513_v1 = vld [vmem:[#allocation11 + $0x88] ss:$16 sps:$4 sm:$0xff]  }
 0x6b6   :  { %7730 = vst [vmem:[#allocation102_spill] sm:$0xff] %v6513_v1 }
 0x6b8   :  { %2517 = vmatpush1.bf16.msra.mxu1 %v6498_v2  ;;  %2560 = vmatpush1.bf16.msra.mxu0 %v6501_v36  ;;  %v6516_v2 = vld [vmem:[#allocation11 + $0xa4] ss:$16 sps:$4 sm:$0xff]   ;;  %v6519_v36 = vld [vmem:[#allocation11 + $0xac] ss:$16 sps:$4 sm:$0xff]  }
 0x6b9   :  { %2518 = vmatprep.subr.bf16.mxu1 %v6504_v16  ;;  %2561 = vmatprep.subr.bf16.mxu0 %v6507_v25  ;;  %7731 = vst [vmem:[#allocation105_spill] sm:$0xff] %v6516_v2  ;;  %7732 = vst [vmem:[#allocation106_spill] sm:$0xff] %v6519_v36  ;;  %v6522_v16 = vld [vmem:[#allocation11 + $0xa0] ss:$16 sps:$4 sm:$0xff]   ;;  %v6525_v25 = vld [vmem:[#allocation11 + $0xa8] ss:$16 sps:$4 sm:$0xff]  }
 0x6ba   :  { %7733 = vst [vmem:[#allocation92_spill] sm:$0xff] %v6522_v16  ;;  %7734 = vst [vmem:[#allocation91_spill] sm:$0xff] %v6525_v25 }
 0x6bc   :  { %2519 = vmatpush1.bf16.msra.mxu1 %v6510_v22  ;;  %2562 = vmatpush1.bf16.msra.mxu0 %v6513_v1  ;;  %v6528_v22 = vld [vmem:[#allocation11 + $0xc4] ss:$16 sps:$4 sm:$0xff]   ;;  %v6531_v1 = vld [vmem:[#allocation11 + $0xcc] ss:$16 sps:$4 sm:$0xff]  }
 0x6bd   :  { %2520 = vmatprep.subr.bf16.mxu1 %v6516_v2  ;;  %2563 = vmatprep.subr.bf16.mxu0 %v6519_v36  ;;  %7735 = vst [vmem:[#allocation38_spill] sm:$0xff] %v6528_v22  ;;  %7736 = vst [vmem:[#allocation39_spill] sm:$0xff] %v6531_v1  ;;  %v6534_v2 = vld [vmem:[#allocation11 + $0xc0] ss:$16 sps:$4 sm:$0xff]   ;;  %v6537_v36 = vld [vmem:[#allocation11 + $0xc8] ss:$16 sps:$4 sm:$0xff]  }
 0x6be   :  { %7737 = vst [vmem:[#allocation40_spill] sm:$0xff] %v6534_v2  ;;  %7738 = vst [vmem:[#allocation41_spill] sm:$0xff] %v6537_v36 }
 0x6c0   :  { %2521 = vmatpush1.bf16.msra.mxu1 %v6522_v16  ;;  %2564 = vmatpush1.bf16.msra.mxu0 %v6525_v25  ;;  %v6540_v16 = vld [vmem:[#allocation11 + $0xe4] ss:$16 sps:$4 sm:$0xff]   ;;  %v6543_v25 = vld [vmem:[#allocation11 + $0xec] ss:$16 sps:$4 sm:$0xff]  }
 0x6c1   :  { %2522 = vmatprep.subr.bf16.mxu1 %v6528_v22  ;;  %2565 = vmatprep.subr.bf16.mxu0 %v6531_v1  ;;  %7739 = vst [vmem:[#allocation42_spill] sm:$0xff] %v6540_v16  ;;  %7740 = vst [vmem:[#allocation43_spill] sm:$0xff] %v6543_v25  ;;  %v6546_v22 = vld [vmem:[#allocation11 + $0xe0] ss:$16 sps:$4 sm:$0xff]   ;;  %v6549_v1 = vld [vmem:[#allocation11 + $0xe8] ss:$16 sps:$4 sm:$0xff]  }
 0x6c2   :  { %7741 = vst [vmem:[#allocation44_spill] sm:$0xff] %v6546_v22  ;;  %7742 = vst [vmem:[#allocation45_spill] sm:$0xff] %v6549_v1 }
 0x6c4   :  { %2523 = vmatpush1.bf16.msra.mxu1 %v6534_v2  ;;  %2566 = vmatpush1.bf16.msra.mxu0 %v6537_v36  ;;  %v6552_v2 = vld [vmem:[#allocation11 + $0x104] ss:$16 sps:$4 sm:$0xff]   ;;  %v6555_v36 = vld [vmem:[#allocation11 + $0x10c] ss:$16 sps:$4 sm:$0xff]  }
 0x6c5   :  { %2524 = vmatprep.subr.bf16.mxu1 %v6540_v16  ;;  %2567 = vmatprep.subr.bf16.mxu0 %v6543_v25  ;;  %7743 = vst [vmem:[#allocation46_spill] sm:$0xff] %v6552_v2  ;;  %7744 = vst [vmem:[#allocation47_spill] sm:$0xff] %v6555_v36  ;;  %v6558_v16 = vld [vmem:[#allocation11 + $0x100] ss:$16 sps:$4 sm:$0xff]   ;;  %v6561_v25 = vld [vmem:[#allocation11 + $0x108] ss:$16 sps:$4 sm:$0xff]  }
 0x6c6   :  { %7745 = vst [vmem:[#allocation48_spill] sm:$0xff] %v6558_v16  ;;  %7746 = vst [vmem:[#allocation49_spill] sm:$0xff] %v6561_v25 }
 0x6c8   :  { %2525 = vmatpush1.bf16.msra.mxu1 %v6546_v22  ;;  %2568 = vmatpush1.bf16.msra.mxu0 %v6549_v1  ;;  %v6564_v22 = vld [vmem:[#allocation11 + $0x124] ss:$16 sps:$4 sm:$0xff]   ;;  %v6567_v1 = vld [vmem:[#allocation11 + $0x12c] ss:$16 sps:$4 sm:$0xff]  }
 0x6c9   :  { %2526 = vmatprep.subr.bf16.mxu1 %v6552_v2  ;;  %2569 = vmatprep.subr.bf16.mxu0 %v6555_v36  ;;  %7747 = vst [vmem:[#allocation50_spill] sm:$0xff] %v6564_v22  ;;  %7748 = vst [vmem:[#allocation51_spill] sm:$0xff] %v6567_v1  ;;  %v6570_v2 = vld [vmem:[#allocation11 + $0x120] ss:$16 sps:$4 sm:$0xff]   ;;  %v6573_v36 = vld [vmem:[#allocation11 + $0x128] ss:$16 sps:$4 sm:$0xff]  }
 0x6ca   :  { %7749 = vst [vmem:[#allocation52_spill] sm:$0xff] %v6570_v2  ;;  %7750 = vst [vmem:[#allocation53_spill] sm:$0xff] %v6573_v36 }
 0x6cc   :  { %2527 = vmatpush1.bf16.msra.mxu1 %v6558_v16  ;;  %2570 = vmatpush1.bf16.msra.mxu0 %v6561_v25  ;;  %v6576_v16 = vld [vmem:[#allocation11 + $0x144] ss:$16 sps:$4 sm:$0xff]   ;;  %v6579_v25 = vld [vmem:[#allocation11 + $0x14c] ss:$16 sps:$4 sm:$0xff]  }
 0x6cd   :  { %2528 = vmatprep.subr.bf16.mxu1 %v6564_v22  ;;  %2571 = vmatprep.subr.bf16.mxu0 %v6567_v1  ;;  %7751 = vst [vmem:[#allocation54_spill] sm:$0xff] %v6576_v16  ;;  %7752 = vst [vmem:[#allocation55_spill] sm:$0xff] %v6579_v25  ;;  %v6582_v22 = vld [vmem:[#allocation11 + $0x140] ss:$16 sps:$4 sm:$0xff]   ;;  %v6585_v1 = vld [vmem:[#allocation11 + $0x148] ss:$16 sps:$4 sm:$0xff]  }
 0x6ce   :  { %7753 = vst [vmem:[#allocation56_spill] sm:$0xff] %v6582_v22  ;;  %7754 = vst [vmem:[#allocation57_spill] sm:$0xff] %v6585_v1 }
 0x6d0   :  { %2529 = vmatpush1.bf16.msra.mxu1 %v6570_v2  ;;  %2572 = vmatpush1.bf16.msra.mxu0 %v6573_v36  ;;  %v6588_v2 = vld [vmem:[#allocation11 + $0x164] ss:$16 sps:$4 sm:$0xff]   ;;  %v6591_v36 = vld [vmem:[#allocation11 + $0x16c] ss:$16 sps:$4 sm:$0xff]  }
 0x6d1   :  { %2530 = vmatprep.subr.bf16.mxu1 %v6576_v16  ;;  %2573 = vmatprep.subr.bf16.mxu0 %v6579_v25  ;;  %7755 = vst [vmem:[#allocation58_spill] sm:$0xff] %v6588_v2  ;;  %7756 = vst [vmem:[#allocation59_spill] sm:$0xff] %v6591_v36  ;;  %v6594_v16 = vld [vmem:[#allocation11 + $0x160] ss:$16 sps:$4 sm:$0xff]   ;;  %v6597_v25 = vld [vmem:[#allocation11 + $0x168] ss:$16 sps:$4 sm:$0xff]  }
 0x6d2   :  { %7757 = vst [vmem:[#allocation60_spill] sm:$0xff] %v6594_v16  ;;  %7758 = vst [vmem:[#allocation61_spill] sm:$0xff] %v6597_v25 }
 0x6d4   :  { %2531 = vmatpush1.bf16.msra.mxu1 %v6582_v22  ;;  %2574 = vmatpush1.bf16.msra.mxu0 %v6585_v1  ;;  %v6600_v22 = vld [vmem:[#allocation11 + $0x184] ss:$16 sps:$4 sm:$0xff]   ;;  %v6603_v1 = vld [vmem:[#allocation11 + $0x18c] ss:$16 sps:$4 sm:$0xff]  }
 0x6d5   :  { %2532 = vmatprep.subr.bf16.mxu1 %v6588_v2  ;;  %2575 = vmatprep.subr.bf16.mxu0 %v6591_v36  ;;  %7759 = vst [vmem:[#allocation62_spill] sm:$0xff] %v6600_v22  ;;  %7760 = vst [vmem:[#allocation63_spill] sm:$0xff] %v6603_v1  ;;  %v6606_v2 = vld [vmem:[#allocation11 + $0x180] ss:$16 sps:$4 sm:$0xff]   ;;  %v6609_v36 = vld [vmem:[#allocation11 + $0x188] ss:$16 sps:$4 sm:$0xff]  }
 0x6d6   :  { %7761 = vst [vmem:[#allocation64_spill] sm:$0xff] %v6606_v2  ;;  %7762 = vst [vmem:[#allocation65_spill] sm:$0xff] %v6609_v36 }
 0x6d8   :  { %2533 = vmatpush1.bf16.msra.mxu1 %v6594_v16  ;;  %2576 = vmatpush1.bf16.msra.mxu0 %v6597_v25  ;;  %v6612_v16 = vld [vmem:[#allocation11 + $0x1a4] ss:$16 sps:$4 sm:$0xff]   ;;  %v6615_v25 = vld [vmem:[#allocation11 + $0x1ac] ss:$16 sps:$4 sm:$0xff]  }
 0x6d9   :  { %2534 = vmatprep.subr.bf16.mxu1 %v6600_v22  ;;  %2577 = vmatprep.subr.bf16.mxu0 %v6603_v1  ;;  %7763 = vst [vmem:[#allocation66_spill] sm:$0xff] %v6612_v16  ;;  %7764 = vst [vmem:[#allocation67_spill] sm:$0xff] %v6615_v25  ;;  %v6618_v22 = vld [vmem:[#allocation11 + $0x1a0] ss:$16 sps:$4 sm:$0xff]   ;;  %v6621_v1 = vld [vmem:[#allocation11 + $0x1a8] ss:$16 sps:$4 sm:$0xff]  }
 0x6da   :  { %7765 = vst [vmem:[#allocation68_spill] sm:$0xff] %v6618_v22  ;;  %7766 = vst [vmem:[#allocation69_spill] sm:$0xff] %v6621_v1 }
 0x6dc   :  { %2535 = vmatpush1.bf16.msra.mxu1 %v6606_v2  ;;  %2578 = vmatpush1.bf16.msra.mxu0 %v6609_v36 }
 0x6dd   :  { %2536 = vmatprep.subr.bf16.mxu1 %v6612_v16  ;;  %2579 = vmatprep.subr.bf16.mxu0 %v6615_v25 }
 0x6e0   :  { %2537 = vmatpush1.bf16.msra.mxu1 %v6618_v22  ;;  %2580 = vmatpush1.bf16.msra.mxu0 %v6621_v1 }
 0x6e1   :  { %2538 = vmatprep.subr.bf16.mxu1 %v7699_v47  ;;  %2581 = vmatprep.subr.bf16.mxu0 %v7700_v21 }
 0x6e4   :  { %2539 = vmatpush1.bf16.msra.mxu1 %v7701_v39  ;;  %2582 = vmatpush1.bf16.msra.mxu0 %v7702_v37 }
 0x6e5   :  { %2540 = vmatprep.subr.bf16.mxu1 %v7703_v19  ;;  %2583 = vmatprep.subr.bf16.mxu0 %v7704_v27 }
 0x6e8   :  { %2541 = vmatpush1.bf16.msra.mxu1 %v7705_v15  ;;  %2584 = vmatpush1.bf16.msra.mxu0 %v7706_v45 }
 0x6e9   :  { %2634 = vmatprep.subr.bf16.mxu1 %v6341_v23  ;;  %3852 = vmatprep.subr.bf16.mxu0 %v7420_v53 }
 0x75e   :  { %v2292_v1 = vpop.f32.mrb[52].mxu1  ;;  %v2335_v47 = vpop.f32.mrb[68].mxu0 }
 0x75f   :  { %v2293_v21 = vadd.f32 %v2292_v1, %v7708_v29  ;;  %v2294_v22 = vpop.f32.mrb[53].mxu1  ;;  %v2337_v39 = vpop.f32.mrb[69].mxu0 }
 0x760   :  { %v2296_v25 = vpop.f32.mrb[54].mxu1  ;;  %v2339_v37 = vpop.f32.mrb[70].mxu0  ;;  %v2295_v15 = vadd.f32 %v2294_v22, %v7709_v43  ;;  %v2338_v22 = vadd.f32 %v2337_v39, %v7710_v8 }
 0x761   :  { %v3519_v16 = vmul.f32 -1.442695, %v2293_v21  ;;  %v2297_v19 = vadd.f32 %v2296_v25, %v7708_v29  ;;  %v2298_v27 = vpop.f32.mrb[55].mxu1  ;;  %v2341_v36 = vpop.f32.mrb[71].mxu0 }
 0x762   :  { %v2299_v23 = vadd.f32 %v2298_v27, %v7709_v43  ;;  %v3521_v2 = vmul.f32 -1.442695, %v2295_v15  ;;  %v2336_v27 = vadd.f32 %v2335_v47, %v7711_v13 }
 0x763   :  { %4328 = vpow2.f32 %v3519_v16  ;;  %v3520_v45 = vmul.f32 -1.442695, %v2297_v19 }
 0x764   :  { %v3522_v63 = vmul.f32 -1.442695, %v2299_v23  ;;  %v2342_v23 = vadd.f32 %v2341_v36, %v7710_v8  ;;  %v7767_v36 = vld [vmem:[#allocation114_spill] sm:$0xff] }
 0x765   :  { %4330 = vpow2.f32 %v3520_v45  ;;  %v2340_v45 = vadd.f32 %v2339_v37, %v7711_v13 }
 0x766   :  { %4332 = vpow2.f32 %v3521_v2 }
 0x767   :  { %4334 = vpow2.f32 %v3522_v63 }
 0x76d   :  { %v4329_v1 = vpop.eup %4328 }
 0x76e   :  { %v2350_v62 = vadd.f32 1.0, %v4329_v1 }
 0x76f   :  { %v4331_v3 = vpop.eup %4330 }
 0x770   :  { %4336 = vrcp.f32 %v2350_v62  ;;  %v2351_v21 = vadd.f32 1.0, %v4331_v3  ;;  %v4333_v25 = vpop.eup %4332 }
 0x771   :  { %v4335_v29 = vpop.eup %4334  ;;  %v2362_v61 = vadd.f32 1.0, %v4333_v25 }
 0x772   :  { %4338 = vrcp.f32 %v2351_v21  ;;  %v2363_v16 = vadd.f32 1.0, %v4335_v29 }
 0x773   :  { %4340 = vrcp.f32 %v2362_v61 }
 0x774   :  { %4342 = vrcp.f32 %v2363_v16 }
 0x77a   :  { %v4337_v19 = vpop.eup %4336 }
 0x77b   :  { %v2368_v15 = vmul.f32 %v4337_v19, %v2338_v22 }
 0x77c   :  { %v4339_v63 = vpop.eup %4338 }
 0x77d   :  { %v2370_v2 = vadd.f32 %v2368_v15, %v2336_v27  ;;  %v2369_v3 = vmul.f32 %v4339_v63, %v2342_v23  ;;  %v7768_v15 = vld [vmem:[#allocation115_spill] sm:$0xff]  ;;  %v4341_v13 = vpop.eup %4340 }
 0x77e   :  { %v2416_v62 = vpop.f32.mrb[56].mxu1  ;;  %v2459_v1 = vpop.f32.mrb[72].mxu0 }
 0x77f   :  { %4344 = vtanh.f32 %v2370_v2  ;;  %v2371_v21 = vadd.f32 %v2369_v3, %v2340_v45  ;;  %v2417_v39 = vadd.f32 %v2416_v62, %v7712_v20  ;;  %v2418_v29 = vpop.f32.mrb[57].mxu1  ;;  %v3850_v25 = vpop.f32.mrb[73].mxu0  ;;  %v7769_v45 = vld [vmem:[#allocation116_spill] sm:$0xff]  ;;  %v7770_v62 = vld [vmem:[#allocation117_spill] sm:$0xff] }
 0x780   :  { %v2419_v47 = vadd.f32 %v2418_v29, %v5551_v10  ;;  %v2420_v61 = vpop.f32.mrb[58].mxu1  ;;  %v2462_v22 = vpop.f32.mrb[74].mxu0 }
 0x781   :  { %4346 = vtanh.f32 %v2371_v21  ;;  %v2466_v19 = vadd.f32 %v2417_v39, %v7767_v36  ;;  %v2421_v27 = vadd.f32 %v2420_v61, %v7712_v20  ;;  %v2422_v37 = vpop.f32.mrb[59].mxu1  ;;  %v3851_v16 = vpop.f32.mrb[75].mxu0  ;;  %v2374_v39 = vsub.f32 1.0, %v4341_v13 }
 0x782   :  { %v2480_v23 = vadd.f32 %v2419_v47, %v7768_v15  ;;  %v2423_v63 = vadd.f32 %v2422_v37, %v5551_v10  ;;  %v4343_v8 = vpop.eup %4342  ;;  %v2378_v47 = vmul.f32 %v4341_v13, %v6363_v5  ;;  %v2460_v5 = vadd.f32 %v2459_v1, %v5612_v42 }
 0x783   :  { %v3523_v2 = vmul.f32 -1.442695, %v2466_v19  ;;  %v2467_v3 = vadd.f32 %v2421_v27, %v7769_v45  ;;  %v2375_v20 = vsub.f32 1.0, %v4343_v8  ;;  %v2379_v27 = vmul.f32 %v4343_v8, %v6365_v28 }
 0x784   :  { %v2481_v25 = vadd.f32 %v2423_v63, %v7770_v62  ;;  %v3525_v21 = vmul.f32 -1.442695, %v2480_v23 }
 0x785   :  { %4348 = vpow2.f32 %v3523_v2  ;;  %v3524_v29 = vmul.f32 -1.442695, %v2467_v3 }
 0x786   :  { %v3526_v61 = vmul.f32 -1.442695, %v2481_v25 }
 0x787   :  { %4350 = vpow2.f32 %v3524_v29 }
 0x788   :  { %4352 = vpow2.f32 %v3525_v21  ;;  %v2463_v21 = vadd.f32 %v2462_v22, %v5612_v42 }
 0x789   :  { %v4345_v36 = vpop.eup %4344  ;;  %4354 = vpow2.f32 %v3526_v61 }
 0x78a   :  { %v2376_v16 = vmul.f32 %v4345_v36, %v2374_v39  ;;  %v7772_v36 = vld [vmem:[#allocation100_spill] sm:$0xff] }
 0x78b   :  { %v4347_v15 = vpop.eup %4346 }
 0x78c   :  { %v2377_v19 = vmul.f32 %v4347_v15, %v2375_v20  ;;  %v6652_v37 = vadd.f32 %v2378_v47, %v2376_v16  ;;  %v7773_v47 = vld [vmem:[#allocation99_spill] sm:$0xff] }
 0x78e   :  { %v6654_v63 = vadd.f32 %v2379_v27, %v2377_v19 }
 0x78f   :  { %v4349_v2 = vpop.eup %4348 }
 0x790   :  { %v2474_v45 = vadd.f32 1.0, %v4349_v2  ;;  %v6658_v23 = vpack.c.bf16 %v6654_v63, %v6652_v37 }
 0x791   :  { %v4351_v3 = vpop.eup %4350 }
 0x792   :  { %7771 = vst [vmem:[#allocation70_spill] sm:$0xff] %v6658_v23  ;;  %4356 = vrcp.f32 %v2474_v45  ;;  %v2475_v62 = vadd.f32 1.0, %v4351_v3  ;;  %2542 = vmatprep.mubr.bf16.mxu1 %v6658_v23  ;;  %2585 = vmatprep.mubr.bf16.mxu0 %v6658_v23  ;;  %v4353_v8 = vpop.eup %4352  ;;  %v7800_v23 = vld [vmem:[#allocation49_spill] sm:$0xff] }
 0x793   :  { %v4355_v13 = vpop.eup %4354  ;;  %v2488_v20 = vadd.f32 1.0, %v4353_v8 }
 0x794   :  { %4358 = vrcp.f32 %v2475_v62  ;;  %v2489_v28 = vadd.f32 1.0, %v4355_v13 }
 0x795   :  { %4360 = vrcp.f32 %v2488_v20 }
 0x796   :  { %4362 = vrcp.f32 %v2489_v28 }
 0x79c   :  { %v4357_v25 = vpop.eup %4356 }
 0x79d   :  { %v2494_v29 = vmul.f32 %v4357_v25, %v2460_v5  ;;  %v7780_v25 = vld [vmem:[#allocation36_spill] sm:$0xff] }
 0x79e   :  { %v4359_v39 = vpop.eup %4358 }
 0x79f   :  { %v2496_v61 = vadd.f32 %v2494_v29, %v7772_v36  ;;  %v2495_v16 = vmul.f32 %v4359_v39, %v2463_v21  ;;  %v4361_v19 = vpop.eup %4360  ;;  %v7781_v29 = vld [vmem:[#allocation37_spill] sm:$0xff]  ;;  %v7782_v21 = vld [vmem:[#allocation27_spill] sm:$0xff]  ;;  %v7784_v36 = vld [vmem:[#allocation102_spill] sm:$0xff] }
 0x7a0   :  { %v4363_v27 = vpop.eup %4362  ;;  %v2500_v2 = vsub.f32 1.0, %v4361_v19  ;;  %v2504_v62 = vmul.f32 %v4361_v19, %v6379_v32  ;;  %v7778_v32 = vld [vmem:[#allocation34_spill] sm:$0xff]  ;;  %v7783_v39 = vld [vmem:[#allocation101_spill] sm:$0xff] }
 0x7a1   :  { %4364 = vtanh.f32 %v2496_v61  ;;  %v2497_v15 = vadd.f32 %v2495_v16, %v7773_v47  ;;  %v2501_v1 = vsub.f32 1.0, %v4363_v27  ;;  %v2505_v22 = vmul.f32 %v4363_v27, %v6381_v34  ;;  %v7779_v34 = vld [vmem:[#allocation35_spill] sm:$0xff]  ;;  %v7785_v61 = vld [vmem:[#allocation105_spill] sm:$0xff]  ;;  %v7786_v16 = vld [vmem:[#allocation106_spill] sm:$0xff] }
 0x7a2   :  { %v7787_v47 = vld [vmem:[#allocation92_spill] sm:$0xff]  ;;  %v7789_v19 = vld [vmem:[#allocation38_spill] sm:$0xff]  ;;  %v7790_v27 = vld [vmem:[#allocation39_spill] sm:$0xff] }
 0x7a3   :  { %4366 = vtanh.f32 %v2497_v15  ;;  %v7788_v15 = vld [vmem:[#allocation91_spill] sm:$0xff] }
 0x7ab   :  { %v4365_v45 = vpop.eup %4364 }
 0x7ac   :  { %v2502_v3 = vmul.f32 %v4365_v45, %v2500_v2  ;;  %v7791_v2 = vld [vmem:[#allocation40_spill] sm:$0xff]  ;;  %v7792_v45 = vld [vmem:[#allocation41_spill] sm:$0xff] }
 0x7ad   :  { %v4367_v8 = vpop.eup %4366 }
 0x7ae   :  { %v2503_v13 = vmul.f32 %v4367_v8, %v2501_v1  ;;  %v6668_v20 = vadd.f32 %v2504_v62, %v2502_v3  ;;  %v7793_v1 = vld [vmem:[#allocation42_spill] sm:$0xff]  ;;  %v7794_v3 = vld [vmem:[#allocation43_spill] sm:$0xff]  ;;  %v7795_v62 = vld [vmem:[#allocation44_spill] sm:$0xff] }
 0x7af   :  { %v7796_v8 = vld [vmem:[#allocation45_spill] sm:$0xff] }
 0x7b0   :  { %v6670_v5 = vadd.f32 %v2505_v22, %v2503_v13  ;;  %v7797_v13 = vld [vmem:[#allocation46_spill] sm:$0xff]  ;;  %v7798_v22 = vld [vmem:[#allocation47_spill] sm:$0xff] }
 0x7b2   :  { %v2508_v28 = vpack.c.bf16 %v6670_v5, %v6668_v20 }
 0x7b4   :  { %2543 = vmatmul.mubr.bf16.vlgmr.msra.gmra.mrb[60].mxu1 %v2508_v28  ;;  %2586 = vmatmul.mubr.bf16.vlgmr.msra.gmra.mrb[76].mxu0 %v2508_v28 }
 0x7b5   :  { %2635 = vmatpush1.bf16.msra.mxu1 %v6236_v35  ;;  %3853 = vmatpush3.bf16.msra.mxu0 %v6239_v24  ;;  %v7774_v35 = vld [vmem:[#allocation98_spill] sm:$0xff]  ;;  %v7775_v24 = vld [vmem:[#allocation88_spill] sm:$0xff] }
 0x7b6   :  { %2636 = vmatprep.subr.bf16.mxu1 %v6242_v18  ;;  %3854 = vmatprep.subr.bf16.mxu0 %v7420_v53  ;;  %v7776_v18 = vld [vmem:[#allocation87_spill] sm:$0xff] }
 0x7b7   :  { %2666 = vmatprep.mubr.bf16.mxu1 %v7467_v50  ;;  %3868 = vmatprep.mubr.msk.bf16.mxu0 %vm4940_vm0, %v7420_v53 }
 0x7b9   :  { %2637 = vmatpush1.bf16.msra.mxu1 %v6249_v33  ;;  %3855 = vmatpush3.bf16.msra.mxu0 %v6393_v52  ;;  %v7777_v33 = vld [vmem:[#allocation33_spill] sm:$0xff] }
 0x7ba   :  { %2638 = vmatprep.subr.bf16.mxu1 %v6396_v4  ;;  %3856 = vmatprep.subr.bf16.mxu0 %v7420_v53 }
 0x7bd   :  { %2639 = vmatpush1.bf16.msra.mxu1 %v6400_v49  ;;  %3857 = vmatpush3.bf16.msra.mxu0 %v6403_v11 }
 0x7be   :  { %2640 = vmatprep.subr.bf16.mxu1 %v6406_v44  ;;  %3858 = vmatprep.subr.bf16.mxu0 %v7420_v53 }
 0x7c1   :  { %2641 = vmatpush1.bf16.msra.mxu1 %v6410_v14  ;;  %3859 = vmatpush3.bf16.msra.mxu0 %v6413_v9 }
 0x7c2   :  { %2642 = vmatprep.subr.bf16.mxu1 %v6416_v12  ;;  %3860 = vmatprep.subr.bf16.mxu0 %v7420_v53 }
 0x7c5   :  { %2643 = vmatpush1.bf16.msra.mxu1 %v6420_v17  ;;  %3861 = vmatpush3.bf16.msra.mxu0 %v6423_v7 }
 0x7c6   :  { %2644 = vmatprep.subr.bf16.mxu1 %v6426_v26  ;;  %3862 = vmatprep.subr.bf16.mxu0 %v7420_v53 }
 0x7c9   :  { %2645 = vmatpush1.bf16.msra.mxu1 %v6430_v6  ;;  %3863 = vmatpush3.bf16.msra.mxu0 %v6433_v40 }
 0x7ca   :  { %2646 = vmatprep.subr.bf16.mxu1 %v6436_v0  ;;  %3864 = vmatprep.subr.bf16.mxu0 %v7420_v53 }
 0x7cd   :  { %2647 = vmatpush1.bf16.msra.mxu1 %v6440_v30  ;;  %3865 = vmatpush3.bf16.msra.mxu0 %v6443_v38 }
 0x7ce   :  { %2648 = vmatprep.subr.bf16.mxu1 %v6446_v41  ;;  %3866 = vmatprep.subr.bf16.mxu0 %v7420_v53 }
 0x7d1   :  { %2649 = vmatpush1.bf16.msra.mxu1 %v6450_v46  ;;  %3867 = vmatpush3.bf16.msra.mxu0 %v6453_v31 }
 0x7d2   :  { %2762 = vmatprep.subr.bf16.mxu1 %v6456_v48  ;;  %2805 = vmatprep.subr.bf16.mxu0 %v6459_v51 }
 0x7d4   :  { %2667 = vmatmul.mubr.bf16.vlgmr.msra.gmra.mrb[64].mxu1 %v2508_v28  ;;  %3869 = vmatmul.mubr.bf16.vlgmr.msra.gmra.mrb[80].mxu0 %v2508_v28  ;;  %v7799_v28 = vld [vmem:[#allocation48_spill] sm:$0xff] }
 0x7d5   :  { %2763 = vmatpush1.bf16.msra.mxu1 %v6462_v54  ;;  %2806 = vmatpush1.bf16.msra.mxu0 %v6465_v55 }
 0x7d6   :  { %2764 = vmatprep.subr.bf16.mxu1 %v6468_v56  ;;  %2807 = vmatprep.subr.bf16.mxu0 %v6471_v57 }
 0x7d9   :  { %2765 = vmatpush1.bf16.msra.mxu1 %v6474_v58  ;;  %2808 = vmatpush1.bf16.msra.mxu0 %v6477_v59 }
 0x7da   :  { %2766 = vmatprep.subr.bf16.mxu1 %v6480_v60  ;;  %2809 = vmatprep.subr.bf16.mxu0 %v7774_v35 }
 0x7dd   :  { %2767 = vmatpush1.bf16.msra.mxu1 %v7775_v24  ;;  %2810 = vmatpush1.bf16.msra.mxu0 %v7776_v18 }
 0x7de   :  { %2768 = vmatprep.subr.bf16.mxu1 %v7777_v33  ;;  %2811 = vmatprep.subr.bf16.mxu0 %v7778_v32 }
 0x7e1   :  { %2769 = vmatpush1.bf16.msra.mxu1 %v7779_v34  ;;  %2812 = vmatpush1.bf16.msra.mxu0 %v7780_v25  ;;  %v7831_v25 = vld [vmem:[#allocation30_spill] sm:$0xff]  ;;  %v7832_v34 = vld [vmem:[#allocation31_spill] sm:$0xff] }
 0x7e2   :  { %2770 = vmatprep.subr.bf16.mxu1 %v7781_v29  ;;  %2813 = vmatprep.subr.bf16.mxu0 %v7782_v21 }
 0x7e5   :  { %2771 = vmatpush1.bf16.msra.mxu1 %v7783_v39  ;;  %2814 = vmatpush1.bf16.msra.mxu0 %v7784_v36 }
 0x7e6   :  { %2772 = vmatprep.subr.bf16.mxu1 %v7785_v61  ;;  %2815 = vmatprep.subr.bf16.mxu0 %v7786_v16 }
 0x7e9   :  { %2773 = vmatpush1.bf16.msra.mxu1 %v7787_v47  ;;  %2816 = vmatpush1.bf16.msra.mxu0 %v7788_v15 }
 0x7ea   :  { %2774 = vmatprep.subr.bf16.mxu1 %v7789_v19  ;;  %2817 = vmatprep.subr.bf16.mxu0 %v7790_v27  ;;  %v7801_v27 = vld [vmem:[#allocation50_spill] sm:$0xff] }
 0x7ed   :  { %2775 = vmatpush1.bf16.msra.mxu1 %v7791_v2  ;;  %2818 = vmatpush1.bf16.msra.mxu0 %v7792_v45  ;;  %v7802_v2 = vld [vmem:[#allocation51_spill] sm:$0xff]  ;;  %v7803_v45 = vld [vmem:[#allocation52_spill] sm:$0xff] }
 0x7ee   :  { %2776 = vmatprep.subr.bf16.mxu1 %v7793_v1  ;;  %2819 = vmatprep.subr.bf16.mxu0 %v7794_v3  ;;  %v7804_v1 = vld [vmem:[#allocation53_spill] sm:$0xff]  ;;  %v7805_v3 = vld [vmem:[#allocation54_spill] sm:$0xff] }
 0x7f1   :  { %2777 = vmatpush1.bf16.msra.mxu1 %v7795_v62  ;;  %2820 = vmatpush1.bf16.msra.mxu0 %v7796_v8  ;;  %v7806_v62 = vld [vmem:[#allocation55_spill] sm:$0xff]  ;;  %v7807_v8 = vld [vmem:[#allocation56_spill] sm:$0xff] }
 0x7f2   :  { %2778 = vmatprep.subr.bf16.mxu1 %v7797_v13  ;;  %2821 = vmatprep.subr.bf16.mxu0 %v7798_v22  ;;  %v7808_v13 = vld [vmem:[#allocation57_spill] sm:$0xff]  ;;  %v7809_v22 = vld [vmem:[#allocation58_spill] sm:$0xff] }
 0x7f5   :  { %2779 = vmatpush1.bf16.msra.mxu1 %v7799_v28  ;;  %2822 = vmatpush1.bf16.msra.mxu0 %v7800_v23  ;;  %v7810_v28 = vld [vmem:[#allocation59_spill] sm:$0xff]  ;;  %v7811_v23 = vld [vmem:[#allocation60_spill] sm:$0xff] }
 0x7f6   :  { %2780 = vmatprep.subr.bf16.mxu1 %v7801_v27  ;;  %2823 = vmatprep.subr.bf16.mxu0 %v7802_v2  ;;  %v7812_v27 = vld [vmem:[#allocation61_spill] sm:$0xff]  ;;  %v7813_v2 = vld [vmem:[#allocation62_spill] sm:$0xff] }
 0x7f9   :  { %2781 = vmatpush1.bf16.msra.mxu1 %v7803_v45  ;;  %2824 = vmatpush1.bf16.msra.mxu0 %v7804_v1  ;;  %v7814_v45 = vld [vmem:[#allocation63_spill] sm:$0xff]  ;;  %v7815_v1 = vld [vmem:[#allocation64_spill] sm:$0xff] }
 0x7fa   :  { %2782 = vmatprep.subr.bf16.mxu1 %v7805_v3  ;;  %2825 = vmatprep.subr.bf16.mxu0 %v7806_v62  ;;  %v7816_v3 = vld [vmem:[#allocation65_spill] sm:$0xff]  ;;  %v7817_v62 = vld [vmem:[#allocation66_spill] sm:$0xff] }
 0x7fd   :  { %2783 = vmatpush1.bf16.msra.mxu1 %v7807_v8  ;;  %2826 = vmatpush1.bf16.msra.mxu0 %v7808_v13  ;;  %v7818_v8 = vld [vmem:[#allocation67_spill] sm:$0xff]  ;;  %v7819_v13 = vld [vmem:[#allocation68_spill] sm:$0xff] }
 0x7fe   :  { %2784 = vmatprep.subr.bf16.mxu1 %v7809_v22  ;;  %2827 = vmatprep.subr.bf16.mxu0 %v7810_v28  ;;  %v7820_v22 = vld [vmem:[#allocation69_spill] sm:$0xff] }
 0x7ff   :  { %v6763_v28 = vld [vmem:[#allocation11 + $0x1c4] ss:$16 sps:$4 sm:$0xff]  }
 0x800   :  { %7821 = vst [vmem:[#allocation71_spill] sm:$0xff] %v6763_v28 }
 0x801   :  { %2785 = vmatpush1.bf16.msra.mxu1 %v7811_v23  ;;  %2828 = vmatpush1.bf16.msra.mxu0 %v7812_v27  ;;  %v6766_v27 = vld [vmem:[#allocation11 + $0x1cc] ss:$16 sps:$4 sm:$0xff]  }
 0x802   :  { %2786 = vmatprep.subr.bf16.mxu1 %v7813_v2  ;;  %2829 = vmatprep.subr.bf16.mxu0 %v7814_v45  ;;  %7822 = vst [vmem:[#allocation74_spill] sm:$0xff] %v6766_v27  ;;  %v6769_v45 = vld [vmem:[#allocation11 + $0x1c0] ss:$16 sps:$4 sm:$0xff]  }
 0x803   :  { %7823 = vst [vmem:[#allocation75_spill] sm:$0xff] %v6769_v45 }
 0x805   :  { %2787 = vmatpush1.bf16.msra.mxu1 %v7815_v1  ;;  %2830 = vmatpush1.bf16.msra.mxu0 %v7816_v3  ;;  %v6772_v3 = vld [vmem:[#allocation11 + $0x1c8] ss:$16 sps:$4 sm:$0xff]  }
 0x806   :  { %2788 = vmatprep.subr.bf16.mxu1 %v7817_v62  ;;  %2831 = vmatprep.subr.bf16.mxu0 %v7818_v8  ;;  %7824 = vst [vmem:[#allocation76_spill] sm:$0xff] %v6772_v3  ;;  %v6775_v8 = vld [vmem:[#allocation11 + $0x1e4] ss:$16 sps:$4 sm:$0xff]   ;;  %v7830_v62 = vld [vmem:[#allocation28_spill] sm:$0xff] }
 0x807   :  { %7825 = vst [vmem:[#allocation77_spill] sm:$0xff] %v6775_v8 }
 0x809   :  { %2789 = vmatpush1.bf16.msra.mxu1 %v7819_v13  ;;  %2832 = vmatpush1.bf16.msra.mxu0 %v7820_v22  ;;  %v6778_v22 = vld [vmem:[#allocation11 + $0x1ec] ss:$16 sps:$4 sm:$0xff]  }
 0x80a   :  { %2790 = vmatprep.subr.bf16.mxu1 %v6763_v28  ;;  %2833 = vmatprep.subr.bf16.mxu0 %v6766_v27  ;;  %7826 = vst [vmem:[#allocation78_spill] sm:$0xff] %v6778_v22  ;;  %v6781_v28 = vld [vmem:[#allocation11 + $0x1e0] ss:$16 sps:$4 sm:$0xff]   ;;  %v6784_v27 = vld [vmem:[#allocation11 + $0x1e8] ss:$16 sps:$4 sm:$0xff]  }
 0x80b   :  { %7827 = vst [vmem:[#allocation79_spill] sm:$0xff] %v6781_v28  ;;  %7828 = vst [vmem:[#allocation81_spill] sm:$0xff] %v6784_v27 }
 0x80d   :  { %2791 = vmatpush1.bf16.msra.mxu1 %v6769_v45  ;;  %2834 = vmatpush1.bf16.msra.mxu0 %v6772_v3  ;;  %v7829_v45 = vld [vmem:[#allocation94_spill] sm:$0xff] }
 0x80e   :  { %2792 = vmatprep.subr.bf16.mxu1 %v6775_v8  ;;  %2835 = vmatprep.subr.bf16.mxu0 %v6778_v22 }
 0x811   :  { %2793 = vmatpush1.bf16.msra.mxu1 %v6781_v28  ;;  %2836 = vmatpush1.bf16.msra.mxu0 %v6784_v27 }
 0x812   :  { %2886 = vmatprep.subr.bf16.mxu1 %v7829_v45  ;;  %3872 = vmatprep.subr.bf16.mxu0 %v7420_v53 }
 0x887   :  { %v2544_v3 = vpop.f32.mrb[60].mxu1  ;;  %v2587_v13 = vpop.f32.mrb[76].mxu0 }
 0x888   :  { %v2545_v8 = vadd.f32 %v2544_v3, %v7830_v62  ;;  %v2546_v1 = vpop.f32.mrb[61].mxu1  ;;  %v2589_v2 = vpop.f32.mrb[77].mxu0 }
 0x889   :  { %v2548_v23 = vpop.f32.mrb[62].mxu1  ;;  %v2591_v22 = vpop.f32.mrb[78].mxu0  ;;  %v2547_v16 = vadd.f32 %v2546_v1, %v7709_v43  ;;  %v2590_v1 = vadd.f32 %v2589_v2, %v7831_v25 }
 0x88a   :  { %v3527_v19 = vmul.f32 -1.442695, %v2545_v8  ;;  %v2549_v15 = vadd.f32 %v2548_v23, %v7830_v62  ;;  %v2550_v28 = vpop.f32.mrb[63].mxu1  ;;  %v2593_v47 = vpop.f32.mrb[79].mxu0 }
 0x88b   :  { %v2551_v45 = vadd.f32 %v2550_v28, %v7709_v43  ;;  %v3529_v61 = vmul.f32 -1.442695, %v2547_v16  ;;  %v2588_v28 = vadd.f32 %v2587_v13, %v7832_v34 }
 0x88c   :  { %4368 = vpow2.f32 %v3527_v19  ;;  %v3528_v27 = vmul.f32 -1.442695, %v2549_v15 }
 0x88d   :  { %v3530_v36 = vmul.f32 -1.442695, %v2551_v45  ;;  %v2592_v45 = vadd.f32 %v2591_v22, %v7832_v34 }
 0x88e   :  { %4370 = vpow2.f32 %v3528_v27 }
 0x88f   :  { %4372 = vpow2.f32 %v3529_v61  ;;  %v2594_v61 = vadd.f32 %v2593_v47, %v7831_v25  ;;  %v7834_v47 = vld [vmem:[#allocation118_spill] sm:$0xff] }
 0x890   :  { %4374 = vpow2.f32 %v3530_v36 }
 0x896   :  { %v4369_v3 = vpop.eup %4368 }
 0x897   :  { %v2602_v39 = vadd.f32 1.0, %v4369_v3 }
 0x898   :  { %v4371_v21 = vpop.eup %4370 }
 0x899   :  { %4376 = vrcp.f32 %v2602_v39  ;;  %v2603_v8 = vadd.f32 1.0, %v4371_v21  ;;  %v4373_v23 = vpop.eup %4372 }
 0x89a   :  { %v4375_v62 = vpop.eup %4374  ;;  %v2614_v29 = vadd.f32 1.0, %v4373_v23  ;;  %v7833_v23 = vld [vmem:[#allocation108_spill] sm:$0xff] }
 0x89b   :  { %4378 = vrcp.f32 %v2603_v8  ;;  %v2615_v19 = vadd.f32 1.0, %v4375_v62 }
 0x89c   :  { %4380 = vrcp.f32 %v2614_v29 }
 0x89d   :  { %4382 = vrcp.f32 %v2615_v19 }
 0x8a3   :  { %v4377_v15 = vpop.eup %4376 }
 0x8a4   :  { %v2620_v16 = vmul.f32 %v4377_v15, %v2590_v1 }
 0x8a5   :  { %v4379_v36 = vpop.eup %4378 }
 0x8a6   :  { %v2622_v27 = vadd.f32 %v2620_v16, %v2588_v28  ;;  %v2621_v21 = vmul.f32 %v4379_v36, %v2594_v61  ;;  %v7835_v16 = vld [vmem:[#allocation119_spill] sm:$0xff]  ;;  %v4381_v34 = vpop.eup %4380 }
 0x8a7   :  { %v2668_v39 = vpop.f32.mrb[64].mxu1  ;;  %v2711_v3 = vpop.f32.mrb[80].mxu0 }
 0x8a8   :  { %4384 = vtanh.f32 %v2622_v27  ;;  %v2623_v8 = vadd.f32 %v2621_v21, %v2592_v45  ;;  %v2669_v2 = vadd.f32 %v2668_v39, %v7833_v23  ;;  %v2670_v62 = vpop.f32.mrb[65].mxu1  ;;  %v3870_v43 = vpop.f32.mrb[81].mxu0  ;;  %v7836_v45 = vld [vmem:[#allocation120_spill] sm:$0xff]  ;;  %v7837_v39 = vld [vmem:[#allocation121_spill] sm:$0xff] }
 0x8a9   :  { %v2671_v13 = vadd.f32 %v2670_v62, %v5551_v10  ;;  %v2672_v29 = vpop.f32.mrb[66].mxu1  ;;  %v2714_v1 = vpop.f32.mrb[82].mxu0 }
 0x8aa   :  { %4386 = vtanh.f32 %v2623_v8  ;;  %v2718_v15 = vadd.f32 %v2669_v2, %v7834_v47  ;;  %v2673_v28 = vadd.f32 %v2672_v29, %v7833_v23  ;;  %v2674_v22 = vpop.f32.mrb[67].mxu1  ;;  %v3871_v19 = vpop.f32.mrb[83].mxu0  ;;  %v2626_v2 = vsub.f32 1.0, %v4381_v34 }
 0x8ab   :  { %v2732_v61 = vadd.f32 %v2671_v13, %v7835_v16  ;;  %v2675_v36 = vadd.f32 %v2674_v22, %v5551_v10  ;;  %v4383_v25 = vpop.eup %4382  ;;  %v2630_v13 = vmul.f32 %v4381_v34, %v6652_v37 }
 0x8ac   :  { %v3531_v27 = vmul.f32 -1.442695, %v2718_v15  ;;  %v2719_v21 = vadd.f32 %v2673_v28, %v7836_v45  ;;  %v2627_v23 = vsub.f32 1.0, %v4383_v25  ;;  %v2631_v28 = vmul.f32 %v4383_v25, %v6654_v63 }
 0x8ad   :  { %v2733_v43 = vadd.f32 %v2675_v36, %v7837_v39  ;;  %v3533_v8 = vmul.f32 -1.442695, %v2732_v61  ;;  %v2712_v25 = vadd.f32 %v2711_v3, %v5612_v42 }
 0x8ae   :  { %4388 = vpow2.f32 %v3531_v27  ;;  %v3532_v62 = vmul.f32 -1.442695, %v2719_v21 }
 0x8af   :  { %v3534_v29 = vmul.f32 -1.442695, %v2733_v43 }
 0x8b0   :  { %4390 = vpow2.f32 %v3532_v62 }
 0x8b1   :  { %4392 = vpow2.f32 %v3533_v8  ;;  %v2715_v8 = vadd.f32 %v2714_v1, %v5612_v42 }
 0x8b2   :  { %v4385_v47 = vpop.eup %4384  ;;  %4394 = vpow2.f32 %v3534_v29 }
 0x8b3   :  { %v2628_v19 = vmul.f32 %v4385_v47, %v2626_v2  ;;  %v7838_v47 = vld [vmem:[#allocation104_spill] sm:$0xff] }
 0x8b4   :  { %v4387_v16 = vpop.eup %4386 }
 0x8b5   :  { %v2629_v15 = vmul.f32 %v4387_v16, %v2627_v23  ;;  %v6807_v22 = vadd.f32 %v2630_v13, %v2628_v19  ;;  %v7839_v13 = vld [vmem:[#allocation103_spill] sm:$0xff] }
 0x8b7   :  { %v6809_v36 = vadd.f32 %v2631_v28, %v2629_v15 }
 0x8b8   :  { %v4389_v27 = vpop.eup %4388 }
 0x8b9   :  { %v2726_v45 = vadd.f32 1.0, %v4389_v27  ;;  %v6813_v61 = vpack.c.bf16 %v6809_v36, %v6807_v22 }
 0x8ba   :  { %v4391_v21 = vpop.eup %4390 }
 0x8bb   :  { %4396 = vrcp.f32 %v2726_v45  ;;  %v2727_v39 = vadd.f32 1.0, %v4391_v21  ;;  %2794 = vmatprep.mubr.bf16.mxu1 %v6813_v61  ;;  %2837 = vmatprep.mubr.bf16.mxu0 %v6813_v61  ;;  %v4393_v37 = vpop.eup %4392 }
 0x8bc   :  { %v4395_v63 = vpop.eup %4394  ;;  %v2740_v34 = vadd.f32 1.0, %v4393_v37 }
 0x8bd   :  { %4398 = vrcp.f32 %v2727_v39  ;;  %v2741_v23 = vadd.f32 1.0, %v4395_v63 }
 0x8be   :  { %4400 = vrcp.f32 %v2740_v34 }
 0x8bf   :  { %4402 = vrcp.f32 %v2741_v23 }
 0x8c5   :  { %v4397_v43 = vpop.eup %4396 }
 0x8c6   :  { %v2746_v62 = vmul.f32 %v4397_v43, %v2712_v25  ;;  %v4644_v43 = vld [vmem:[#allocation8] ss:$12 sps:$4 sm:$0xff]  }
 0x8c7   :  { %v4399_v2 = vpop.eup %4398 }
 0x8c8   :  { %v2748_v29 = vadd.f32 %v2746_v62, %v7838_v47  ;;  %v2747_v19 = vmul.f32 %v4399_v2, %v2715_v8  ;;  %v4401_v15 = vpop.eup %4400  ;;  %v4645_v62 = vld [vmem:[#allocation8 + $0x8] ss:$12 sps:$4 sm:$0xff]   ;;  %v7877_v47 = vld [vmem:[#allocation65_spill] sm:$0xff] }
 0x8c9   :  { %v4403_v28 = vpop.eup %4402  ;;  %v2752_v27 = vsub.f32 1.0, %v4401_v15  ;;  %v2756_v39 = vmul.f32 %v4401_v15, %v6668_v20  ;;  %v4646_v8 = vld [vmem:[#allocation8 + $0x1c] ss:$12 sps:$4 sm:$0xff]   ;;  %v4647_v20 = vld [vmem:[#allocation8 + $0x18] ss:$12 sps:$4 sm:$0xff]   ;;  %v7876_v2 = vld [vmem:[#allocation64_spill] sm:$0xff] }
 0x8ca   :  { %4404 = vtanh.f32 %v2748_v29  ;;  %v2749_v16 = vadd.f32 %v2747_v19, %v7839_v13  ;;  %v2753_v3 = vsub.f32 1.0, %v4403_v28  ;;  %v2757_v1 = vmul.f32 %v4403_v28, %v6670_v5  ;;  %v7870_v5 = vld [vmem:[#allocation58_spill] sm:$0xff]  ;;  %v7879_v19 = vld [vmem:[#allocation67_spill] sm:$0xff]  ;;  %v7880_v13 = vld [vmem:[#allocation68_spill] sm:$0xff] }
 0x8cb   :  { %v7878_v29 = vld [vmem:[#allocation66_spill] sm:$0xff]  ;;  %v7882_v15 = vld [vmem:[#allocation71_spill] sm:$0xff] }
 0x8cc   :  { %4406 = vtanh.f32 %v2749_v16  ;;  %v7881_v16 = vld [vmem:[#allocation69_spill] sm:$0xff]  ;;  %v7883_v28 = vld [vmem:[#allocation74_spill] sm:$0xff] }
 0x8d4   :  { %v4405_v45 = vpop.eup %4404 }
 0x8d5   :  { %v2754_v21 = vmul.f32 %v4405_v45, %v2752_v27  ;;  %v7884_v27 = vld [vmem:[#allocation75_spill] sm:$0xff]  ;;  %v7885_v45 = vld [vmem:[#allocation76_spill] sm:$0xff] }
 0x8d6   :  { %v4407_v37 = vpop.eup %4406 }
 0x8d7   :  { %v2755_v63 = vmul.f32 %v4407_v37, %v2753_v3  ;;  %v6823_v34 = vadd.f32 %v2756_v39, %v2754_v21  ;;  %v7886_v3 = vld [vmem:[#allocation77_spill] sm:$0xff]  ;;  %v7887_v21 = vld [vmem:[#allocation78_spill] sm:$0xff]  ;;  %v7888_v39 = vld [vmem:[#allocation79_spill] sm:$0xff] }
 0x8d8   :  { %v7889_v37 = vld [vmem:[#allocation81_spill] sm:$0xff] }
 0x8d9   :  { %v6825_v25 = vadd.f32 %v2757_v1, %v2755_v63  ;;  %v6922_v63 = vld [vmem:[#allocation14] sm:$0xff]  }
 0x8db   :  { %v2760_v23 = vpack.c.bf16 %v6825_v25, %v6823_v34 }
 0x8dd   :  { %2795 = vmatmul.mubr.bf16.vlgmr.msra.gmra.mrb[68].mxu1 %v2760_v23  ;;  %2838 = vmatmul.mubr.bf16.vlgmr.msra.gmra.mrb[84].mxu0 %v2760_v23 }
 0x8de   :  { %2887 = vmatpush1.bf16.msra.mxu1 %v4644_v43  ;;  %3873 = vmatpush3.bf16.msra.mxu0 %v4645_v62  ;;  %v7890_v43 = vld [vmem:[#allocation28_spill] sm:$0xff] }
 0x8df   :  { %2888 = vmatprep.subr.bf16.mxu1 %v4646_v8  ;;  %3874 = vmatprep.subr.bf16.mxu0 %v7420_v53 }
 0x8e0   :  { %2918 = vmatprep.mubr.bf16.mxu1 %v7467_v50  ;;  %3888 = vmatprep.mubr.msk.bf16.mxu0 %vm4940_vm0, %v7420_v53  ;;  %v7841_v50 = vld [vmem:[#allocation36_spill] sm:$0xff] }
 0x8e2   :  { %2889 = vmatpush1.bf16.msra.mxu1 %v4647_v20  ;;  %3875 = vmatpush3.bf16.msra.mxu0 %v6393_v52  ;;  %v7842_v52 = vld [vmem:[#allocation37_spill] sm:$0xff] }
 0x8e3   :  { %2890 = vmatprep.subr.bf16.mxu1 %v6396_v4  ;;  %3876 = vmatprep.subr.bf16.mxu0 %v7420_v53  ;;  %v7843_v4 = vld [vmem:[#allocation27_spill] sm:$0xff] }
 0x8e6   :  { %2891 = vmatpush1.bf16.msra.mxu1 %v6400_v49  ;;  %3877 = vmatpush3.bf16.msra.mxu0 %v6403_v11  ;;  %v7844_v49 = vld [vmem:[#allocation101_spill] sm:$0xff]  ;;  %v7845_v11 = vld [vmem:[#allocation102_spill] sm:$0xff] }
 0x8e7   :  { %2892 = vmatprep.subr.bf16.mxu1 %v6406_v44  ;;  %3878 = vmatprep.subr.bf16.mxu0 %v7420_v53  ;;  %v7846_v44 = vld [vmem:[#allocation105_spill] sm:$0xff] }
 0x8ea   :  { %2893 = vmatpush1.bf16.msra.mxu1 %v6410_v14  ;;  %3879 = vmatpush3.bf16.msra.mxu0 %v6413_v9  ;;  %v7847_v14 = vld [vmem:[#allocation106_spill] sm:$0xff]  ;;  %v7848_v9 = vld [vmem:[#allocation92_spill] sm:$0xff] }
 0x8eb   :  { %2894 = vmatprep.subr.bf16.mxu1 %v6416_v12  ;;  %3880 = vmatprep.subr.bf16.mxu0 %v7420_v53  ;;  %v7849_v12 = vld [vmem:[#allocation91_spill] sm:$0xff] }
 0x8ee   :  { %2895 = vmatpush1.bf16.msra.mxu1 %v6420_v17  ;;  %3881 = vmatpush3.bf16.msra.mxu0 %v6423_v7  ;;  %v7850_v17 = vld [vmem:[#allocation38_spill] sm:$0xff]  ;;  %v7851_v7 = vld [vmem:[#allocation39_spill] sm:$0xff] }
 0x8ef   :  { %2896 = vmatprep.subr.bf16.mxu1 %v6426_v26  ;;  %3882 = vmatprep.subr.bf16.mxu0 %v7420_v53  ;;  %v7852_v26 = vld [vmem:[#allocation40_spill] sm:$0xff] }
 0x8f2   :  { %2897 = vmatpush1.bf16.msra.mxu1 %v6430_v6  ;;  %3883 = vmatpush3.bf16.msra.mxu0 %v6433_v40  ;;  %v7853_v6 = vld [vmem:[#allocation41_spill] sm:$0xff]  ;;  %v7854_v40 = vld [vmem:[#allocation42_spill] sm:$0xff] }
 0x8f3   :  { %2898 = vmatprep.subr.bf16.mxu1 %v6436_v0  ;;  %3884 = vmatprep.subr.bf16.mxu0 %v7420_v53  ;;  %v7855_v0 = vld [vmem:[#allocation43_spill] sm:$0xff] }
 0x8f6   :  { %2899 = vmatpush1.bf16.msra.mxu1 %v6440_v30  ;;  %3885 = vmatpush3.bf16.msra.mxu0 %v6443_v38  ;;  %v7856_v30 = vld [vmem:[#allocation44_spill] sm:$0xff]  ;;  %v7857_v38 = vld [vmem:[#allocation45_spill] sm:$0xff] }
 0x8f7   :  { %2900 = vmatprep.subr.bf16.mxu1 %v6446_v41  ;;  %3886 = vmatprep.subr.bf16.mxu0 %v7420_v53  ;;  %v7840_v53 = vld [vmem:[#allocation35_spill] sm:$0xff]  ;;  %v7858_v41 = vld [vmem:[#allocation46_spill] sm:$0xff] }
 0x8fa   :  { %2901 = vmatpush1.bf16.msra.mxu1 %v6450_v46  ;;  %3887 = vmatpush3.bf16.msra.mxu0 %v6453_v31  ;;  %v7859_v46 = vld [vmem:[#allocation47_spill] sm:$0xff]  ;;  %v7860_v31 = vld [vmem:[#allocation48_spill] sm:$0xff] }
 0x8fb   :  { %3014 = vmatprep.subr.bf16.mxu1 %v6456_v48  ;;  %3057 = vmatprep.subr.bf16.mxu0 %v6459_v51  ;;  %v7861_v48 = vld [vmem:[#allocation49_spill] sm:$0xff]  ;;  %v7862_v51 = vld [vmem:[#allocation50_spill] sm:$0xff] }
 0x8fd   :  { %2919 = vmatmul.mubr.bf16.vlgmr.msra.gmra.mrb[72].mxu1 %v2760_v23  ;;  %3889 = vmatmul.mubr.bf16.vlgmr.msra.gmra.mrb[88].mxu0 %v2760_v23 }
 0x8fe   :  { %3015 = vmatpush1.bf16.msra.mxu1 %v6462_v54  ;;  %3058 = vmatpush1.bf16.msra.mxu0 %v6465_v55  ;;  %v7863_v54 = vld [vmem:[#allocation51_spill] sm:$0xff]  ;;  %v7864_v55 = vld [vmem:[#allocation52_spill] sm:$0xff] }
 0x8ff   :  { %3016 = vmatprep.subr.bf16.mxu1 %v6468_v56  ;;  %3059 = vmatprep.subr.bf16.mxu0 %v6471_v57  ;;  %v7865_v56 = vld [vmem:[#allocation53_spill] sm:$0xff]  ;;  %v7866_v57 = vld [vmem:[#allocation54_spill] sm:$0xff] }
 0x902   :  { %3017 = vmatpush1.bf16.msra.mxu1 %v6474_v58  ;;  %3060 = vmatpush1.bf16.msra.mxu0 %v6477_v59  ;;  %v7867_v58 = vld [vmem:[#allocation55_spill] sm:$0xff]  ;;  %v7868_v59 = vld [vmem:[#allocation56_spill] sm:$0xff] }
 0x903   :  { %3018 = vmatprep.subr.bf16.mxu1 %v6480_v60  ;;  %3061 = vmatprep.subr.bf16.mxu0 %v7774_v35  ;;  %v7869_v60 = vld [vmem:[#allocation57_spill] sm:$0xff]  ;;  %v7871_v35 = vld [vmem:[#allocation59_spill] sm:$0xff] }
 0x906   :  { %3019 = vmatpush1.bf16.msra.mxu1 %v7775_v24  ;;  %3062 = vmatpush1.bf16.msra.mxu0 %v7776_v18  ;;  %v7872_v24 = vld [vmem:[#allocation60_spill] sm:$0xff]  ;;  %v7873_v18 = vld [vmem:[#allocation61_spill] sm:$0xff] }
 0x907   :  { %3020 = vmatprep.subr.bf16.mxu1 %v7777_v33  ;;  %3063 = vmatprep.subr.bf16.mxu0 %v7778_v32  ;;  %v7874_v33 = vld [vmem:[#allocation62_spill] sm:$0xff]  ;;  %v7875_v32 = vld [vmem:[#allocation63_spill] sm:$0xff] }
 0x90a   :  { %3021 = vmatpush1.bf16.msra.mxu1 %v7840_v53  ;;  %3064 = vmatpush1.bf16.msra.mxu0 %v7841_v50 }
 0x90b   :  { %3022 = vmatprep.subr.bf16.mxu1 %v7842_v52  ;;  %3065 = vmatprep.subr.bf16.mxu0 %v7843_v4 }
 0x90e   :  { %3023 = vmatpush1.bf16.msra.mxu1 %v7844_v49  ;;  %3066 = vmatpush1.bf16.msra.mxu0 %v7845_v11 }
 0x90f   :  { %3024 = vmatprep.subr.bf16.mxu1 %v7846_v44  ;;  %3067 = vmatprep.subr.bf16.mxu0 %v7847_v14  ;;  %v7891_v44 = vld [vmem:[#allocation29_spill] sm:$0xff] }
 0x912   :  { %3025 = vmatpush1.bf16.msra.mxu1 %v7848_v9  ;;  %3068 = vmatpush1.bf16.msra.mxu0 %v7849_v12 }
 0x913   :  { %3026 = vmatprep.subr.bf16.mxu1 %v7850_v17  ;;  %3069 = vmatprep.subr.bf16.mxu0 %v7851_v7 }
 0x916   :  { %3027 = vmatpush1.bf16.msra.mxu1 %v7852_v26  ;;  %3070 = vmatpush1.bf16.msra.mxu0 %v7853_v6 }
 0x917   :  { %3028 = vmatprep.subr.bf16.mxu1 %v7854_v40  ;;  %3071 = vmatprep.subr.bf16.mxu0 %v7855_v0 }
 0x91a   :  { %3029 = vmatpush1.bf16.msra.mxu1 %v7856_v30  ;;  %3072 = vmatpush1.bf16.msra.mxu0 %v7857_v38 }
 0x91b   :  { %3030 = vmatprep.subr.bf16.mxu1 %v7858_v41  ;;  %3073 = vmatprep.subr.bf16.mxu0 %v7859_v46  ;;  %v7892_v46 = vld [vmem:[#allocation30_spill] sm:$0xff] }
 0x91e   :  { %3031 = vmatpush1.bf16.msra.mxu1 %v7860_v31  ;;  %3074 = vmatpush1.bf16.msra.mxu0 %v7861_v48 }
 0x91f   :  { %3032 = vmatprep.subr.bf16.mxu1 %v7862_v51  ;;  %3075 = vmatprep.subr.bf16.mxu0 %v7863_v54  ;;  %v7893_v54 = vld [vmem:[#allocation31_spill] sm:$0xff] }
 0x922   :  { %3033 = vmatpush1.bf16.msra.mxu1 %v7864_v55  ;;  %3076 = vmatpush1.bf16.msra.mxu0 %v7865_v56 }
 0x923   :  { %3034 = vmatprep.subr.bf16.mxu1 %v7866_v57  ;;  %3077 = vmatprep.subr.bf16.mxu0 %v7867_v58 }
 0x926   :  { %3035 = vmatpush1.bf16.msra.mxu1 %v7868_v59  ;;  %3078 = vmatpush1.bf16.msra.mxu0 %v7869_v60 }
 0x927   :  { %3036 = vmatprep.subr.bf16.mxu1 %v7870_v5  ;;  %3079 = vmatprep.subr.bf16.mxu0 %v7871_v35 }
 0x92a   :  { %3037 = vmatpush1.bf16.msra.mxu1 %v7872_v24  ;;  %3080 = vmatpush1.bf16.msra.mxu0 %v7873_v18 }
 0x92b   :  { %3038 = vmatprep.subr.bf16.mxu1 %v7874_v33  ;;  %3081 = vmatprep.subr.bf16.mxu0 %v7875_v32  ;;  %v7894_v33 = vld [vmem:[#allocation108_spill] sm:$0xff] }
 0x92e   :  { %3039 = vmatpush1.bf16.msra.mxu1 %v7876_v2  ;;  %3082 = vmatpush1.bf16.msra.mxu0 %v7877_v47 }
 0x92f   :  { %3040 = vmatprep.subr.bf16.mxu1 %v7878_v29  ;;  %3083 = vmatprep.subr.bf16.mxu0 %v7879_v19 }
 0x932   :  { %3041 = vmatpush1.bf16.msra.mxu1 %v7880_v13  ;;  %3084 = vmatpush1.bf16.msra.mxu0 %v7881_v16  ;;  %v7895_v16 = vld [vmem:[#allocation122_spill] sm:$0xff] }
 0x933   :  { %3042 = vmatprep.subr.bf16.mxu1 %v7882_v15  ;;  %3085 = vmatprep.subr.bf16.mxu0 %v7883_v28 }
 0x936   :  { %3043 = vmatpush1.bf16.msra.mxu1 %v7884_v27  ;;  %3086 = vmatpush1.bf16.msra.mxu0 %v7885_v45 }
 0x937   :  { %3044 = vmatprep.subr.bf16.mxu1 %v7886_v3  ;;  %3087 = vmatprep.subr.bf16.mxu0 %v7887_v21  ;;  %v7896_v3 = vld [vmem:[#allocation123_spill] sm:$0xff] }
 0x93a   :  { %3045 = vmatpush1.bf16.msra.mxu1 %v7888_v39  ;;  %3088 = vmatpush1.bf16.msra.mxu0 %v7889_v37 }
 0x93b   :  { %3892 = vmatprep.subr.bf16.mxu1 %v6922_v63 }
 0x9b0   :  { %v2796_v1 = vpop.f32.mrb[68].mxu1  ;;  %v2839_v23 = vpop.f32.mrb[84].mxu0 }
 0x9b1   :  { %v2797_v62 = vadd.f32 %v2796_v1, %v7890_v43  ;;  %v2798_v8 = vpop.f32.mrb[69].mxu1  ;;  %v2841_v20 = vpop.f32.mrb[85].mxu0  ;;  %v2840_v55 = vadd.f32 %v2839_v23, %v7893_v54  ;;  %v7897_v1 = vld [vmem:[#allocation124_spill] sm:$0xff] }
 0x9b2   :  { %v2800_v53 = vpop.f32.mrb[70].mxu1  ;;  %v2843_v50 = vpop.f32.mrb[86].mxu0  ;;  %v2799_v14 = vadd.f32 %v2798_v8, %v7891_v44  ;;  %v2842_v31 = vadd.f32 %v2841_v20, %v7892_v46 }
 0x9b3   :  { %v3535_v52 = vmul.f32 -1.442695, %v2797_v62  ;;  %v2801_v4 = vadd.f32 %v2800_v53, %v7890_v43  ;;  %v2802_v49 = vpop.f32.mrb[71].mxu1  ;;  %v2845_v11 = vpop.f32.mrb[87].mxu0  ;;  %v2844_v60 = vadd.f32 %v2843_v50, %v7893_v54  ;;  %v7898_v62 = vld [vmem:[#allocation125_spill] sm:$0xff] }
 0x9b4   :  { %v2803_v12 = vadd.f32 %v2802_v49, %v7891_v44  ;;  %v3537_v17 = vmul.f32 -1.442695, %v2799_v14  ;;  %v2846_v57 = vadd.f32 %v2845_v11, %v7892_v46 }
 0x9b5   :  { %4408 = vpow2.f32 %v3535_v52  ;;  %v3536_v9 = vmul.f32 -1.442695, %v2801_v4 }
 0x9b6   :  { %v3538_v7 = vmul.f32 -1.442695, %v2803_v12 }
 0x9b7   :  { %4410 = vpow2.f32 %v3536_v9 }
 0x9b8   :  { %4412 = vpow2.f32 %v3537_v17 }
 0x9b9   :  { %4414 = vpow2.f32 %v3538_v7 }
 0x9bf   :  { %v4409_v26 = vpop.eup %4408 }
 0x9c0   :  { %v2854_v6 = vadd.f32 1.0, %v4409_v26 }
 0x9c1   :  { %v4411_v40 = vpop.eup %4410 }
 0x9c2   :  { %4416 = vrcp.f32 %v2854_v6  ;;  %v2855_v0 = vadd.f32 1.0, %v4411_v40  ;;  %v4413_v30 = vpop.eup %4412 }
 0x9c3   :  { %v4415_v38 = vpop.eup %4414  ;;  %v2866_v41 = vadd.f32 1.0, %v4413_v30 }
 0x9c4   :  { %4418 = vrcp.f32 %v2855_v0  ;;  %v2867_v48 = vadd.f32 1.0, %v4415_v38 }
 0x9c5   :  { %4420 = vrcp.f32 %v2866_v41 }
 0x9c6   :  { %4422 = vrcp.f32 %v2867_v48 }
 0x9cc   :  { %v4417_v51 = vpop.eup %4416 }
 0x9cd   :  { %v2872_v56 = vmul.f32 %v4417_v51, %v2842_v31 }
 0x9ce   :  { %v4419_v58 = vpop.eup %4418 }
 0x9cf   :  { %v2874_v59 = vadd.f32 %v2872_v56, %v2840_v55  ;;  %v2873_v5 = vmul.f32 %v4419_v58, %v2846_v57  ;;  %v4421_v20 = vpop.eup %4420 }
 0x9d0   :  { %v2920_v35 = vpop.f32.mrb[72].mxu1  ;;  %v2963_v24 = vpop.f32.mrb[88].mxu0  ;;  %v2878_v4 = vsub.f32 1.0, %v4421_v20  ;;  %v2882_v12 = vmul.f32 %v4421_v20, %v6807_v22 }
 0x9d1   :  { %4424 = vtanh.f32 %v2874_v59  ;;  %v2875_v18 = vadd.f32 %v2873_v5, %v2844_v60  ;;  %v2921_v32 = vadd.f32 %v2920_v35, %v7894_v33  ;;  %v2922_v2 = vpop.f32.mrb[73].mxu1  ;;  %v3890_v47 = vpop.f32.mrb[89].mxu0  ;;  %v2964_v48 = vadd.f32 %v2963_v24, %v5612_v42  ;;  %v7899_v59 = vld [vmem:[#allocation109_spill] sm:$0xff]  ;;  %v7900_v35 = vld [vmem:[#allocation107_spill] sm:$0xff] }
 0x9d2   :  { %v2923_v29 = vadd.f32 %v2922_v2, %v5551_v10  ;;  %v2924_v19 = vpop.f32.mrb[74].mxu1  ;;  %v2966_v13 = vpop.f32.mrb[90].mxu0 }
 0x9d3   :  { %4426 = vtanh.f32 %v2875_v18  ;;  %v2970_v15 = vadd.f32 %v2921_v32, %v7895_v16  ;;  %v2925_v28 = vadd.f32 %v2924_v19, %v7894_v33  ;;  %v2926_v27 = vpop.f32.mrb[75].mxu1  ;;  %v3891_v45 = vpop.f32.mrb[91].mxu0  ;;  %v2967_v57 = vadd.f32 %v2966_v13, %v5612_v42 }
 0x9d4   :  { %v2984_v21 = vadd.f32 %v2923_v29, %v7896_v3  ;;  %v2927_v39 = vadd.f32 %v2926_v27, %v5551_v10  ;;  %v4423_v50 = vpop.eup %4422  ;;  %v4141_v45 = vld [vmem:[#allocation14 + $0x8] sm:$0xff]  }
 0x9d5   :  { %v3539_v37 = vmul.f32 -1.442695, %v2970_v15  ;;  %v2971_v23 = vadd.f32 %v2925_v28, %v7897_v1  ;;  %v2879_v14 = vsub.f32 1.0, %v4423_v50  ;;  %v2883_v7 = vmul.f32 %v4423_v50, %v6809_v36  ;;  %v7901_v3 = vld [vmem:[#allocation32_spill] sm:$0xff]  ;;  %v4147_v1 = vld [vmem:[#allocation14 + $0x38] sm:$0xff]  }
 0x9d6   :  { %v2985_v8 = vadd.f32 %v2927_v39, %v7898_v62  ;;  %v3541_v52 = vmul.f32 -1.442695, %v2984_v21  ;;  %v4142_v21 = vld [vmem:[#allocation14 + $0x10] sm:$0xff]   ;;  %v4145_v39 = vld [vmem:[#allocation14 + $0x28] sm:$0xff]  }
 0x9d7   :  { %4428 = vpow2.f32 %v3539_v37  ;;  %v3540_v53 = vmul.f32 -1.442695, %v2971_v23  ;;  %v4146_v37 = vld [vmem:[#allocation14 + $0x30] sm:$0xff]  }
 0x9d8   :  { %v3542_v11 = vmul.f32 -1.442695, %v2985_v8  ;;  %v7903_v23 = vld [vmem:[#allocation93_spill] sm:$0xff]  ;;  %v7905_v8 = vld [vmem:[#allocation70_spill] sm:$0xff] }
 0x9d9   :  { %4430 = vpow2.f32 %v3540_v53  ;;  %v7904_v62 = vld [vmem:[#allocation97_spill] sm:$0xff] }
 0x9da   :  { %4432 = vpow2.f32 %v3541_v52 }
 0x9db   :  { %v4425_v49 = vpop.eup %4424  ;;  %4434 = vpow2.f32 %v3542_v11 }
 0x9dc   :  { %v2880_v9 = vmul.f32 %v4425_v49, %v2878_v4 }
 0x9dd   :  { %v4427_v17 = vpop.eup %4426 }
 0x9de   :  { %v2881_v10 = vmul.f32 %v4427_v17, %v2879_v14  ;;  %v6943_v26 = vadd.f32 %v2882_v12, %v2880_v9 }
 0x9e0   :  { %v6945_v6 = vadd.f32 %v2883_v7, %v2881_v10 }
 0x9e1   :  { %v4429_v40 = vpop.eup %4428 }
 0x9e2   :  { %v2978_v0 = vadd.f32 1.0, %v4429_v40  ;;  %v6949_v30 = vpack.c.bf16 %v6945_v6, %v6943_v26 }
 0x9e3   :  { %v4431_v38 = vpop.eup %4430 }
 0x9e4   :  { %4436 = vrcp.f32 %v2978_v0  ;;  %v2979_v41 = vadd.f32 1.0, %v4431_v38  ;;  %3046 = vmatprep.mubr.bf16.mxu1 %v6949_v30  ;;  %3089 = vmatprep.mubr.bf16.mxu0 %v6949_v30  ;;  %v4433_v22 = vpop.eup %4432 }
 0x9e5   :  { %v4435_v36 = vpop.eup %4434  ;;  %v2992_v31 = vadd.f32 1.0, %v4433_v22 }
 0x9e6   :  { %4438 = vrcp.f32 %v2979_v41  ;;  %v2993_v51 = vadd.f32 1.0, %v4435_v36 }
 0x9e7   :  { %4440 = vrcp.f32 %v2992_v31 }
 0x9e8   :  { %4442 = vrcp.f32 %v2993_v51 }
 0x9ee   :  { %v4437_v55 = vpop.eup %4436 }
 0x9ef   :  { %v2998_v56 = vmul.f32 %v4437_v55, %v2964_v48 }
 0x9f0   :  { %v4439_v58 = vpop.eup %4438 }
 0x9f1   :  { %v3000_v60 = vadd.f32 %v2998_v56, %v7899_v59  ;;  %v2999_v5 = vmul.f32 %v4439_v58, %v2967_v57  ;;  %v4441_v33 = vpop.eup %4440  ;;  %v6977_v59 = vld [vmem:[%s7051_s8] ss:$0 sm:$0xff]  ;;  %s4941_s8 = smov [#allocation17]  }
 0x9f2   :  { %v4443_v32 = vpop.eup %4442  ;;  %v3004_v2 = vsub.f32 1.0, %v4441_v33  ;;  %v3008_v19 = vmul.f32 %v4441_v33, %v6823_v34  ;;  %v4143_v34 = vld [vmem:[#allocation14 + $0x18] sm:$0xff]   ;;  %s3360_s4 = sshll.u32 %s4941_s8, 4  ;;  %s3361_s4 = int_to_ptr.vmem [resolvable:$true] %s3360_s4 }
 0x9f3   :  { %4444 = vtanh.f32 %v3000_v60  ;;  %v3001_v18 = vadd.f32 %v2999_v5, %v7900_v35  ;;  %v3005_v24 = vsub.f32 1.0, %v4443_v32  ;;  %v3009_v42 = vmul.f32 %v4443_v32, %v6825_v25  ;;  %v4144_v25 = vld [vmem:[#allocation14 + $0x20] sm:$0xff]   ;;  %s4840_s28 = scalar_lea.vmem %s3361_s4, 256  ;;  %p4845_p9 = scmp.lt.s32.totalorder %s3361_s4, %s3361_s4 }
 0x9f4   :  { %p4841_p8 = scmp.ne.s32.totalorder %s3361_s4, %s4840_s28  ;;  %p4846_p10 = scmp.lt.s32.totalorder %s4840_s28, %s4840_s28 }
 0x9f5   :  { %4446 = vtanh.f32 %v3001_v18 }
 0x9f6   :  { %p4847_p11 = por %p4846_p10, %p4845_p9 }
 0x9f8   :  { %p4848_p12 = pnand %p4847_p11, %p4841_p8 }
 0x9fd   :  { %v4445_v47 = vpop.eup %4444 }
 0x9fe   :  { %v3006_v29 = vmul.f32 %v4445_v47, %v3004_v2 }
 0x9ff   :  { %v4447_v16 = vpop.eup %4446 }
 0xa00   :  { %v3007_v15 = vmul.f32 %v4447_v16, %v3005_v24  ;;  %v3010_v13 = vadd.f32 %v3008_v19, %v3006_v29  ;;  %v4648_v24 = vld [vmem:[#allocation2 + $0x10] sm:$0xff] }
 0xa02   :  { %v3011_v28 = vadd.f32 %v3009_v42, %v3007_v15  ;;  %3138 = vst [vmem:[#allocation16] sm:$0xff] %v3010_v13  ;;  %v4649_v15 = vld [vmem:[#allocation2] sm:$0xff] }
 0xa04   :  { %v3012_v27 = vpack.c.bf16 %v3011_v28, %v3010_v13  ;;  %3139 = vst [vmem:[#allocation16 + $0x8] sm:$0xff] %v3011_v28  ;;  %v4650_v13 = vld [vmem:[#allocation2 + $0x18] sm:$0xff] }
 0xa06   :  { %3047 = vmatmul.mubr.bf16.vlgmr.msra.gmra.mrb[76].mxu1 %v3012_v27  ;;  %3090 = vmatmul.mubr.bf16.vlgmr.msra.gmra.mrb[92].mxu0 %v3012_v27  ;;  %v4651_v27 = vld [vmem:[#allocation2 + $0x8] sm:$0xff] }
 0xa07   :  { %3893 = vmatpush3.bf16.msra.mxu1 %v6922_v63  ;;  %3908 = vmatprep.mubr.bf16.mxu1 %v7901_v3  ;;  %v7902_v63 = vld [vmem:[#allocation80_spill] sm:$0xff] }
 0xa08   :  { %3894 = vmatprep.subr.bf16.mxu1 %v4141_v45 }
 0xa0b   :  { %3895 = vmatpush3.bf16.msra.mxu1 %v4141_v45 }
 0xa0c   :  { %3896 = vmatprep.subr.bf16.mxu1 %v4142_v21 }
 0xa0f   :  { %3897 = vmatpush3.bf16.msra.mxu1 %v4142_v21 }
 0xa10   :  { %3898 = vmatprep.subr.bf16.mxu1 %v4143_v34 }
 0xa13   :  { %3899 = vmatpush3.bf16.msra.mxu1 %v4143_v34 }
 0xa14   :  { %3900 = vmatprep.subr.bf16.mxu1 %v4144_v25 }
 0xa17   :  { %3901 = vmatpush3.bf16.msra.mxu1 %v4144_v25 }
 0xa18   :  { %3902 = vmatprep.subr.bf16.mxu1 %v4145_v39 }
 0xa1b   :  { %3903 = vmatpush3.bf16.msra.mxu1 %v4145_v39 }
 0xa1c   :  { %3904 = vmatprep.subr.bf16.mxu1 %v4146_v37 }
 0xa1f   :  { %3905 = vmatpush3.bf16.msra.mxu1 %v4146_v37 }
 0xa20   :  { %3906 = vmatprep.subr.bf16.mxu1 %v4147_v1 }
 0xa23   :  { %3907 = vmatpush3.bf16.msra.mxu1 %v4147_v1 }
 0xa26   :  { %3909 = vmatmul.mubr.bf16.vlgmr.msra.gmra.mrb[80].mxu1 %v7902_v63 }
 0xa27   :  { %3912 = vmatprep.mubr.bf16.mxu1 %v7903_v23 }
 0xa2e   :  { %3913 = vmatmul.mubr.bf16.gmra.mrb[84].mxu1 %v7904_v62  ;;  %v4652_v62 = vld [vmem:[#allocation2 + $0x30] sm:$0xff] }
 0xa2f   :  { %3916 = vmatprep.mubr.bf16.mxu1 %v7905_v8 }
 0xa36   :  { %3917 = vmatmul.mubr.bf16.gmra.mrb[88].mxu1 %v6813_v61 }
 0xa37   :  { %3920 = vmatprep.mubr.bf16.mxu1 %v6949_v30 }
 0xad9   :  { %v3048_v20 = vpop.f32.mrb[76].mxu1  ;;  %v3091_v53 = vpop.f32.mrb[92].mxu0 }
 0xada   :  { %v3049_v50 = vadd.f32 %v3048_v20, %v7890_v43  ;;  %v3050_v52 = vpop.f32.mrb[77].mxu1  ;;  %v3093_v4 = vpop.f32.mrb[93].mxu0 }
 0xadb   :  { %v3052_v49 = vpop.f32.mrb[78].mxu1  ;;  %v3095_v11 = vpop.f32.mrb[94].mxu0  ;;  %v3051_v10 = vadd.f32 %v3050_v52, %v7891_v44  ;;  %v3094_v48 = vadd.f32 %v3093_v4, %v7892_v46  ;;  %v4653_v52 = vld [vmem:[#allocation2 + $0x20] sm:$0xff] }
 0xadc   :  { %v3543_v14 = vmul.f32 -1.442695, %v3049_v50  ;;  %v3053_v9 = vadd.f32 %v3052_v49, %v7890_v43  ;;  %v3054_v12 = vpop.f32.mrb[79].mxu1  ;;  %v3097_v17 = vpop.f32.mrb[95].mxu0  ;;  %v3096_v5 = vadd.f32 %v3095_v11, %v7893_v54 }
 0xadd   :  { %v3055_v61 = vadd.f32 %v3054_v12, %v7891_v44  ;;  %v3545_v40 = vmul.f32 -1.442695, %v3051_v10  ;;  %v3092_v44 = vadd.f32 %v3091_v53, %v7893_v54  ;;  %v3098_v57 = vadd.f32 %v3097_v17, %v7892_v46  ;;  %v4654_v12 = vld [vmem:[#allocation2 + $0x38] sm:$0xff]  ;;  %v4655_v10 = vld [vmem:[#allocation2 + $0x28] sm:$0xff] }
 0xade   :  { %4448 = vpow2.f32 %v3543_v14  ;;  %v3544_v7 = vmul.f32 -1.442695, %v3053_v9 }
 0xadf   :  { %v3546_v0 = vmul.f32 -1.442695, %v3055_v61 }
 0xae0   :  { %4450 = vpow2.f32 %v3544_v7 }
 0xae1   :  { %4452 = vpow2.f32 %v3545_v40 }
 0xae2   :  { %4454 = vpow2.f32 %v3546_v0 }
 0xae8   :  { %v4449_v30 = vpop.eup %4448 }
 0xae9   :  { %v3106_v38 = vadd.f32 1.0, %v4449_v30 }
 0xaea   :  { %v4451_v41 = vpop.eup %4450 }
 0xaeb   :  { %4456 = vrcp.f32 %v3106_v38  ;;  %v3107_v22 = vadd.f32 1.0, %v4451_v41  ;;  %v4453_v43 = vpop.eup %4452 }
 0xaec   :  { %v4455_v36 = vpop.eup %4454  ;;  %v3118_v31 = vadd.f32 1.0, %v4453_v43 }
 0xaed   :  { %4458 = vrcp.f32 %v3107_v22  ;;  %v3119_v51 = vadd.f32 1.0, %v4455_v36 }
 0xaee   :  { %4460 = vrcp.f32 %v3118_v31  ;;  %v4656_v31 = vld [vmem:[#allocation2 + $0x50] sm:$0xff] }
 0xaef   :  { %4462 = vrcp.f32 %v3119_v51 }
 0xaf5   :  { %v4457_v55 = vpop.eup %4456 }
 0xaf6   :  { %v3124_v56 = vmul.f32 %v4457_v55, %v3094_v48 }
 0xaf7   :  { %v4459_v58 = vpop.eup %4458 }
 0xaf8   :  { %v3126_v60 = vadd.f32 %v3124_v56, %v3092_v44  ;;  %v3125_v35 = vmul.f32 %v4459_v58, %v3098_v57  ;;  %v4461_v3 = vpop.eup %4460  ;;  %v4658_v57 = vld [vmem:[#allocation2 + $0x58] sm:$0xff] }
 0xaf9   :  { %v3910_v18 = vpop.f32.mrb[80].mxu1  ;;  %v4463_v34 = vpop.eup %4462  ;;  %v3130_v63 = vsub.f32 1.0, %v4461_v3  ;;  %v3134_v50 = vmul.f32 %v4461_v3, %v6943_v26 }
 0xafa   :  { %4464 = vtanh.f32 %v3126_v60  ;;  %v3127_v33 = vadd.f32 %v3125_v35, %v3096_v5  ;;  %v3257_v32 = vadd.f32 %v3910_v18, %v6977_v59  ;;  %v3248_v2 = vpop.f32.mrb[81].mxu1  ;;  %v3131_v11 = vsub.f32 1.0, %v4463_v34  ;;  %v4659_v60 = vld [vmem:[#allocation2 + $0x48] sm:$0xff] }
 0xafb   :  { %v3249_v47 = vadd.f32 %v6977_v59, %v3248_v2  ;;  %v3911_v46 = vpop.f32.mrb[82].mxu1  ;;  %v3135_v40 = vmul.f32 %v4463_v34, %v6945_v6  ;;  %v4657_v6 = vld [vmem:[#allocation2 + $0x40] sm:$0xff] }
 0xafc   :  { %4466 = vtanh.f32 %v3127_v33  ;;  %v3313_v29 = vadd.f32 %v4648_v24, %v3257_v32  ;;  %v3260_v19 = vadd.f32 %v3911_v46, %v6977_v59  ;;  %v3251_v16 = vpop.f32.mrb[83].mxu1 }
 0xafd   :  { %v3311_v42 = vadd.f32 %v4649_v15, %v3249_v47  ;;  %v3252_v54 = vadd.f32 %v6977_v59, %v3251_v16 }
 0xafe   :  { %3329 = vst [vmem:[#allocation19 + $0x10] sm:$0xff] %v3313_v29  ;;  %v3314_v28 = vadd.f32 %v4650_v13, %v3260_v19 }
 0xaff   :  { %3327 = vst [vmem:[#allocation19] sm:$0xff] %v3311_v42  ;;  %v3312_v45 = vadd.f32 %v4651_v27, %v3252_v54 }
 0xb00   :  { %3330 = vst [vmem:[#allocation19 + $0x18] sm:$0xff] %v3314_v28 }
 0xb01   :  { %3328 = vst [vmem:[#allocation19 + $0x8] sm:$0xff] %v3312_v45  ;;  %v3914_v21 = vpop.f32.mrb[84].mxu1 }
 0xb02   :  { %v3273_v25 = vadd.f32 %v3914_v21, %v6977_v59  ;;  %v3264_v39 = vpop.f32.mrb[85].mxu1 }
 0xb03   :  { %v3265_v37 = vadd.f32 %v6977_v59, %v3264_v39  ;;  %v3915_v1 = vpop.f32.mrb[86].mxu1 }
 0xb04   :  { %v4465_v23 = vpop.eup %4464  ;;  %v3317_v8 = vadd.f32 %v4652_v62, %v3273_v25  ;;  %v3276_v20 = vadd.f32 %v3915_v1, %v6977_v59  ;;  %v3267_v53 = vpop.f32.mrb[87].mxu1 }
 0xb05   :  { %v3315_v4 = vadd.f32 %v4653_v52, %v3265_v37  ;;  %v3268_v49 = vadd.f32 %v6977_v59, %v3267_v53  ;;  %v3132_v14 = vmul.f32 %v4465_v23, %v3130_v63 }
 0xb06   :  { %v4467_v9 = vpop.eup %4466  ;;  %3333 = vst [vmem:[#allocation19 + $0x30] sm:$0xff] %v3317_v8  ;;  %v3318_v17 = vadd.f32 %v4654_v12, %v3276_v20 }
 0xb07   :  { %3331 = vst [vmem:[#allocation19 + $0x20] sm:$0xff] %v3315_v4  ;;  %v3316_v7 = vadd.f32 %v4655_v10, %v3268_v49  ;;  %v3133_v61 = vmul.f32 %v4467_v9, %v3131_v11  ;;  %v3136_v0 = vadd.f32 %v3134_v50, %v3132_v14 }
 0xb08   :  { %3334 = vst [vmem:[#allocation19 + $0x38] sm:$0xff] %v3318_v17 }
 0xb09   :  { %3332 = vst [vmem:[#allocation19 + $0x28] sm:$0xff] %v3316_v7  ;;  %v3918_v26 = vpop.f32.mrb[88].mxu1  ;;  %v3137_v30 = vadd.f32 %v3135_v40, %v3133_v61  ;;  %3140 = vst [vmem:[#allocation17] sm:$0xff] %v3136_v0 }
 0xb0a   :  { %v3289_v38 = vadd.f32 %v3918_v26, %v6977_v59  ;;  %v3280_v41 = vpop.f32.mrb[89].mxu1 }
 0xb0b   :  { %v3281_v22 = vadd.f32 %v6977_v59, %v3280_v41  ;;  %v3919_v43 = vpop.f32.mrb[90].mxu1  ;;  %v3142_v36 = vpack.c.bf16 %v3137_v30, %v3136_v0  ;;  %3141 = vst [vmem:[#allocation17 + $0x8] sm:$0xff] %v3137_v30 }
 0xb0c   :  { %v3321_v48 = vadd.f32 %v4656_v31, %v3289_v38  ;;  %v3292_v51 = vadd.f32 %v3919_v43, %v6977_v59  ;;  %v3283_v55 = vpop.f32.mrb[91].mxu1 }
 0xb0d   :  { %v3319_v44 = vadd.f32 %v4657_v6, %v3281_v22  ;;  %v3284_v56 = vadd.f32 %v6977_v59, %v3283_v55  ;;  %3921 = vmatmul.mubr.bf16.gmra.mrb[92].mxu1 %v3142_v36 }
 0xb0e   :  { %3337 = vst [vmem:[#allocation19 + $0x50] sm:$0xff] %v3321_v48  ;;  %v3322_v58 = vadd.f32 %v4658_v57, %v3292_v51 }
 0xb0f   :  { %3335 = vst [vmem:[#allocation19 + $0x40] sm:$0xff] %v3319_v44  ;;  %v3320_v5 = vadd.f32 %v4659_v60, %v3284_v56 }
 0xb10   :  { %3338 = vst [vmem:[#allocation19 + $0x58] sm:$0xff] %v3322_v58 }
 0xb11   :  { %3336 = vst [vmem:[#allocation19 + $0x48] sm:$0xff] %v3320_v5 }
 0xb12   :  { %4851 = shalt.err (!%p4848_p12)
}
 0xb13   :  { %s4852_s14 = scalar_lea.hbm %s7055_s12, 256 }
 0xb14   :  { %p4853_p13 = scmp.ne.s32.totalorder %s7055_s12, %s4852_s14  ;;  %p4856_p0 = scmp.lt.u32.totalorder %s4852_s14, %s7055_s12 }
 0xb16   :  { %p4858_p1 = pnand %p4856_p0, %p4853_p13 }
 0xb18   :  { %4861 = shalt.err (!%p4858_p1)
}
 0xb19   :  { %3366 = dma.vmem_to_hbm [thread:$0]  %s3361_s4, 256, %s7055_s12, [#allocation18], %s4930_s5, %s4930_s5, %s4931_s19  }
 0xb1a   :  { %s4862_s17 = scalar_lea.vmem %s3349_s27, 256  ;;  %p4867_p3 = scmp.lt.s32.totalorder %s3349_s27, %s3349_s27 }
 0xb1b   :  { %p4863_p2 = scmp.ne.s32.totalorder %s3349_s27, %s4862_s17  ;;  %p4868_p4 = scmp.lt.s32.totalorder %s4862_s17, %s4862_s17 }
 0xb1d   :  { %p4869_p5 = por %p4868_p4, %p4867_p3 }
 0xb1f   :  { %p4870_p6 = pnand %p4869_p5, %p4863_p2 }
 0xb21   :  { %4873 = shalt.err (!%p4870_p6)
}
 0xb22   :  { %s4874_s18 = scalar_lea.hbm %s7054_s11, 256 }
 0xb23   :  { %p4875_p7 = scmp.ne.s32.totalorder %s7054_s11, %s4874_s18  ;;  %p4878_p8 = scmp.lt.u32.totalorder %s4874_s18, %s7054_s11 }
 0xb25   :  { %p4880_p9 = pnand %p4878_p8, %p4875_p7 }
 0xb27   :  { %4883 = shalt.err (!%p4880_p9)
}
 0xb28   :  { %3354 = dma.vmem_to_hbm [thread:$0]  %s3349_s27, 256, %s7054_s11, [#allocation4], %s4930_s5, %s4930_s5, %s4931_s19   ;;  %v4660_v47 = vld [vmem:[#allocation2 + $0x70] sm:$0xff]  ;;  %v4661_v19 = vld [vmem:[#allocation2 + $0x60] sm:$0xff]  ;;  %v4662_v42 = vld [vmem:[#allocation2 + $0x78] sm:$0xff] }
 0xb29   :  { %s4943_s24 = smov [#allocation19]   ;;  %v4663_v13 = vld [vmem:[#allocation2 + $0x68] sm:$0xff] }
 0xb2a   :  { %s3372_s10 = sshll.u32 %s4943_s24, 4  ;;  %s3373_s10 = int_to_ptr.vmem [resolvable:$true] %s3372_s10 }
 0xb2b   :  { %s4884_s11 = scalar_lea.vmem %s3373_s10, 2048  ;;  %p4889_p11 = scmp.lt.s32.totalorder %s3373_s10, %s3373_s10 }
 0xb2c   :  { %p4885_p10 = scmp.ne.s32.totalorder %s3373_s10, %s4884_s11  ;;  %p4890_p12 = scmp.lt.s32.totalorder %s4884_s11, %s4884_s11 }
 0xb2e   :  { %p4891_p13 = por %p4890_p12, %p4889_p11 }
 0xb30   :  { %p4892_p0 = pnand %p4891_p13, %p4885_p10 }
 0xbe0   :  { %v3922_v35 = vpop.f32.mrb[92].mxu1 }
 0xbe1   :  { %v3305_v18 = vadd.f32 %v3922_v35, %v6977_v59  ;;  %v3296_v33 = vpop.f32.mrb[93].mxu1 }
 0xbe2   :  { %v3297_v32 = vadd.f32 %v6977_v59, %v3296_v33  ;;  %v3923_v2 = vpop.f32.mrb[94].mxu1 }
 0xbe3   :  { %v3325_v46 = vadd.f32 %v4660_v47, %v3305_v18  ;;  %v3308_v24 = vadd.f32 %v3923_v2, %v6977_v59  ;;  %v3299_v29 = vpop.f32.mrb[95].mxu1 }
 0xbe4   :  { %v3323_v16 = vadd.f32 %v4661_v19, %v3297_v32  ;;  %v3300_v15 = vadd.f32 %v6977_v59, %v3299_v29 }
 0xbe5   :  { %3341 = vst [vmem:[#allocation19 + $0x70] sm:$0xff] %v3325_v46  ;;  %v3326_v54 = vadd.f32 %v4662_v42, %v3308_v24 }
 0xbe6   :  { %3339 = vst [vmem:[#allocation19 + $0x60] sm:$0xff] %v3323_v16  ;;  %v3324_v28 = vadd.f32 %v4663_v13, %v3300_v15 }
 0xbe7   :  { %3342 = vst [vmem:[#allocation19 + $0x78] sm:$0xff] %v3326_v54 }
 0xbe8   :  { %3340 = vst [vmem:[#allocation19 + $0x68] sm:$0xff] %v3324_v28 }
 0xbe9   :  { %4895 = shalt.err (!%p4892_p0)
}
 0xbea   :  { %s4896_s4 = scalar_lea.hbm %s7056_s13, 2048 }
 0xbeb   :  { %p4897_p1 = scmp.ne.s32.totalorder %s7056_s13, %s4896_s4  ;;  %p4900_p2 = scmp.lt.u32.totalorder %s4896_s4, %s7056_s13 }
 0xbed   :  { %p4902_p3 = pnand %p4900_p2, %p4897_p1 }
 0xbef   :  { %4905 = shalt.err (!%p4902_p3)
}
 0xbf0   :  { %3378 = dma.vmem_to_hbm [thread:$0]  %s3373_s10, 2048, %s7056_s13, [#allocation18], %s4930_s5, %s4930_s5, %s4931_s19  }
 0xbf1   :  { %4916 = dma.done.wait [#allocation4], 256  }
 0xbf2   :  { %4917 = vsyncadd [#allocation4], 4294967040 }
 0xbf3   :  { %4918 = dma.done.wait [#allocation18], 2304  }
 0xbf4   :  { %4919 = vsyncadd [#allocation18], 4294964992 }
 0xbf5   :  { %3388 = vsyncpa [#allocation3], 1 }
 0xbf6   :  { %3389 = vsyncpa [#allocation6], 1 }
 0xbf7   :  { %3390 = vsyncpa [#allocation9], 1 }
 0xbf8   :  { %3391 = vsyncpa [#allocation12], 1 }
 0xbf9   :  { %3392 = vsyncpa [#allocation15], 1 }
 0xbfa   :  { %3393 = vsyncpa [#allocation4], 1 }
 0xbfb   :  { %3394 = vsyncpa [#allocation18], 1 }

</bundles_post_ra>
